<compile_context>
chip_gen: v5e
topology: v5e:2x2
jax: 0.10.0
libtpu: 0.0.40
codegen_flags: <defaults>
</compile_context>

<pallas_src>
import functools
import math

import jax
import jax.numpy as jnp
from jax.experimental import pallas as pl
from jax.experimental.pallas import tpu as pltpu

NEG_INF = -1e10                       # matches PyTorch masked_fill value
_VMEM_LIMIT_BYTES = 64 * 1024 * 1024  # explicit scoped-VMEM budget (safe on v5e/v6e/v7x)


# ----------------------------- in-kernel helpers -----------------------------

def _layernorm(x, gamma, beta, eps=1e-5):
    """LayerNorm over the last axis; one-pass stats (mean + mean-of-squares), f32."""
    x = x.astype(jnp.float32)
    mu = jnp.mean(x, axis=-1, keepdims=True)
    ms = jnp.mean(x * x, axis=-1, keepdims=True)
    var = ms - mu * mu
    inv = jax.lax.rsqrt(var + eps)
    return (x - mu) * inv * gamma + beta


def _split_heads(x2d, n_heads, head_size):
    """(T, H*hd) -> (H, T, hd) via static lane slices + leading-axis stack."""
    return jnp.stack(
        [x2d[:, h * head_size:(h + 1) * head_size] for h in range(n_heads)], axis=0)


def _mha(q, k, v, masked, wp3, bp, n_heads, head_size):
    """All-heads-at-once attention with the output projection fused in.

    q: (Tq, C), k/v: (Tk, C) -- the 1/sqrt(hd) scale is already folded into q.
    masked: bool (Mq, Tk), True where attention is forbidden (Mq in {1, Tq}).
    wp3: (H, hd, C) head-major output-projection weight; bp: (1, C).
    Returns (Tq, C) f32.
    """
    qh = _split_heads(q, n_heads, head_size)            # (H, Tq, hd)
    kh = _split_heads(k, n_heads, head_size)            # (H, Tk, hd)
    vh = _split_heads(v, n_heads, head_size)            # (H, Tk, hd)
    # batched (leading batch = heads) score / PV contractions -- single MXU ops
    s = jnp.einsum('hqd,hkd->hqk', qh, kh,
                   preferred_element_type=jnp.float32)  # (H, Tq, Tk)
    s = jnp.where(masked[None], jnp.float32(NEG_INF), s)   # mask hoisted: one pass
    smax = jnp.max(s, axis=-1, keepdims=True)
    p = jnp.exp(s - smax)
    denom = jnp.sum(p, axis=-1, keepdims=True)
    p = p * pl.reciprocal(denom, approx=True)           # EUP slot, ~free
    # TODO(synk): attention-prob dropout is identity here (inference mode).
    o = jnp.einsum('hqk,hkd->hqd', p.astype(vh.dtype), vh,
                   preferred_element_type=jnp.float32)  # (H, Tq, hd)
    # head concat folded into the projection: out = sum_h o_h @ wp[h]
    y = jnp.einsum('hqd,hdc->hqc', o.astype(wp3.dtype), wp3,
                   preferred_element_type=jnp.float32)  # (H, Tq, C)
    return jnp.sum(y, axis=0) + bp                      # (Tq, C) f32


# --------------------------------- kernels -----------------------------------

def _encoder_layer_kernel(x_ref, smask_ref,
                          wqkv_ref, bqkv_ref, wp3_ref, bp_ref, g1_ref, be1_ref,
                          w1_ref, bf1_ref, w2_ref, bf2_ref, g2_ref, be2_ref,
                          o_ref, *, n_heads):
    """One full EncoderBlock (self-attn + LN1 + FFN + LN2) for one batch element."""
    x = x_ref[0]                                  # (T, C)
    C = x.shape[-1]
    hd = C // n_heads
    masked = smask_ref[0] == 0                    # (1, Ts) bool, computed once

    # fused Q/K/V projection: single (T, C) @ (C, 3C) matmul (Q already scaled)
    qkv = jnp.dot(x, wqkv_ref[...], preferred_element_type=jnp.float32) + bqkv_ref[...]
    qkv = qkv.astype(x.dtype)
    q, k, v = qkv[:, :C], qkv[:, C:2 * C], qkv[:, 2 * C:]
    attn = _mha(q, k, v, masked, wp3_ref[...], bp_ref[...], n_heads, hd)   # (T, C) f32
    h1 = _layernorm(attn + x, g1_ref[...], be1_ref[...])                   # f32

    # feed-forward + residual + LN (dropout = identity, inference)
    h1c = h1.astype(x.dtype)
    f = jnp.dot(h1c, w1_ref[...], preferred_element_type=jnp.float32) + bf1_ref[...]
    f = jnp.maximum(f, 0.0)
    y2 = jnp.dot(f.astype(x.dtype), w2_ref[...],
                 preferred_element_type=jnp.float32) + bf2_ref[...]
    o_ref[0] = _layernorm(y2 + h1, g2_ref[...], be2_ref[...]).astype(o_ref.dtype)


def _decoder_layer_kernel(y_ref, feat_ref, smask_ref, tmask_ref,
                          swqkv_ref, sbqkv_ref, swp3_ref, sbp_ref, g1_ref, be1_ref,
                          cwq_ref, cbq_ref, cwkv_ref, cbkv_ref, cwp3_ref, cbp_ref,
                          g2_ref, be2_ref,
                          w1_ref, bf1_ref, w2_ref, bf2_ref, g3_ref, be3_ref,
                          o_ref, *, n_heads):
    """One full DecoderBlock (masked self-attn + cross-attn + FFN) per batch elem."""
    y = y_ref[0]                                  # (Tt, C)
    feats = feat_ref[0]                           # (Ts, C)
    C = y.shape[-1]
    Tt = y.shape[0]
    hd = C // n_heads

    # causal mask generated in-kernel (no (B,Tt,Tt) HBM traffic), combined with
    # the target key-padding mask; cross mask is the source key-padding mask.
    # TODO(synk): arbitrary per-query (B,Tt,Tt) target masks are not supported
    #             in this fused path (causal + key padding only).
    row = jax.lax.broadcasted_iota(jnp.int32, (Tt, Tt), 0)
    col = jax.lax.broadcasted_iota(jnp.int32, (Tt, Tt), 1)
    self_masked = jnp.logical_or(col > row, tmask_ref[0] == 0)   # (Tt, Tt)
    cross_masked = smask_ref[0] == 0                             # (1, Ts)

    # --- masked self-attention + residual + LN1 ---
    qkv = jnp.dot(y, swqkv_ref[...], preferred_element_type=jnp.float32) + sbqkv_ref[...]
    qkv = qkv.astype(y.dtype)
    q, k, v = qkv[:, :C], qkv[:, C:2 * C], qkv[:, 2 * C:]
    attn = _mha(q, k, v, self_masked, swp3_ref[...], sbp_ref[...], n_heads, hd)
    h1 = _layernorm(attn + y, g1_ref[...], be1_ref[...])

    # --- cross-attention over encoder features + residual + LN2 ---
    h1c = h1.astype(y.dtype)
    q2 = jnp.dot(h1c, cwq_ref[...], preferred_element_type=jnp.float32) + cbq_ref[...]
    kv = jnp.dot(feats, cwkv_ref[...], preferred_element_type=jnp.float32) + cbkv_ref[...]
    q2 = q2.astype(y.dtype)
    kv = kv.astype(y.dtype)
    k2, v2 = kv[:, :C], kv[:, C:]
    attn2 = _mha(q2, k2, v2, cross_masked, cwp3_ref[...], cbp_ref[...], n_heads, hd)
    h2 = _layernorm(attn2 + h1, g2_ref[...], be2_ref[...])

    # --- feed-forward + residual + LN3 ---
    h2c = h2.astype(y.dtype)
    ff = jnp.dot(h2c, w1_ref[...], preferred_element_type=jnp.float32) + bf1_ref[...]
    ff = jnp.maximum(ff, 0.0)
    y3 = jnp.dot(ff.astype(y.dtype), w2_ref[...],
                 preferred_element_type=jnp.float32) + bf2_ref[...]
    o_ref[0] = _layernorm(y3 + h2, g3_ref[...], be3_ref[...]).astype(o_ref.dtype)


def _linear_kernel(x_ref, w_ref, b_ref, o_ref):
    """(TM, Cin) @ (Cin, TN) + b tile of the generator.

    TODO(synk): add a K grid axis + accumulator for very large Cin.
    """
    acc = jnp.dot(x_ref[...], w_ref[...], preferred_element_type=jnp.float32)
    o_ref[...] = (acc + b_ref[...]).astype(o_ref.dtype)


# --------------------------------- wrappers -----------------------------------

def _const_spec(shape):
    """BlockSpec for a weight that stays VMEM-resident across the (B,) grid."""
    zeros = (0,) * len(shape)
    return pl.BlockSpec(shape, lambda b, _z=zeros: _z)


def encoder_layer(blk, x, src_key_mask3, n_heads):
    B, T, C = x.shape
    Ts = src_key_mask3.shape[-1]
    Fdim = blk["ffn"]["w1"].shape[1]
    hd = C // n_heads
    attn, ffn = blk["attn"], blk["ffn"]
    kernel = functools.partial(_encoder_layer_kernel, n_heads=n_heads)
    return pl.pallas_call(
        kernel,
        out_shape=jax.ShapeDtypeStruct((B, T, C), x.dtype),
        grid=(B,),
        in_specs=[
            pl.BlockSpec((1, T, C), lambda b: (b, 0, 0)),
            pl.BlockSpec((1, 1, Ts), lambda b: (b, 0, 0)),
            _const_spec((C, 3 * C)), _const_spec((1, 3 * C)),
            _const_spec((n_heads, hd, C)), _const_spec((1, C)),
            _const_spec((1, C)), _const_spec((1, C)),
            _const_spec((C, Fdim)), _const_spec((1, Fdim)),
            _const_spec((Fdim, C)), _const_spec((1, C)),
            _const_spec((1, C)), _const_spec((1, C)),
        ],
        out_specs=pl.BlockSpec((1, T, C), lambda b: (b, 0, 0)),
        compiler_params=pltpu.CompilerParams(
            dimension_semantics=("parallel",),
            vmem_limit_bytes=_VMEM_LIMIT_BYTES),
    )(x, src_key_mask3,
      attn["wqkv"], attn["bqkv"], attn["wp3"], attn["bp"],
      blk["ln1"]["g"], blk["ln1"]["b"],
      ffn["w1"], ffn["b1"], ffn["w2"], ffn["b2"],
      blk["ln2"]["g"], blk["ln2"]["b"])


def decoder_layer(blk, y, features, src_key_mask3, targ_key_mask3, n_heads):
    B, Tt, C = y.shape
    Ts = features.shape[1]
    Fdim = blk["ffn"]["w1"].shape[1]
    hd = C // n_heads
    sa, ca, ffn = blk["self_attn"], blk["cross_attn"], blk["ffn"]
    kernel = functools.partial(_decoder_layer_kernel, n_heads=n_heads)
    return pl.pallas_call(
        kernel,
        out_shape=jax.ShapeDtypeStruct((B, Tt, C), y.dtype),
        grid=(B,),
        in_specs=[
            pl.BlockSpec((1, Tt, C), lambda b: (b, 0, 0)),
            pl.BlockSpec((1, Ts, C), lambda b: (b, 0, 0)),
            pl.BlockSpec((1, 1, Ts), lambda b: (b, 0, 0)),
            pl.BlockSpec((1, 1, Tt), lambda b: (b, 0, 0)),
            # masked self-attention
            _const_spec((C, 3 * C)), _const_spec((1, 3 * C)),
            _const_spec((n_heads, hd, C)), _const_spec((1, C)),
            _const_spec((1, C)), _const_spec((1, C)),
            # cross-attention (fused K/V over features)
            _const_spec((C, C)), _const_spec((1, C)),
            _const_spec((C, 2 * C)), _const_spec((1, 2 * C)),
            _const_spec((n_heads, hd, C)), _const_spec((1, C)),
            _const_spec((1, C)), _const_spec((1, C)),
            # feed-forward
            _const_spec((C, Fdim)), _const_spec((1, Fdim)),
            _const_spec((Fdim, C)), _const_spec((1, C)),
            _const_spec((1, C)), _const_spec((1, C)),
        ],
        out_specs=pl.BlockSpec((1, Tt, C), lambda b: (b, 0, 0)),
        compiler_params=pltpu.CompilerParams(
            dimension_semantics=("parallel",),
            vmem_limit_bytes=_VMEM_LIMIT_BYTES),
    )(y, features, src_key_mask3, targ_key_mask3,
      sa["wqkv"], sa["bqkv"], sa["wp3"], sa["bp"],
      blk["ln1"]["g"], blk["ln1"]["b"],
      ca["wq"], ca["bq"], ca["wkv"], ca["bkv"], ca["wp3"], ca["bp"],
      blk["ln2"]["g"], blk["ln2"]["b"],
      ffn["w1"], ffn["b1"], ffn["w2"], ffn["b2"],
      blk["ln3"]["g"], blk["ln3"]["b"])


def generator_linear(x2d, w, b, *, tile_m=512, tile_n=512):
    """Generator projection, tiled over rows and vocab columns (lane-dense output)."""
    M, Cin = x2d.shape
    Cout = w.shape[1]
    tm = min(tile_m, M)
    tn = min(tile_n, Cout)
    return pl.pallas_call(
        _linear_kernel,
        out_shape=jax.ShapeDtypeStruct((M, Cout), x2d.dtype),
        grid=(pl.cdiv(M, tm), pl.cdiv(Cout, tn)),
        in_specs=[
            pl.BlockSpec((tm, Cin), lambda i, j: (i, 0)),
            pl.BlockSpec((Cin, tn), lambda i, j: (0, j)),
            pl.BlockSpec((1, tn), lambda i, j: (0, j)),
        ],
        out_specs=pl.BlockSpec((tm, tn), lambda i, j: (i, j)),
        compiler_params=pltpu.CompilerParams(
            dimension_semantics=("parallel", "parallel"),
            vmem_limit_bytes=_VMEM_LIMIT_BYTES),
    )(x2d, w, b)


# --------------------------------- parameters ---------------------------------

def _linear_init(key, fan_in, w_shape, b_shape):
    kw, kb = jax.random.split(key)
    bound = 1.0 / math.sqrt(fan_in)
    w = jax.random.uniform(kw, w_shape, jnp.float32, -bound, bound)
    b = jax.random.uniform(kb, b_shape, jnp.float32, -bound, bound)
    return w, b


def _init_ln(C):
    return {"g": jnp.ones((1, C), jnp.float32), "b": jnp.zeros((1, C), jnp.float32)}


def _init_attn(key, C, n_heads, fused_qkv):
    """MultiHeadAttention params, pre-packed for the kernels:
       * 1/sqrt(head_size) folded into the Q weight/bias (exact weight transform)
       * K/V (and Q for self-attn) fused into one projection matrix
       * output projection stored head-major as (H, hd, C)."""
    hd = C // n_heads
    scale = 1.0 / math.sqrt(hd)
    kq, kk, kv, kp = jax.random.split(key, 4)
    wq, bq = _linear_init(kq, C, (C, C), (C,))
    wk, bk = _linear_init(kk, C, (C, C), (C,))
    wv, bv = _linear_init(kv, C, (C, C), (C,))
    wp, bp = _linear_init(kp, C, (C, C), (C,))
    wp3 = wp.reshape(n_heads, hd, C)
    if fused_qkv:
        return {"wqkv": jnp.concatenate([wq * scale, wk, wv], axis=1),
                "bqkv": jnp.concatenate([bq * scale, bk, bv]).reshape(1, -1),
                "wp3": wp3, "bp": bp.reshape(1, -1)}
    return {"wq": wq * scale, "bq": (bq * scale).reshape(1, -1),
            "wkv": jnp.concatenate([wk, wv], axis=1),
            "bkv": jnp.concatenate([bk, bv]).reshape(1, -1),
            "wp3": wp3, "bp": bp.reshape(1, -1)}


def _init_ffn(key, C, ff):
    k1, k2 = jax.random.split(key)
    w1, b1 = _linear_init(k1, C, (C, ff * C), (ff * C,))
    w2, b2 = _linear_init(k2, ff * C, (ff * C, C), (C,))
    return {"w1": w1, "b1": b1.reshape(1, -1), "w2": w2, "b2": b2.reshape(1, -1)}


def init_params(key, *, n_embed, n_heads, n_blocks, ff_expansion_factor,
                context_size, input_vocab_size, output_vocab_size, pad_idx):
    C = n_embed
    keys = iter(jax.random.split(key, 5 + 2 * n_blocks))

    src_emb = jax.random.normal(next(keys), (input_vocab_size, C), jnp.float32)
    src_emb = src_emb.at[pad_idx].set(0.0)
    targ_emb = jax.random.normal(next(keys), (output_vocab_size, C), jnp.float32)
    targ_emb = targ_emb.at[pad_idx].set(0.0)
    src_pos = jax.random.normal(next(keys), (context_size, C), jnp.float32)
    targ_pos = jax.random.normal(next(keys), (context_size, C), jnp.float32)

    encoders = []
    for _ in range(n_blocks):
        ka, kf = jax.random.split(next(keys))
        encoders.append({
            "attn": _init_attn(ka, C, n_heads, fused_qkv=True), "ln1": _init_ln(C),
            "ffn": _init_ffn(kf, C, ff_expansion_factor), "ln2": _init_ln(C),
        })

    decoders = []
    for _ in range(n_blocks):
        ka, kc, kf = jax.random.split(next(keys), 3)
        decoders.append({
            "self_attn": _init_attn(ka, C, n_heads, fused_qkv=True), "ln1": _init_ln(C),
            "cross_attn": _init_attn(kc, C, n_heads, fused_qkv=False), "ln2": _init_ln(C),
            "ffn": _init_ffn(kf, C, ff_expansion_factor), "ln3": _init_ln(C),
        })

    wout, bout = _linear_init(next(keys), C, (C, output_vocab_size),
                              (output_vocab_size,))
    return {"src_emb": src_emb, "targ_emb": targ_emb,
            "src_pos": src_pos, "targ_pos": targ_pos,
            "encoders": encoders, "decoders": decoders,
            "out": {"w": wout, "b": bout.reshape(1, -1)}}


# ------------------------------- full forward ---------------------------------

@functools.partial(jax.jit, static_argnames=("n_heads",))
def transformer_forward(params, src, targ, src_key_mask, targ_key_mask, *, n_heads):
    """src/targ: (B, T) int32 tokens; *_key_mask: (B, T) int32, 1 = valid key.
    The decoder causal mask is generated inside the kernel."""
    C = params["src_emb"].shape[-1]
    scale = math.sqrt(C)

    B, Ts = src.shape
    Tt = targ.shape[1]
    sm = src_key_mask.astype(jnp.int32).reshape(B, 1, Ts)
    tm = targ_key_mask.astype(jnp.int32).reshape(B, 1, Tt)

    # ---- encode ----
    # TODO(synk): embedding gather + positional add stay in XLA (jnp.take); a
    # Pallas scalar-prefetch gather kernel could subsume them.
    x = jnp.take(params["src_emb"], src, axis=0) * scale
    x = x + params["src_pos"][:Ts][None]
    for blk in params["encoders"]:
        x = encoder_layer(blk, x, sm, n_heads)

    # ---- decode ----
    y = jnp.take(params["targ_emb"], targ, axis=0) * scale
    y = y + params["targ_pos"][:Tt][None]
    for blk in params["decoders"]:
        y = decoder_layer(blk, y, x, sm, tm, n_heads)

    logits = generator_linear(y.reshape(B * Tt, C),
                              params["out"]["w"], params["out"]["b"])
    return logits.reshape(B, Tt, -1)


# ------------------------------------ main -------------------------------------

if __name__ == "__main__":
    n_heads = 4
    n_embed = 32
    n_blocks = 2
    ff_expansion_factor = 4
    context_size = 16
    input_vocab_size = 97
    output_vocab_size = 128   # lane-dense generator output
    pad_idx = 0
    B, Ts, Tt = 2, 8, 8

    key = jax.random.PRNGKey(0)
    k_params, k_src, k_targ = jax.random.split(key, 3)

    params = init_params(
        k_params, n_embed=n_embed, n_heads=n_heads, n_blocks=n_blocks,
        ff_expansion_factor=ff_expansion_factor, context_size=context_size,
        input_vocab_size=input_vocab_size, output_vocab_size=output_vocab_size,
        pad_idx=pad_idx)

    src = jax.random.randint(k_src, (B, Ts), 1, input_vocab_size, dtype=jnp.int32)
    targ = jax.random.randint(k_targ, (B, Tt), 1, output_vocab_size, dtype=jnp.int32)
    src = src.at[1, -2:].set(pad_idx)                 # pad the tail of batch 1

    src_key_mask = (src != pad_idx).astype(jnp.int32)   # (B, Ts) padding mask
    targ_key_mask = jnp.ones((B, Tt), jnp.int32)        # causal handled in-kernel

    logits = transformer_forward(params, src, targ, src_key_mask, targ_key_mask,
                                 n_heads=n_heads)
    jax.block_until_ready(logits)
    assert logits.shape == (B, Tt, output_vocab_size)
    print("KERNEL_OK")
</pallas_src>

<mosaic_0001>
module attributes {stable_mosaic.version = 11 : i64} {
  func.func @_linear_kernel(%arg0: i32, %arg1: i32, %arg2: memref<16x32xf32, #tpu.memory_space<vmem>>, %arg3: memref<32x128xf32, #tpu.memory_space<vmem>>, %arg4: memref<1x128xf32, #tpu.memory_space<vmem>>, %arg5: memref<16x128xf32, #tpu.memory_space<vmem>>) attributes {dimension_semantics = [#tpu.dimension_semantics<parallel>, #tpu.dimension_semantics<parallel>], iteration_bounds = array<i64: 1, 1>, scalar_prefetch = 0 : i64, scratch_operands = 0 : i64, tpu.core_type = #tpu.core_type<tc>, window_params = [{transform_indices = @transform_0, window_bounds = array<i64: 16, 32>}, {transform_indices = @transform_1, window_bounds = array<i64: 32, 128>}, {transform_indices = @transform_2, window_bounds = array<i64: 1, 128>}, {transform_indices = @transform_3, window_bounds = array<i64: 16, 128>}]} {
    %c0 = arith.constant 0 : index
    %c0_0 = arith.constant 0 : index
    %0 = vector.load %arg2[%c0, %c0_0] : memref<16x32xf32, #tpu.memory_space<vmem>>, vector<16x32xf32>
    %c0_1 = arith.constant 0 : index
    %c0_2 = arith.constant 0 : index
    %1 = vector.load %arg3[%c0_1, %c0_2] : memref<32x128xf32, #tpu.memory_space<vmem>>, vector<32x128xf32>
    %cst = arith.constant dense<0.000000e+00> : vector<16x128xf32>
    %2 = tpu.matmul %0, %1, %cst {dimension_numbers = #tpu.dot_dimension_numbers<[1], [0], [0], [1], [0, 0, 1, 1], [], []>} : vector<16x32xf32>, vector<32x128xf32>, vector<16x128xf32> -> vector<16x128xf32>
    %c0_3 = arith.constant 0 : index
    %c0_4 = arith.constant 0 : index
    %3 = vector.load %arg4[%c0_3, %c0_4] : memref<1x128xf32, #tpu.memory_space<vmem>>, vector<1x128xf32>
    %4 = vector.broadcast %3 : vector<1x128xf32> to vector<16x128xf32>
    %5 = arith.addf %2, %4 : vector<16x128xf32>
    %c0_5 = arith.constant 0 : index
    %c0_6 = arith.constant 0 : index
    %6 = vector.load %arg5[%c0_5, %c0_6] : memref<16x128xf32, #tpu.memory_space<vmem>>, vector<16x128xf32>
    tpu.vector_store %arg5[%c0_5, %c0_6], %5 {strides = array<i32>} : memref<16x128xf32, #tpu.memory_space<vmem>>, vector<16x128xf32>,
    return
  }
  func.func @transform_0(%arg0: i32, %arg1: i32) -> (i32, i32) {
    %c0_i32 = arith.constant 0 : i32
    %c0_i32_0 = arith.constant 0 : i32
    return %arg0, %c0_i32 : i32, i32
  }
  func.func @transform_1(%arg0: i32, %arg1: i32) -> (i32, i32) {
    %c0_i32 = arith.constant 0 : i32
    %c0_i32_0 = arith.constant 0 : i32
    return %c0_i32, %arg1 : i32, i32
  }
  func.func @transform_2(%arg0: i32, %arg1: i32) -> (i32, i32) {
    %c0_i32 = arith.constant 0 : i32
    %c0_i32_0 = arith.constant 0 : i32
    return %c0_i32, %arg1 : i32, i32
  }
  func.func @transform_3(%arg0: i32, %arg1: i32) -> (i32, i32) {
    %c0_i32 = arith.constant 0 : i32
    return %arg0, %arg1 : i32, i32
  }
}

module attributes {stable_mosaic.version = 11 : i64} {
  func.func @_encoder_layer_kernel(%arg0: i32, %arg1: memref<1x8x32xf32, #tpu.memory_space<vmem>>, %arg2: memref<1x1x8xi32, #tpu.memory_space<vmem>>, %arg3: memref<32x96xf32, #tpu.memory_space<vmem>>, %arg4: memref<1x96xf32, #tpu.memory_space<vmem>>, %arg5: memref<4x8x32xf32, #tpu.memory_space<vmem>>, %arg6: memref<1x32xf32, #tpu.memory_space<vmem>>, %arg7: memref<1x32xf32, #tpu.memory_space<vmem>>, %arg8: memref<1x32xf32, #tpu.memory_space<vmem>>, %arg9: memref<32x128xf32, #tpu.memory_space<vmem>>, %arg10: memref<1x128xf32, #tpu.memory_space<vmem>>, %arg11: memref<128x32xf32, #tpu.memory_space<vmem>>, %arg12: memref<1x32xf32, #tpu.memory_space<vmem>>, %arg13: memref<1x32xf32, #tpu.memory_space<vmem>>, %arg14: memref<1x32xf32, #tpu.memory_space<vmem>>, %arg15: memref<1x8x32xf32, #tpu.memory_space<vmem>>) attributes {dimension_semantics = [#tpu.dimension_semantics<parallel>], iteration_bounds = array<i64: 2>, scalar_prefetch = 0 : i64, scratch_operands = 0 : i64, tpu.core_type = #tpu.core_type<tc>, window_params = [{transform_indices = @transform_0, window_bounds = array<i64: 1, 8, 32>}, {transform_indices = @transform_1, window_bounds = array<i64: 1, 1, 8>}, {pipeline_mode = #tpu.pipeline_mode<synchronous>, transform_indices = @transform_2, window_bounds = array<i64: 32, 96>}, {pipeline_mode = #tpu.pipeline_mode<synchronous>, transform_indices = @transform_3, window_bounds = array<i64: 1, 96>}, {pipeline_mode = #tpu.pipeline_mode<synchronous>, transform_indices = @transform_4, window_bounds = array<i64: 4, 8, 32>}, {pipeline_mode = #tpu.pipeline_mode<synchronous>, transform_indices = @transform_5, window_bounds = array<i64: 1, 32>}, {pipeline_mode = #tpu.pipeline_mode<synchronous>, transform_indices = @transform_6, window_bounds = array<i64: 1, 32>}, {pipeline_mode = #tpu.pipeline_mode<synchronous>, transform_indices = @transform_7, window_bounds = array<i64: 1, 32>}, {pipeline_mode = #tpu.pipeline_mode<synchronous>, transform_indices = @transform_8, window_bounds = array<i64: 32, 128>}, {pipeline_mode = #tpu.pipeline_mode<synchronous>, transform_indices = @transform_9, window_bounds = array<i64: 1, 128>}, {pipeline_mode = #tpu.pipeline_mode<synchronous>, transform_indices = @transform_10, window_bounds = array<i64: 128, 32>}, {pipeline_mode = #tpu.pipeline_mode<synchronous>, transform_indices = @transform_11, window_bounds = array<i64: 1, 32>}, {pipeline_mode = #tpu.pipeline_mode<synchronous>, transform_indices = @transform_12, window_bounds = array<i64: 1, 32>}, {pipeline_mode = #tpu.pipeline_mode<synchronous>, transform_indices = @transform_13, window_bounds = array<i64: 1, 32>}, {transform_indices = @transform_14, window_bounds = array<i64: 1, 8, 32>}]} {
    %c0 = arith.constant 0 : index
    %c0_0 = arith.constant 0 : index
    %c0_1 = arith.constant 0 : index
    %0 = vector.load %arg1[%c0, %c0_0, %c0_1] : memref<1x8x32xf32, #tpu.memory_space<vmem>>, vector<1x8x32xf32>
    %1 = vector.shape_cast %0 : vector<1x8x32xf32> to vector<8x32xf32>
    %c0_2 = arith.constant 0 : index
    %c0_3 = arith.constant 0 : index
    %c0_4 = arith.constant 0 : index
    %2 = vector.load %arg2[%c0_2, %c0_3, %c0_4] : memref<1x1x8xi32, #tpu.memory_space<vmem>>, vector<1x1x8xi32>
    %3 = vector.shape_cast %2 : vector<1x1x8xi32> to vector<1x8xi32>
    %c0_i32 = arith.constant 0 : i32
    %4 = vector.broadcast %c0_i32 : i32 to vector<1x8xi32>
    %5 = arith.cmpi eq, %3, %4 : vector<1x8xi32>
    %c0_5 = arith.constant 0 : index
    %c0_6 = arith.constant 0 : index
    %6 = vector.load %arg3[%c0_5, %c0_6] : memref<32x96xf32, #tpu.memory_space<vmem>>, vector<32x96xf32>
    %cst = arith.constant dense<0.000000e+00> : vector<8x96xf32>
    %7 = tpu.matmul %1, %6, %cst {dimension_numbers = #tpu.dot_dimension_numbers<[1], [0], [0], [1], [0, 0, 1, 1], [], []>} : vector<8x32xf32>, vector<32x96xf32>, vector<8x96xf32> -> vector<8x96xf32>
    %c0_7 = arith.constant 0 : index
    %c0_8 = arith.constant 0 : index
    %8 = vector.load %arg4[%c0_7, %c0_8] : memref<1x96xf32, #tpu.memory_space<vmem>>, vector<1x96xf32>
    %9 = vector.broadcast %8 : vector<1x96xf32> to vector<8x96xf32>
    %10 = arith.addf %7, %9 : vector<8x96xf32>
    %11 = vector.extract_strided_slice %10 {offsets = [0, 0], sizes = [8, 32], strides = [1, 1]} : vector<8x96xf32> to vector<8x32xf32>
    %12 = vector.extract_strided_slice %10 {offsets = [0, 32], sizes = [8, 32], strides = [1, 1]} : vector<8x96xf32> to vector<8x32xf32>
    %13 = vector.extract_strided_slice %10 {offsets = [0, 64], sizes = [8, 32], strides = [1, 1]} : vector<8x96xf32> to vector<8x32xf32>
    %c0_9 = arith.constant 0 : index
    %c0_10 = arith.constant 0 : index
    %c0_11 = arith.constant 0 : index
    %14 = vector.load %arg5[%c0_9, %c0_10, %c0_11] : memref<4x8x32xf32, #tpu.memory_space<vmem>>, vector<4x8x32xf32>
    %c0_12 = arith.constant 0 : index
    %c0_13 = arith.constant 0 : index
    %15 = vector.load %arg6[%c0_12, %c0_13] : memref<1x32xf32, #tpu.memory_space<vmem>>, vector<1x32xf32>
    %16 = vector.extract_strided_slice %11 {offsets = [0, 0], sizes = [8, 8], strides = [1, 1]} : vector<8x32xf32> to vector<8x8xf32>
    %17 = vector.extract_strided_slice %11 {offsets = [0, 8], sizes = [8, 8], strides = [1, 1]} : vector<8x32xf32> to vector<8x8xf32>
    %18 = vector.extract_strided_slice %11 {offsets = [0, 16], sizes = [8, 8], strides = [1, 1]} : vector<8x32xf32> to vector<8x8xf32>
    %19 = vector.extract_strided_slice %11 {offsets = [0, 24], sizes = [8, 8], strides = [1, 1]} : vector<8x32xf32> to vector<8x8xf32>
    %20 = vector.shape_cast %16 : vector<8x8xf32> to vector<1x8x8xf32>
    %21 = vector.shape_cast %17 : vector<8x8xf32> to vector<1x8x8xf32>
    %22 = vector.shape_cast %18 : vector<8x8xf32> to vector<1x8x8xf32>
    %23 = vector.shape_cast %19 : vector<8x8xf32> to vector<1x8x8xf32>
    %24 = tpu.concatenate %20, %21, %22, %23 in 0 : vector<1x8x8xf32>, vector<1x8x8xf32>, vector<1x8x8xf32>, vector<1x8x8xf32> -> vector<4x8x8xf32>
    %25 = vector.extract_strided_slice %12 {offsets = [0, 0], sizes = [8, 8], strides = [1, 1]} : vector<8x32xf32> to vector<8x8xf32>
    %26 = vector.extract_strided_slice %12 {offsets = [0, 8], sizes = [8, 8], strides = [1, 1]} : vector<8x32xf32> to vector<8x8xf32>
    %27 = vector.extract_strided_slice %12 {offsets = [0, 16], sizes = [8, 8], strides = [1, 1]} : vector<8x32xf32> to vector<8x8xf32>
    %28 = vector.extract_strided_slice %12 {offsets = [0, 24], sizes = [8, 8], strides = [1, 1]} : vector<8x32xf32> to vector<8x8xf32>
    %29 = vector.shape_cast %25 : vector<8x8xf32> to vector<1x8x8xf32>
    %30 = vector.shape_cast %26 : vector<8x8xf32> to vector<1x8x8xf32>
    %31 = vector.shape_cast %27 : vector<8x8xf32> to vector<1x8x8xf32>
    %32 = vector.shape_cast %28 : vector<8x8xf32> to vector<1x8x8xf32>
    %33 = tpu.concatenate %29, %30, %31, %32 in 0 : vector<1x8x8xf32>, vector<1x8x8xf32>, vector<1x8x8xf32>, vector<1x8x8xf32> -> vector<4x8x8xf32>
    %34 = vector.extract_strided_slice %13 {offsets = [0, 0], sizes = [8, 8], strides = [1, 1]} : vector<8x32xf32> to vector<8x8xf32>
    %35 = vector.extract_strided_slice %13 {offsets = [0, 8], sizes = [8, 8], strides = [1, 1]} : vector<8x32xf32> to vector<8x8xf32>
    %36 = vector.extract_strided_slice %13 {offsets = [0, 16], sizes = [8, 8], strides = [1, 1]} : vector<8x32xf32> to vector<8x8xf32>
    %37 = vector.extract_strided_slice %13 {offsets = [0, 24], sizes = [8, 8], strides = [1, 1]} : vector<8x32xf32> to vector<8x8xf32>
    %38 = vector.shape_cast %34 : vector<8x8xf32> to vector<1x8x8xf32>
    %39 = vector.shape_cast %35 : vector<8x8xf32> to vector<1x8x8xf32>
    %40 = vector.shape_cast %36 : vector<8x8xf32> to vector<1x8x8xf32>
    %41 = vector.shape_cast %37 : vector<8x8xf32> to vector<1x8x8xf32>
    %42 = tpu.concatenate %38, %39, %40, %41 in 0 : vector<1x8x8xf32>, vector<1x8x8xf32>, vector<1x8x8xf32>, vector<1x8x8xf32> -> vector<4x8x8xf32>
    "tpu.trace_start"() <{level = 10 : i32, message = "hqd,hkd->hqk"}> : () -> ()
    %cst_14 = arith.constant dense<0.000000e+00> : vector<4x8x8xf32>
    %43 = tpu.matmul %24, %33, %cst_14 {dimension_numbers = #tpu.dot_dimension_numbers<[2], [2], [1], [1], [0, 0, 0, 1, 1, 1], [0], [0]>} : vector<4x8x8xf32>, vector<4x8x8xf32>, vector<4x8x8xf32> -> vector<4x8x8xf32>
    "tpu.trace_stop"() : () -> ()
    %44 = vector.shape_cast %5 : vector<1x8xi1> to vector<1x1x8xi1>
    %cst_15 = arith.constant -1.000000e+10 : f32
    %45 = vector.shape_cast %44 : vector<1x1x8xi1> to vector<1x1x8xi1>
    %46 = vector.broadcast %45 : vector<1x1x8xi1> to vector<4x8x8xi1>
    %47 = vector.broadcast %cst_15 : f32 to vector<4x8x8xf32>
    %48 = arith.select %46, %47, %43 : vector<4x8x8xi1>, vector<4x8x8xf32>
    %cst_16 = arith.constant dense<0xFF800000> : vector<4x8xf32>
    %49 = vector.multi_reduction <maximumf>, %48, %cst_16 [2] : vector<4x8x8xf32> to vector<4x8xf32>
    %50 = vector.shape_cast %49 : vector<4x8xf32> to vector<4x8x1xf32>
    %51 = vector.broadcast %50 : vector<4x8x1xf32> to vector<4x8x8xf32>
    %52 = arith.subf %48, %51 : vector<4x8x8xf32>
    %53 = math.exp %52 : vector<4x8x8xf32>
    %cst_17 = arith.constant dense<0.000000e+00> : vector<4x8xf32>
    %54 = vector.multi_reduction <add>, %53, %cst_17 [2] : vector<4x8x8xf32> to vector<4x8xf32>
    %55 = vector.shape_cast %54 : vector<4x8xf32> to vector<4x8x1xf32>
    %56 = tpu.reciprocal %55 {approx = true} : vector<4x8x1xf32> -> vector<4x8x1xf32>
    %57 = vector.broadcast %56 : vector<4x8x1xf32> to vector<4x8x8xf32>
    %58 = arith.mulf %53, %57 : vector<4x8x8xf32>
    "tpu.trace_start"() <{level = 10 : i32, message = "hqk,hkd->hqd"}> : () -> ()
    %cst_18 = arith.constant dense<0.000000e+00> : vector<4x8x8xf32>
    %59 = tpu.matmul %58, %42, %cst_18 {dimension_numbers = #tpu.dot_dimension_numbers<[2], [1], [1], [2], [0, 0, 0, 1, 1, 2], [0], [0]>} : vector<4x8x8xf32>, vector<4x8x8xf32>, vector<4x8x8xf32> -> vector<4x8x8xf32>
    "tpu.trace_stop"() : () -> ()
    "tpu.trace_start"() <{level = 10 : i32, message = "hqd,hdc->hqc"}> : () -> ()
    %cst_19 = arith.constant dense<0.000000e+00> : vector<4x8x32xf32>
    %60 = tpu.matmul %59, %14, %cst_19 {dimension_numbers = #tpu.dot_dimension_numbers<[2], [1], [1], [2], [0, 0, 0, 1, 1, 2], [0], [0]>} : vector<4x8x8xf32>, vector<4x8x32xf32>, vector<4x8x32xf32> -> vector<4x8x32xf32>
    "tpu.trace_stop"() : () -> ()
    %cst_20 = arith.constant dense<0.000000e+00> : vector<8x32xf32>
    %61 = vector.multi_reduction <add>, %60, %cst_20 [0] : vector<4x8x32xf32> to vector<8x32xf32>
    %62 = vector.broadcast %15 : vector<1x32xf32> to vector<8x32xf32>
    %63 = arith.addf %61, %62 : vector<8x32xf32>
    %64 = arith.addf %63, %1 : vector<8x32xf32>
    %c0_21 = arith.constant 0 : index
    %c0_22 = arith.constant 0 : index
    %65 = vector.load %arg7[%c0_21, %c0_22] : memref<1x32xf32, #tpu.memory_space<vmem>>, vector<1x32xf32>
    %c0_23 = arith.constant 0 : index
    %c0_24 = arith.constant 0 : index
    %66 = vector.load %arg8[%c0_23, %c0_24] : memref<1x32xf32, #tpu.memory_space<vmem>>, vector<1x32xf32>
    %cst_25 = arith.constant dense<0.000000e+00> : vector<8xf32>
    %67 = vector.multi_reduction <add>, %64, %cst_25 [1] : vector<8x32xf32> to vector<8xf32>
    %68 = vector.shape_cast %67 : vector<8xf32> to vector<8x1xf32>
    %cst_26 = arith.constant 3.200000e+01 : f32
    %69 = vector.broadcast %cst_26 : f32 to vector<8x1xf32>
    %70 = arith.divf %68, %69 : vector<8x1xf32>
    %71 = arith.mulf %64, %64 : vector<8x32xf32>
    %cst_27 = arith.constant dense<0.000000e+00> : vector<8xf32>
    %72 = vector.multi_reduction <add>, %71, %cst_27 [1] : vector<8x32xf32> to vector<8xf32>
    %73 = vector.shape_cast %72 : vector<8xf32> to vector<8x1xf32>
    %cst_28 = arith.constant 3.200000e+01 : f32
    %74 = vector.broadcast %cst_28 : f32 to vector<8x1xf32>
    %75 = arith.divf %73, %74 : vector<8x1xf32>
    %76 = arith.mulf %70, %70 : vector<8x1xf32>
    %77 = arith.subf %75, %76 : vector<8x1xf32>
    %cst_29 = arith.constant 9.99999974E-6 : f32
    %78 = vector.broadcast %cst_29 : f32 to vector<8x1xf32>
    %79 = arith.addf %77, %78 : vector<8x1xf32>
    %80 = math.rsqrt %79 : vector<8x1xf32>
    %81 = vector.broadcast %70 : vector<8x1xf32> to vector<8x32xf32>
    %82 = arith.subf %64, %81 : vector<8x32xf32>
    %83 = vector.broadcast %80 : vector<8x1xf32> to vector<8x32xf32>
    %84 = arith.mulf %82, %83 : vector<8x32xf32>
    %85 = vector.broadcast %65 : vector<1x32xf32> to vector<8x32xf32>
    %86 = arith.mulf %84, %85 : vector<8x32xf32>
    %87 = vector.broadcast %66 : vector<1x32xf32> to vector<8x32xf32>
    %88 = arith.addf %86, %87 : vector<8x32xf32>
    %c0_30 = arith.constant 0 : index
    %c0_31 = arith.constant 0 : index
    %89 = vector.load %arg9[%c0_30, %c0_31] : memref<32x128xf32, #tpu.memory_space<vmem>>, vector<32x128xf32>
    %cst_32 = arith.constant dense<0.000000e+00> : vector<8x128xf32>
    %90 = tpu.matmul %88, %89, %cst_32 {dimension_numbers = #tpu.dot_dimension_numbers<[1], [0], [0], [1], [0, 0, 1, 1], [], []>} : vector<8x32xf32>, vector<32x128xf32>, vector<8x128xf32> -> vector<8x128xf32>
    %c0_33 = arith.constant 0 : index
    %c0_34 = arith.constant 0 : index
    %91 = vector.load %arg10[%c0_33, %c0_34] : memref<1x128xf32, #tpu.memory_space<vmem>>, vector<1x128xf32>
    %92 = vector.broadcast %91 : vector<1x128xf32> to vector<8x128xf32>
    %93 = arith.addf %90, %92 : vector<8x128xf32>
    %cst_35 = arith.constant 0.000000e+00 : f32
    %94 = vector.broadcast %cst_35 : f32 to vector<8x128xf32>
    %95 = arith.maximumf %93, %94 : vector<8x128xf32>
    %c0_36 = arith.constant 0 : index
    %c0_37 = arith.constant 0 : index
    %96 = vector.load %arg11[%c0_36, %c0_37] : memref<128x32xf32, #tpu.memory_space<vmem>>, vector<128x32xf32>
    %cst_38 = arith.constant dense<0.000000e+00> : vector<8x32xf32>
    %97 = tpu.matmul %95, %96, %cst_38 {dimension_numbers = #tpu.dot_dimension_numbers<[1], [0], [0], [1], [0, 0, 1, 1], [], []>} : vector<8x128xf32>, vector<128x32xf32>, vector<8x32xf32> -> vector<8x32xf32>
    %c0_39 = arith.constant 0 : index
    %c0_40 = arith.constant 0 : index
    %98 = vector.load %arg12[%c0_39, %c0_40] : memref<1x32xf32, #tpu.memory_space<vmem>>, vector<1x32xf32>
    %99 = vector.broadcast %98 : vector<1x32xf32> to vector<8x32xf32>
    %100 = arith.addf %97, %99 : vector<8x32xf32>
    %101 = arith.addf %100, %88 : vector<8x32xf32>
    %c0_41 = arith.constant 0 : index
    %c0_42 = arith.constant 0 : index
    %102 = vector.load %arg13[%c0_41, %c0_42] : memref<1x32xf32, #tpu.memory_space<vmem>>, vector<1x32xf32>
    %c0_43 = arith.constant 0 : index
    %c0_44 = arith.constant 0 : index
    %103 = vector.load %arg14[%c0_43, %c0_44] : memref<1x32xf32, #tpu.memory_space<vmem>>, vector<1x32xf32>
    %cst_45 = arith.constant dense<0.000000e+00> : vector<8xf32>
    %104 = vector.multi_reduction <add>, %101, %cst_45 [1] : vector<8x32xf32> to vector<8xf32>
    %105 = vector.shape_cast %104 : vector<8xf32> to vector<8x1xf32>
    %cst_46 = arith.constant 3.200000e+01 : f32
    %106 = vector.broadcast %cst_46 : f32 to vector<8x1xf32>
    %107 = arith.divf %105, %106 : vector<8x1xf32>
    %108 = arith.mulf %101, %101 : vector<8x32xf32>
    %cst_47 = arith.constant dense<0.000000e+00> : vector<8xf32>
    %109 = vector.multi_reduction <add>, %108, %cst_47 [1] : vector<8x32xf32> to vector<8xf32>
    %110 = vector.shape_cast %109 : vector<8xf32> to vector<8x1xf32>
    %cst_48 = arith.constant 3.200000e+01 : f32
    %111 = vector.broadcast %cst_48 : f32 to vector<8x1xf32>
    %112 = arith.divf %110, %111 : vector<8x1xf32>
    %113 = arith.mulf %107, %107 : vector<8x1xf32>
    %114 = arith.subf %112, %113 : vector<8x1xf32>
    %cst_49 = arith.constant 9.99999974E-6 : f32
    %115 = vector.broadcast %cst_49 : f32 to vector<8x1xf32>
    %116 = arith.addf %114, %115 : vector<8x1xf32>
    %117 = math.rsqrt %116 : vector<8x1xf32>
    %118 = vector.broadcast %107 : vector<8x1xf32> to vector<8x32xf32>
    %119 = arith.subf %101, %118 : vector<8x32xf32>
    %120 = vector.broadcast %117 : vector<8x1xf32> to vector<8x32xf32>
    %121 = arith.mulf %119, %120 : vector<8x32xf32>
    %122 = vector.broadcast %102 : vector<1x32xf32> to vector<8x32xf32>
    %123 = arith.mulf %121, %122 : vector<8x32xf32>
    %124 = vector.broadcast %103 : vector<1x32xf32> to vector<8x32xf32>
    %125 = arith.addf %123, %124 : vector<8x32xf32>
    %c0_50 = arith.constant 0 : index
    %c0_51 = arith.constant 0 : index
    %c0_52 = arith.constant 0 : index
    %126 = vector.load %arg15[%c0_50, %c0_51, %c0_52] : memref<1x8x32xf32, #tpu.memory_space<vmem>>, vector<1x8x32xf32>
    %127 = vector.shape_cast %126 : vector<1x8x32xf32> to vector<8x32xf32>
    %128 = vector.shape_cast %125 : vector<8x32xf32> to vector<1x8x32xf32>
    tpu.vector_store %arg15[%c0_50, %c0_51, %c0_52], %128 {strides = array<i32>} : memref<1x8x32xf32, #tpu.memory_space<vmem>>, vector<1x8x32xf32>,
    return
  }
  func.func @transform_0(%arg0: i32) -> (i32, i32, i32) {
    %c0_i32 = arith.constant 0 : i32
    %c0_i32_0 = arith.constant 0 : i32
    %c0_i32_1 = arith.constant 0 : i32
    return %arg0, %c0_i32, %c0_i32_0 : i32, i32, i32
  }
  func.func @transform_1(%arg0: i32) -> (i32, i32, i32) {
    %c0_i32 = arith.constant 0 : i32
    %c0_i32_0 = arith.constant 0 : i32
    %c0_i32_1 = arith.constant 0 : i32
    return %arg0, %c0_i32, %c0_i32_0 : i32, i32, i32
  }
  func.func @transform_2(%arg0: i32) -> (i32, i32) {
    %c0_i32 = arith.constant 0 : i32
    %c0_i32_0 = arith.constant 0 : i32
    %c0_i32_1 = arith.constant 0 : i32
    return %c0_i32, %c0_i32_0 : i32, i32
  }
  func.func @transform_3(%arg0: i32) -> (i32, i32) {
    %c0_i32 = arith.constant 0 : i32
    %c0_i32_0 = arith.constant 0 : i32
    %c0_i32_1 = arith.constant 0 : i32
    return %c0_i32, %c0_i32_0 : i32, i32
  }
  func.func @transform_4(%arg0: i32) -> (i32, i32, i32) {
    %c0_i32 = arith.constant 0 : i32
    %c0_i32_0 = arith.constant 0 : i32
    %c0_i32_1 = arith.constant 0 : i32
    %c0_i32_2 = arith.constant 0 : i32
    return %c0_i32, %c0_i32_0, %c0_i32_1 : i32, i32, i32
  }
  func.func @transform_5(%arg0: i32) -> (i32, i32) {
    %c0_i32 = arith.constant 0 : i32
    %c0_i32_0 = arith.constant 0 : i32
    %c0_i32_1 = arith.constant 0 : i32
    return %c0_i32, %c0_i32_0 : i32, i32
  }
  func.func @transform_6(%arg0: i32) -> (i32, i32) {
    %c0_i32 = arith.constant 0 : i32
    %c0_i32_0 = arith.constant 0 : i32
    %c0_i32_1 = arith.constant 0 : i32
    return %c0_i32, %c0_i32_0 : i32, i32
  }
  func.func @transform_7(%arg0: i32) -> (i32, i32) {
    %c0_i32 = arith.constant 0 : i32
    %c0_i32_0 = arith.constant 0 : i32
    %c0_i32_1 = arith.constant 0 : i32
    return %c0_i32, %c0_i32_0 : i32, i32
  }
  func.func @transform_8(%arg0: i32) -> (i32, i32) {
    %c0_i32 = arith.constant 0 : i32
    %c0_i32_0 = arith.constant 0 : i32
    %c0_i32_1 = arith.constant 0 : i32
    return %c0_i32, %c0_i32_0 : i32, i32
  }
  func.func @transform_9(%arg0: i32) -> (i32, i32) {
    %c0_i32 = arith.constant 0 : i32
    %c0_i32_0 = arith.constant 0 : i32
    %c0_i32_1 = arith.constant 0 : i32
    return %c0_i32, %c0_i32_0 : i32, i32
  }
  func.func @transform_10(%arg0: i32) -> (i32, i32) {
    %c0_i32 = arith.constant 0 : i32
    %c0_i32_0 = arith.constant 0 : i32
    %c0_i32_1 = arith.constant 0 : i32
    return %c0_i32, %c0_i32_0 : i32, i32
  }
  func.func @transform_11(%arg0: i32) -> (i32, i32) {
    %c0_i32 = arith.constant 0 : i32
    %c0_i32_0 = arith.constant 0 : i32
    %c0_i32_1 = arith.constant 0 : i32
    return %c0_i32, %c0_i32_0 : i32, i32
  }
  func.func @transform_12(%arg0: i32) -> (i32, i32) {
    %c0_i32 = arith.constant 0 : i32
    %c0_i32_0 = arith.constant 0 : i32
    %c0_i32_1 = arith.constant 0 : i32
    return %c0_i32, %c0_i32_0 : i32, i32
  }
  func.func @transform_13(%arg0: i32) -> (i32, i32) {
    %c0_i32 = arith.constant 0 : i32
    %c0_i32_0 = arith.constant 0 : i32
    %c0_i32_1 = arith.constant 0 : i32
    return %c0_i32, %c0_i32_0 : i32, i32
  }
  func.func @transform_14(%arg0: i32) -> (i32, i32, i32) {
    %c0_i32 = arith.constant 0 : i32
    %c0_i32_0 = arith.constant 0 : i32
    %c0_i32_1 = arith.constant 0 : i32
    return %arg0, %c0_i32, %c0_i32_0 : i32, i32, i32
  }
}

module attributes {stable_mosaic.version = 11 : i64} {
  func.func @_decoder_layer_kernel(%arg0: i32, %arg1: memref<1x8x32xf32, #tpu.memory_space<vmem>>, %arg2: memref<1x8x32xf32, #tpu.memory_space<vmem>>, %arg3: memref<1x1x8xi32, #tpu.memory_space<vmem>>, %arg4: memref<1x1x8xi32, #tpu.memory_space<vmem>>, %arg5: memref<32x96xf32, #tpu.memory_space<vmem>>, %arg6: memref<1x96xf32, #tpu.memory_space<vmem>>, %arg7: memref<4x8x32xf32, #tpu.memory_space<vmem>>, %arg8: memref<1x32xf32, #tpu.memory_space<vmem>>, %arg9: memref<1x32xf32, #tpu.memory_space<vmem>>, %arg10: memref<1x32xf32, #tpu.memory_space<vmem>>, %arg11: memref<32x32xf32, #tpu.memory_space<vmem>>, %arg12: memref<1x32xf32, #tpu.memory_space<vmem>>, %arg13: memref<32x64xf32, #tpu.memory_space<vmem>>, %arg14: memref<1x64xf32, #tpu.memory_space<vmem>>, %arg15: memref<4x8x32xf32, #tpu.memory_space<vmem>>, %arg16: memref<1x32xf32, #tpu.memory_space<vmem>>, %arg17: memref<1x32xf32, #tpu.memory_space<vmem>>, %arg18: memref<1x32xf32, #tpu.memory_space<vmem>>, %arg19: memref<32x128xf32, #tpu.memory_space<vmem>>, %arg20: memref<1x128xf32, #tpu.memory_space<vmem>>, %arg21: memref<128x32xf32, #tpu.memory_space<vmem>>, %arg22: memref<1x32xf32, #tpu.memory_space<vmem>>, %arg23: memref<1x32xf32, #tpu.memory_space<vmem>>, %arg24: memref<1x32xf32, #tpu.memory_space<vmem>>, %arg25: memref<1x8x32xf32, #tpu.memory_space<vmem>>) attributes {dimension_semantics = [#tpu.dimension_semantics<parallel>], iteration_bounds = array<i64: 2>, scalar_prefetch = 0 : i64, scratch_operands = 0 : i64, tpu.core_type = #tpu.core_type<tc>, window_params = [{transform_indices = @transform_0, window_bounds = array<i64: 1, 8, 32>}, {transform_indices = @transform_1, window_bounds = array<i64: 1, 8, 32>}, {transform_indices = @transform_2, window_bounds = array<i64: 1, 1, 8>}, {transform_indices = @transform_3, window_bounds = array<i64: 1, 1, 8>}, {pipeline_mode = #tpu.pipeline_mode<synchronous>, transform_indices = @transform_4, window_bounds = array<i64: 32, 96>}, {pipeline_mode = #tpu.pipeline_mode<synchronous>, transform_indices = @transform_5, window_bounds = array<i64: 1, 96>}, {pipeline_mode = #tpu.pipeline_mode<synchronous>, transform_indices = @transform_6, window_bounds = array<i64: 4, 8, 32>}, {pipeline_mode = #tpu.pipeline_mode<synchronous>, transform_indices = @transform_7, window_bounds = array<i64: 1, 32>}, {pipeline_mode = #tpu.pipeline_mode<synchronous>, transform_indices = @transform_8, window_bounds = array<i64: 1, 32>}, {pipeline_mode = #tpu.pipeline_mode<synchronous>, transform_indices = @transform_9, window_bounds = array<i64: 1, 32>}, {pipeline_mode = #tpu.pipeline_mode<synchronous>, transform_indices = @transform_10, window_bounds = array<i64: 32, 32>}, {pipeline_mode = #tpu.pipeline_mode<synchronous>, transform_indices = @transform_11, window_bounds = array<i64: 1, 32>}, {pipeline_mode = #tpu.pipeline_mode<synchronous>, transform_indices = @transform_12, window_bounds = array<i64: 32, 64>}, {pipeline_mode = #tpu.pipeline_mode<synchronous>, transform_indices = @transform_13, window_bounds = array<i64: 1, 64>}, {pipeline_mode = #tpu.pipeline_mode<synchronous>, transform_indices = @transform_14, window_bounds = array<i64: 4, 8, 32>}, {pipeline_mode = #tpu.pipeline_mode<synchronous>, transform_indices = @transform_15, window_bounds = array<i64: 1, 32>}, {pipeline_mode = #tpu.pipeline_mode<synchronous>, transform_indices = @transform_16, window_bounds = array<i64: 1, 32>}, {pipeline_mode = #tpu.pipeline_mode<synchronous>, transform_indices = @transform_17, window_bounds = array<i64: 1, 32>}, {pipeline_mode = #tpu.pipeline_mode<synchronous>, transform_indices = @transform_18, window_bounds = array<i64: 32, 128>}, {pipeline_mode = #tpu.pipeline_mode<synchronous>, transform_indices = @transform_19, window_bounds = array<i64: 1, 128>}, {pipeline_mode = #tpu.pipeline_mode<synchronous>, transform_indices = @transform_20, window_bounds = array<i64: 128, 32>}, {pipeline_mode = #tpu.pipeline_mode<synchronous>, transform_indices = @transform_21, window_bounds = array<i64: 1, 32>}, {pipeline_mode = #tpu.pipeline_mode<synchronous>, transform_indices = @transform_22, window_bounds = array<i64: 1, 32>}, {pipeline_mode = #tpu.pipeline_mode<synchronous>, transform_indices = @transform_23, window_bounds = array<i64: 1, 32>}, {transform_indices = @transform_24, window_bounds = array<i64: 1, 8, 32>}]} {
    %c0 = arith.constant 0 : index
    %c0_0 = arith.constant 0 : index
    %c0_1 = arith.constant 0 : index
    %0 = vector.load %arg1[%c0, %c0_0, %c0_1] : memref<1x8x32xf32, #tpu.memory_space<vmem>>, vector<1x8x32xf32>
    %1 = vector.shape_cast %0 : vector<1x8x32xf32> to vector<8x32xf32>
    %c0_2 = arith.constant 0 : index
    %c0_3 = arith.constant 0 : index
    %c0_4 = arith.constant 0 : index
    %2 = vector.load %arg2[%c0_2, %c0_3, %c0_4] : memref<1x8x32xf32, #tpu.memory_space<vmem>>, vector<1x8x32xf32>
    %3 = vector.shape_cast %2 : vector<1x8x32xf32> to vector<8x32xf32>
    %4 = tpu.iota {dimensions = array<i32: 0>} : vector<8x8xi32>
    %5 = tpu.iota {dimensions = array<i32: 1>} : vector<8x8xi32>
    %6 = arith.cmpi sgt, %5, %4 : vector<8x8xi32>
    %c0_5 = arith.constant 0 : index
    %c0_6 = arith.constant 0 : index
    %c0_7 = arith.constant 0 : index
    %7 = vector.load %arg4[%c0_5, %c0_6, %c0_7] : memref<1x1x8xi32, #tpu.memory_space<vmem>>, vector<1x1x8xi32>
    %8 = vector.shape_cast %7 : vector<1x1x8xi32> to vector<1x8xi32>
    %c0_i32 = arith.constant 0 : i32
    %9 = vector.broadcast %c0_i32 : i32 to vector<1x8xi32>
    %10 = arith.cmpi eq, %8, %9 : vector<1x8xi32>
    %11 = vector.broadcast %10 : vector<1x8xi1> to vector<8x8xi1>
    %12 = arith.ori %6, %11 : vector<8x8xi1>
    %c0_8 = arith.constant 0 : index
    %c0_9 = arith.constant 0 : index
    %c0_10 = arith.constant 0 : index
    %13 = vector.load %arg3[%c0_8, %c0_9, %c0_10] : memref<1x1x8xi32, #tpu.memory_space<vmem>>, vector<1x1x8xi32>
    %14 = vector.shape_cast %13 : vector<1x1x8xi32> to vector<1x8xi32>
    %c0_i32_11 = arith.constant 0 : i32
    %15 = vector.broadcast %c0_i32_11 : i32 to vector<1x8xi32>
    %16 = arith.cmpi eq, %14, %15 : vector<1x8xi32>
    %c0_12 = arith.constant 0 : index
    %c0_13 = arith.constant 0 : index
    %17 = vector.load %arg5[%c0_12, %c0_13] : memref<32x96xf32, #tpu.memory_space<vmem>>, vector<32x96xf32>
    %cst = arith.constant dense<0.000000e+00> : vector<8x96xf32>
    %18 = tpu.matmul %1, %17, %cst {dimension_numbers = #tpu.dot_dimension_numbers<[1], [0], [0], [1], [0, 0, 1, 1], [], []>} : vector<8x32xf32>, vector<32x96xf32>, vector<8x96xf32> -> vector<8x96xf32>
    %c0_14 = arith.constant 0 : index
    %c0_15 = arith.constant 0 : index
    %19 = vector.load %arg6[%c0_14, %c0_15] : memref<1x96xf32, #tpu.memory_space<vmem>>, vector<1x96xf32>
    %20 = vector.broadcast %19 : vector<1x96xf32> to vector<8x96xf32>
    %21 = arith.addf %18, %20 : vector<8x96xf32>
    %22 = vector.extract_strided_slice %21 {offsets = [0, 0], sizes = [8, 32], strides = [1, 1]} : vector<8x96xf32> to vector<8x32xf32>
    %23 = vector.extract_strided_slice %21 {offsets = [0, 32], sizes = [8, 32], strides = [1, 1]} : vector<8x96xf32> to vector<8x32xf32>
    %24 = vector.extract_strided_slice %21 {offsets = [0, 64], sizes = [8, 32], strides = [1, 1]} : vector<8x96xf32> to vector<8x32xf32>
    %c0_16 = arith.constant 0 : index
    %c0_17 = arith.constant 0 : index
    %c0_18 = arith.constant 0 : index
    %25 = vector.load %arg7[%c0_16, %c0_17, %c0_18] : memref<4x8x32xf32, #tpu.memory_space<vmem>>, vector<4x8x32xf32>
    %c0_19 = arith.constant 0 : index
    %c0_20 = arith.constant 0 : index
    %26 = vector.load %arg8[%c0_19, %c0_20] : memref<1x32xf32, #tpu.memory_space<vmem>>, vector<1x32xf32>
    %27 = vector.extract_strided_slice %22 {offsets = [0, 0], sizes = [8, 8], strides = [1, 1]} : vector<8x32xf32> to vector<8x8xf32>
    %28 = vector.extract_strided_slice %22 {offsets = [0, 8], sizes = [8, 8], strides = [1, 1]} : vector<8x32xf32> to vector<8x8xf32>
    %29 = vector.extract_strided_slice %22 {offsets = [0, 16], sizes = [8, 8], strides = [1, 1]} : vector<8x32xf32> to vector<8x8xf32>
    %30 = vector.extract_strided_slice %22 {offsets = [0, 24], sizes = [8, 8], strides = [1, 1]} : vector<8x32xf32> to vector<8x8xf32>
    %31 = vector.shape_cast %27 : vector<8x8xf32> to vector<1x8x8xf32>
    %32 = vector.shape_cast %28 : vector<8x8xf32> to vector<1x8x8xf32>
    %33 = vector.shape_cast %29 : vector<8x8xf32> to vector<1x8x8xf32>
    %34 = vector.shape_cast %30 : vector<8x8xf32> to vector<1x8x8xf32>
    %35 = tpu.concatenate %31, %32, %33, %34 in 0 : vector<1x8x8xf32>, vector<1x8x8xf32>, vector<1x8x8xf32>, vector<1x8x8xf32> -> vector<4x8x8xf32>
    %36 = vector.extract_strided_slice %23 {offsets = [0, 0], sizes = [8, 8], strides = [1, 1]} : vector<8x32xf32> to vector<8x8xf32>
    %37 = vector.extract_strided_slice %23 {offsets = [0, 8], sizes = [8, 8], strides = [1, 1]} : vector<8x32xf32> to vector<8x8xf32>
    %38 = vector.extract_strided_slice %23 {offsets = [0, 16], sizes = [8, 8], strides = [1, 1]} : vector<8x32xf32> to vector<8x8xf32>
    %39 = vector.extract_strided_slice %23 {offsets = [0, 24], sizes = [8, 8], strides = [1, 1]} : vector<8x32xf32> to vector<8x8xf32>
    %40 = vector.shape_cast %36 : vector<8x8xf32> to vector<1x8x8xf32>
    %41 = vector.shape_cast %37 : vector<8x8xf32> to vector<1x8x8xf32>
    %42 = vector.shape_cast %38 : vector<8x8xf32> to vector<1x8x8xf32>
    %43 = vector.shape_cast %39 : vector<8x8xf32> to vector<1x8x8xf32>
    %44 = tpu.concatenate %40, %41, %42, %43 in 0 : vector<1x8x8xf32>, vector<1x8x8xf32>, vector<1x8x8xf32>, vector<1x8x8xf32> -> vector<4x8x8xf32>
    %45 = vector.extract_strided_slice %24 {offsets = [0, 0], sizes = [8, 8], strides = [1, 1]} : vector<8x32xf32> to vector<8x8xf32>
    %46 = vector.extract_strided_slice %24 {offsets = [0, 8], sizes = [8, 8], strides = [1, 1]} : vector<8x32xf32> to vector<8x8xf32>
    %47 = vector.extract_strided_slice %24 {offsets = [0, 16], sizes = [8, 8], strides = [1, 1]} : vector<8x32xf32> to vector<8x8xf32>
    %48 = vector.extract_strided_slice %24 {offsets = [0, 24], sizes = [8, 8], strides = [1, 1]} : vector<8x32xf32> to vector<8x8xf32>
    %49 = vector.shape_cast %45 : vector<8x8xf32> to vector<1x8x8xf32>
    %50 = vector.shape_cast %46 : vector<8x8xf32> to vector<1x8x8xf32>
    %51 = vector.shape_cast %47 : vector<8x8xf32> to vector<1x8x8xf32>
    %52 = vector.shape_cast %48 : vector<8x8xf32> to vector<1x8x8xf32>
    %53 = tpu.concatenate %49, %50, %51, %52 in 0 : vector<1x8x8xf32>, vector<1x8x8xf32>, vector<1x8x8xf32>, vector<1x8x8xf32> -> vector<4x8x8xf32>
    "tpu.trace_start"() <{level = 10 : i32, message = "hqd,hkd->hqk"}> : () -> ()
    %cst_21 = arith.constant dense<0.000000e+00> : vector<4x8x8xf32>
    %54 = tpu.matmul %35, %44, %cst_21 {dimension_numbers = #tpu.dot_dimension_numbers<[2], [2], [1], [1], [0, 0, 0, 1, 1, 1], [0], [0]>} : vector<4x8x8xf32>, vector<4x8x8xf32>, vector<4x8x8xf32> -> vector<4x8x8xf32>
    "tpu.trace_stop"() : () -> ()
    %55 = vector.shape_cast %12 : vector<8x8xi1> to vector<1x8x8xi1>
    %cst_22 = arith.constant -1.000000e+10 : f32
    %56 = vector.shape_cast %55 : vector<1x8x8xi1> to vector<1x8x8xi1>
    %57 = vector.broadcast %56 : vector<1x8x8xi1> to vector<4x8x8xi1>
    %58 = vector.broadcast %cst_22 : f32 to vector<4x8x8xf32>
    %59 = arith.select %57, %58, %54 : vector<4x8x8xi1>, vector<4x8x8xf32>
    %cst_23 = arith.constant dense<0xFF800000> : vector<4x8xf32>
    %60 = vector.multi_reduction <maximumf>, %59, %cst_23 [2] : vector<4x8x8xf32> to vector<4x8xf32>
    %61 = vector.shape_cast %60 : vector<4x8xf32> to vector<4x8x1xf32>
    %62 = vector.broadcast %61 : vector<4x8x1xf32> to vector<4x8x8xf32>
    %63 = arith.subf %59, %62 : vector<4x8x8xf32>
    %64 = math.exp %63 : vector<4x8x8xf32>
    %cst_24 = arith.constant dense<0.000000e+00> : vector<4x8xf32>
    %65 = vector.multi_reduction <add>, %64, %cst_24 [2] : vector<4x8x8xf32> to vector<4x8xf32>
    %66 = vector.shape_cast %65 : vector<4x8xf32> to vector<4x8x1xf32>
    %67 = tpu.reciprocal %66 {approx = true} : vector<4x8x1xf32> -> vector<4x8x1xf32>
    %68 = vector.broadcast %67 : vector<4x8x1xf32> to vector<4x8x8xf32>
    %69 = arith.mulf %64, %68 : vector<4x8x8xf32>
    "tpu.trace_start"() <{level = 10 : i32, message = "hqk,hkd->hqd"}> : () -> ()
    %cst_25 = arith.constant dense<0.000000e+00> : vector<4x8x8xf32>
    %70 = tpu.matmul %69, %53, %cst_25 {dimension_numbers = #tpu.dot_dimension_numbers<[2], [1], [1], [2], [0, 0, 0, 1, 1, 2], [0], [0]>} : vector<4x8x8xf32>, vector<4x8x8xf32>, vector<4x8x8xf32> -> vector<4x8x8xf32>
    "tpu.trace_stop"() : () -> ()
    "tpu.trace_start"() <{level = 10 : i32, message = "hqd,hdc->hqc"}> : () -> ()
    %cst_26 = arith.constant dense<0.000000e+00> : vector<4x8x32xf32>
    %71 = tpu.matmul %70, %25, %cst_26 {dimension_numbers = #tpu.dot_dimension_numbers<[2], [1], [1], [2], [0, 0, 0, 1, 1, 2], [0], [0]>} : vector<4x8x8xf32>, vector<4x8x32xf32>, vector<4x8x32xf32> -> vector<4x8x32xf32>
    "tpu.trace_stop"() : () -> ()
    %cst_27 = arith.constant dense<0.000000e+00> : vector<8x32xf32>
    %72 = vector.multi_reduction <add>, %71, %cst_27 [0] : vector<4x8x32xf32> to vector<8x32xf32>
    %73 = vector.broadcast %26 : vector<1x32xf32> to vector<8x32xf32>
    %74 = arith.addf %72, %73 : vector<8x32xf32>
    %75 = arith.addf %74, %1 : vector<8x32xf32>
    %c0_28 = arith.constant 0 : index
    %c0_29 = arith.constant 0 : index
    %76 = vector.load %arg9[%c0_28, %c0_29] : memref<1x32xf32, #tpu.memory_space<vmem>>, vector<1x32xf32>
    %c0_30 = arith.constant 0 : index
    %c0_31 = arith.constant 0 : index
    %77 = vector.load %arg10[%c0_30, %c0_31] : memref<1x32xf32, #tpu.memory_space<vmem>>, vector<1x32xf32>
    %cst_32 = arith.constant dense<0.000000e+00> : vector<8xf32>
    %78 = vector.multi_reduction <add>, %75, %cst_32 [1] : vector<8x32xf32> to vector<8xf32>
    %79 = vector.shape_cast %78 : vector<8xf32> to vector<8x1xf32>
    %cst_33 = arith.constant 3.200000e+01 : f32
    %80 = vector.broadcast %cst_33 : f32 to vector<8x1xf32>
    %81 = arith.divf %79, %80 : vector<8x1xf32>
    %82 = arith.mulf %75, %75 : vector<8x32xf32>
    %cst_34 = arith.constant dense<0.000000e+00> : vector<8xf32>
    %83 = vector.multi_reduction <add>, %82, %cst_34 [1] : vector<8x32xf32> to vector<8xf32>
    %84 = vector.shape_cast %83 : vector<8xf32> to vector<8x1xf32>
    %cst_35 = arith.constant 3.200000e+01 : f32
    %85 = vector.broadcast %cst_35 : f32 to vector<8x1xf32>
    %86 = arith.divf %84, %85 : vector<8x1xf32>
    %87 = arith.mulf %81, %81 : vector<8x1xf32>
    %88 = arith.subf %86, %87 : vector<8x1xf32>
    %cst_36 = arith.constant 9.99999974E-6 : f32
    %89 = vector.broadcast %cst_36 : f32 to vector<8x1xf32>
    %90 = arith.addf %88, %89 : vector<8x1xf32>
    %91 = math.rsqrt %90 : vector<8x1xf32>
    %92 = vector.broadcast %81 : vector<8x1xf32> to vector<8x32xf32>
    %93 = arith.subf %75, %92 : vector<8x32xf32>
    %94 = vector.broadcast %91 : vector<8x1xf32> to vector<8x32xf32>
    %95 = arith.mulf %93, %94 : vector<8x32xf32>
    %96 = vector.broadcast %76 : vector<1x32xf32> to vector<8x32xf32>
    %97 = arith.mulf %95, %96 : vector<8x32xf32>
    %98 = vector.broadcast %77 : vector<1x32xf32> to vector<8x32xf32>
    %99 = arith.addf %97, %98 : vector<8x32xf32>
    %c0_37 = arith.constant 0 : index
    %c0_38 = arith.constant 0 : index
    %100 = vector.load %arg11[%c0_37, %c0_38] : memref<32x32xf32, #tpu.memory_space<vmem>>, vector<32x32xf32>
    %cst_39 = arith.constant dense<0.000000e+00> : vector<8x32xf32>
    %101 = tpu.matmul %99, %100, %cst_39 {dimension_numbers = #tpu.dot_dimension_numbers<[1], [0], [0], [1], [0, 0, 1, 1], [], []>} : vector<8x32xf32>, vector<32x32xf32>, vector<8x32xf32> -> vector<8x32xf32>
    %c0_40 = arith.constant 0 : index
    %c0_41 = arith.constant 0 : index
    %102 = vector.load %arg12[%c0_40, %c0_41] : memref<1x32xf32, #tpu.memory_space<vmem>>, vector<1x32xf32>
    %103 = vector.broadcast %102 : vector<1x32xf32> to vector<8x32xf32>
    %104 = arith.addf %101, %103 : vector<8x32xf32>
    %c0_42 = arith.constant 0 : index
    %c0_43 = arith.constant 0 : index
    %105 = vector.load %arg13[%c0_42, %c0_43] : memref<32x64xf32, #tpu.memory_space<vmem>>, vector<32x64xf32>
    %cst_44 = arith.constant dense<0.000000e+00> : vector<8x64xf32>
    %106 = tpu.matmul %3, %105, %cst_44 {dimension_numbers = #tpu.dot_dimension_numbers<[1], [0], [0], [1], [0, 0, 1, 1], [], []>} : vector<8x32xf32>, vector<32x64xf32>, vector<8x64xf32> -> vector<8x64xf32>
    %c0_45 = arith.constant 0 : index
    %c0_46 = arith.constant 0 : index
    %107 = vector.load %arg14[%c0_45, %c0_46] : memref<1x64xf32, #tpu.memory_space<vmem>>, vector<1x64xf32>
    %108 = vector.broadcast %107 : vector<1x64xf32> to vector<8x64xf32>
    %109 = arith.addf %106, %108 : vector<8x64xf32>
    %110 = vector.extract_strided_slice %109 {offsets = [0, 0], sizes = [8, 32], strides = [1, 1]} : vector<8x64xf32> to vector<8x32xf32>
    %111 = vector.extract_strided_slice %109 {offsets = [0, 32], sizes = [8, 32], strides = [1, 1]} : vector<8x64xf32> to vector<8x32xf32>
    %c0_47 = arith.constant 0 : index
    %c0_48 = arith.constant 0 : index
    %c0_49 = arith.constant 0 : index
    %112 = vector.load %arg15[%c0_47, %c0_48, %c0_49] : memref<4x8x32xf32, #tpu.memory_space<vmem>>, vector<4x8x32xf32>
    %c0_50 = arith.constant 0 : index
    %c0_51 = arith.constant 0 : index
    %113 = vector.load %arg16[%c0_50, %c0_51] : memref<1x32xf32, #tpu.memory_space<vmem>>, vector<1x32xf32>
    %114 = vector.extract_strided_slice %104 {offsets = [0, 0], sizes = [8, 8], strides = [1, 1]} : vector<8x32xf32> to vector<8x8xf32>
    %115 = vector.extract_strided_slice %104 {offsets = [0, 8], sizes = [8, 8], strides = [1, 1]} : vector<8x32xf32> to vector<8x8xf32>
    %116 = vector.extract_strided_slice %104 {offsets = [0, 16], sizes = [8, 8], strides = [1, 1]} : vector<8x32xf32> to vector<8x8xf32>
    %117 = vector.extract_strided_slice %104 {offsets = [0, 24], sizes = [8, 8], strides = [1, 1]} : vector<8x32xf32> to vector<8x8xf32>
    %118 = vector.shape_cast %114 : vector<8x8xf32> to vector<1x8x8xf32>
    %119 = vector.shape_cast %115 : vector<8x8xf32> to vector<1x8x8xf32>
    %120 = vector.shape_cast %116 : vector<8x8xf32> to vector<1x8x8xf32>
    %121 = vector.shape_cast %117 : vector<8x8xf32> to vector<1x8x8xf32>
    %122 = tpu.concatenate %118, %119, %120, %121 in 0 : vector<1x8x8xf32>, vector<1x8x8xf32>, vector<1x8x8xf32>, vector<1x8x8xf32> -> vector<4x8x8xf32>
    %123 = vector.extract_strided_slice %110 {offsets = [0, 0], sizes = [8, 8], strides = [1, 1]} : vector<8x32xf32> to vector<8x8xf32>
    %124 = vector.extract_strided_slice %110 {offsets = [0, 8], sizes = [8, 8], strides = [1, 1]} : vector<8x32xf32> to vector<8x8xf32>
    %125 = vector.extract_strided_slice %110 {offsets = [0, 16], sizes = [8, 8], strides = [1, 1]} : vector<8x32xf32> to vector<8x8xf32>
    %126 = vector.extract_strided_slice %110 {offsets = [0, 24], sizes = [8, 8], strides = [1, 1]} : vector<8x32xf32> to vector<8x8xf32>
    %127 = vector.shape_cast %123 : vector<8x8xf32> to vector<1x8x8xf32>
    %128 = vector.shape_cast %124 : vector<8x8xf32> to vector<1x8x8xf32>
    %129 = vector.shape_cast %125 : vector<8x8xf32> to vector<1x8x8xf32>
    %130 = vector.shape_cast %126 : vector<8x8xf32> to vector<1x8x8xf32>
    %131 = tpu.concatenate %127, %128, %129, %130 in 0 : vector<1x8x8xf32>, vector<1x8x8xf32>, vector<1x8x8xf32>, vector<1x8x8xf32> -> vector<4x8x8xf32>
    %132 = vector.extract_strided_slice %111 {offsets = [0, 0], sizes = [8, 8], strides = [1, 1]} : vector<8x32xf32> to vector<8x8xf32>
    %133 = vector.extract_strided_slice %111 {offsets = [0, 8], sizes = [8, 8], strides = [1, 1]} : vector<8x32xf32> to vector<8x8xf32>
    %134 = vector.extract_strided_slice %111 {offsets = [0, 16], sizes = [8, 8], strides = [1, 1]} : vector<8x32xf32> to vector<8x8xf32>
    %135 = vector.extract_strided_slice %111 {offsets = [0, 24], sizes = [8, 8], strides = [1, 1]} : vector<8x32xf32> to vector<8x8xf32>
    %136 = vector.shape_cast %132 : vector<8x8xf32> to vector<1x8x8xf32>
    %137 = vector.shape_cast %133 : vector<8x8xf32> to vector<1x8x8xf32>
    %138 = vector.shape_cast %134 : vector<8x8xf32> to vector<1x8x8xf32>
    %139 = vector.shape_cast %135 : vector<8x8xf32> to vector<1x8x8xf32>
    %140 = tpu.concatenate %136, %137, %138, %139 in 0 : vector<1x8x8xf32>, vector<1x8x8xf32>, vector<1x8x8xf32>, vector<1x8x8xf32> -> vector<4x8x8xf32>
    "tpu.trace_start"() <{level = 10 : i32, message = "hqd,hkd->hqk"}> : () -> ()
    %cst_52 = arith.constant dense<0.000000e+00> : vector<4x8x8xf32>
    %141 = tpu.matmul %122, %131, %cst_52 {dimension_numbers = #tpu.dot_dimension_numbers<[2], [2], [1], [1], [0, 0, 0, 1, 1, 1], [0], [0]>} : vector<4x8x8xf32>, vector<4x8x8xf32>, vector<4x8x8xf32> -> vector<4x8x8xf32>
    "tpu.trace_stop"() : () -> ()
    %142 = vector.shape_cast %16 : vector<1x8xi1> to vector<1x1x8xi1>
    %cst_53 = arith.constant -1.000000e+10 : f32
    %143 = vector.shape_cast %142 : vector<1x1x8xi1> to vector<1x1x8xi1>
    %144 = vector.broadcast %143 : vector<1x1x8xi1> to vector<4x8x8xi1>
    %145 = vector.broadcast %cst_53 : f32 to vector<4x8x8xf32>
    %146 = arith.select %144, %145, %141 : vector<4x8x8xi1>, vector<4x8x8xf32>
    %cst_54 = arith.constant dense<0xFF800000> : vector<4x8xf32>
    %147 = vector.multi_reduction <maximumf>, %146, %cst_54 [2] : vector<4x8x8xf32> to vector<4x8xf32>
    %148 = vector.shape_cast %147 : vector<4x8xf32> to vector<4x8x1xf32>
    %149 = vector.broadcast %148 : vector<4x8x1xf32> to vector<4x8x8xf32>
    %150 = arith.subf %146, %149 : vector<4x8x8xf32>
    %151 = math.exp %150 : vector<4x8x8xf32>
    %cst_55 = arith.constant dense<0.000000e+00> : vector<4x8xf32>
    %152 = vector.multi_reduction <add>, %151, %cst_55 [2] : vector<4x8x8xf32> to vector<4x8xf32>
    %153 = vector.shape_cast %152 : vector<4x8xf32> to vector<4x8x1xf32>
    %154 = tpu.reciprocal %153 {approx = true} : vector<4x8x1xf32> -> vector<4x8x1xf32>
    %155 = vector.broadcast %154 : vector<4x8x1xf32> to vector<4x8x8xf32>
    %156 = arith.mulf %151, %155 : vector<4x8x8xf32>
    "tpu.trace_start"() <{level = 10 : i32, message = "hqk,hkd->hqd"}> : () -> ()
    %cst_56 = arith.constant dense<0.000000e+00> : vector<4x8x8xf32>
    %157 = tpu.matmul %156, %140, %cst_56 {dimension_numbers = #tpu.dot_dimension_numbers<[2], [1], [1], [2], [0, 0, 0, 1, 1, 2], [0], [0]>} : vector<4x8x8xf32>, vector<4x8x8xf32>, vector<4x8x8xf32> -> vector<4x8x8xf32>
    "tpu.trace_stop"() : () -> ()
    "tpu.trace_start"() <{level = 10 : i32, message = "hqd,hdc->hqc"}> : () -> ()
    %cst_57 = arith.constant dense<0.000000e+00> : vector<4x8x32xf32>
    %158 = tpu.matmul %157, %112, %cst_57 {dimension_numbers = #tpu.dot_dimension_numbers<[2], [1], [1], [2], [0, 0, 0, 1, 1, 2], [0], [0]>} : vector<4x8x8xf32>, vector<4x8x32xf32>, vector<4x8x32xf32> -> vector<4x8x32xf32>
    "tpu.trace_stop"() : () -> ()
    %cst_58 = arith.constant dense<0.000000e+00> : vector<8x32xf32>
    %159 = vector.multi_reduction <add>, %158, %cst_58 [0] : vector<4x8x32xf32> to vector<8x32xf32>
    %160 = vector.broadcast %113 : vector<1x32xf32> to vector<8x32xf32>
    %161 = arith.addf %159, %160 : vector<8x32xf32>
    %162 = arith.addf %161, %99 : vector<8x32xf32>
    %c0_59 = arith.constant 0 : index
    %c0_60 = arith.constant 0 : index
    %163 = vector.load %arg17[%c0_59, %c0_60] : memref<1x32xf32, #tpu.memory_space<vmem>>, vector<1x32xf32>
    %c0_61 = arith.constant 0 : index
    %c0_62 = arith.constant 0 : index
    %164 = vector.load %arg18[%c0_61, %c0_62] : memref<1x32xf32, #tpu.memory_space<vmem>>, vector<1x32xf32>
    %cst_63 = arith.constant dense<0.000000e+00> : vector<8xf32>
    %165 = vector.multi_reduction <add>, %162, %cst_63 [1] : vector<8x32xf32> to vector<8xf32>
    %166 = vector.shape_cast %165 : vector<8xf32> to vector<8x1xf32>
    %cst_64 = arith.constant 3.200000e+01 : f32
    %167 = vector.broadcast %cst_64 : f32 to vector<8x1xf32>
    %168 = arith.divf %166, %167 : vector<8x1xf32>
    %169 = arith.mulf %162, %162 : vector<8x32xf32>
    %cst_65 = arith.constant dense<0.000000e+00> : vector<8xf32>
    %170 = vector.multi_reduction <add>, %169, %cst_65 [1] : vector<8x32xf32> to vector<8xf32>
    %171 = vector.shape_cast %170 : vector<8xf32> to vector<8x1xf32>
    %cst_66 = arith.constant 3.200000e+01 : f32
    %172 = vector.broadcast %cst_66 : f32 to vector<8x1xf32>
    %173 = arith.divf %171, %172 : vector<8x1xf32>
    %174 = arith.mulf %168, %168 : vector<8x1xf32>
    %175 = arith.subf %173, %174 : vector<8x1xf32>
    %cst_67 = arith.constant 9.99999974E-6 : f32
    %176 = vector.broadcast %cst_67 : f32 to vector<8x1xf32>
    %177 = arith.addf %175, %176 : vector<8x1xf32>
    %178 = math.rsqrt %177 : vector<8x1xf32>
    %179 = vector.broadcast %168 : vector<8x1xf32> to vector<8x32xf32>
    %180 = arith.subf %162, %179 : vector<8x32xf32>
    %181 = vector.broadcast %178 : vector<8x1xf32> to vector<8x32xf32>
    %182 = arith.mulf %180, %181 : vector<8x32xf32>
    %183 = vector.broadcast %163 : vector<1x32xf32> to vector<8x32xf32>
    %184 = arith.mulf %182, %183 : vector<8x32xf32>
    %185 = vector.broadcast %164 : vector<1x32xf32> to vector<8x32xf32>
    %186 = arith.addf %184, %185 : vector<8x32xf32>
    %c0_68 = arith.constant 0 : index
    %c0_69 = arith.constant 0 : index
    %187 = vector.load %arg19[%c0_68, %c0_69] : memref<32x128xf32, #tpu.memory_space<vmem>>, vector<32x128xf32>
    %cst_70 = arith.constant dense<0.000000e+00> : vector<8x128xf32>
    %188 = tpu.matmul %186, %187, %cst_70 {dimension_numbers = #tpu.dot_dimension_numbers<[1], [0], [0], [1], [0, 0, 1, 1], [], []>} : vector<8x32xf32>, vector<32x128xf32>, vector<8x128xf32> -> vector<8x128xf32>
    %c0_71 = arith.constant 0 : index
    %c0_72 = arith.constant 0 : index
    %189 = vector.load %arg20[%c0_71, %c0_72] : memref<1x128xf32, #tpu.memory_space<vmem>>, vector<1x128xf32>
    %190 = vector.broadcast %189 : vector<1x128xf32> to vector<8x128xf32>
    %191 = arith.addf %188, %190 : vector<8x128xf32>
    %cst_73 = arith.constant 0.000000e+00 : f32
    %192 = vector.broadcast %cst_73 : f32 to vector<8x128xf32>
    %193 = arith.maximumf %191, %192 : vector<8x128xf32>
    %c0_74 = arith.constant 0 : index
    %c0_75 = arith.constant 0 : index
    %194 = vector.load %arg21[%c0_74, %c0_75] : memref<128x32xf32, #tpu.memory_space<vmem>>, vector<128x32xf32>
    %cst_76 = arith.constant dense<0.000000e+00> : vector<8x32xf32>
    %195 = tpu.matmul %193, %194, %cst_76 {dimension_numbers = #tpu.dot_dimension_numbers<[1], [0], [0], [1], [0, 0, 1, 1], [], []>} : vector<8x128xf32>, vector<128x32xf32>, vector<8x32xf32> -> vector<8x32xf32>
    %c0_77 = arith.constant 0 : index
    %c0_78 = arith.constant 0 : index
    %196 = vector.load %arg22[%c0_77, %c0_78] : memref<1x32xf32, #tpu.memory_space<vmem>>, vector<1x32xf32>
    %197 = vector.broadcast %196 : vector<1x32xf32> to vector<8x32xf32>
    %198 = arith.addf %195, %197 : vector<8x32xf32>
    %199 = arith.addf %198, %186 : vector<8x32xf32>
    %c0_79 = arith.constant 0 : index
    %c0_80 = arith.constant 0 : index
    %200 = vector.load %arg23[%c0_79, %c0_80] : memref<1x32xf32, #tpu.memory_space<vmem>>, vector<1x32xf32>
    %c0_81 = arith.constant 0 : index
    %c0_82 = arith.constant 0 : index
    %201 = vector.load %arg24[%c0_81, %c0_82] : memref<1x32xf32, #tpu.memory_space<vmem>>, vector<1x32xf32>
    %cst_83 = arith.constant dense<0.000000e+00> : vector<8xf32>
    %202 = vector.multi_reduction <add>, %199, %cst_83 [1] : vector<8x32xf32> to vector<8xf32>
    %203 = vector.shape_cast %202 : vector<8xf32> to vector<8x1xf32>
    %cst_84 = arith.constant 3.200000e+01 : f32
    %204 = vector.broadcast %cst_84 : f32 to vector<8x1xf32>
    %205 = arith.divf %203, %204 : vector<8x1xf32>
    %206 = arith.mulf %199, %199 : vector<8x32xf32>
    %cst_85 = arith.constant dense<0.000000e+00> : vector<8xf32>
    %207 = vector.multi_reduction <add>, %206, %cst_85 [1] : vector<8x32xf32> to vector<8xf32>
    %208 = vector.shape_cast %207 : vector<8xf32> to vector<8x1xf32>
    %cst_86 = arith.constant 3.200000e+01 : f32
    %209 = vector.broadcast %cst_86 : f32 to vector<8x1xf32>
    %210 = arith.divf %208, %209 : vector<8x1xf32>
    %211 = arith.mulf %205, %205 : vector<8x1xf32>
    %212 = arith.subf %210, %211 : vector<8x1xf32>
    %cst_87 = arith.constant 9.99999974E-6 : f32
    %213 = vector.broadcast %cst_87 : f32 to vector<8x1xf32>
    %214 = arith.addf %212, %213 : vector<8x1xf32>
    %215 = math.rsqrt %214 : vector<8x1xf32>
    %216 = vector.broadcast %205 : vector<8x1xf32> to vector<8x32xf32>
    %217 = arith.subf %199, %216 : vector<8x32xf32>
    %218 = vector.broadcast %215 : vector<8x1xf32> to vector<8x32xf32>
    %219 = arith.mulf %217, %218 : vector<8x32xf32>
    %220 = vector.broadcast %200 : vector<1x32xf32> to vector<8x32xf32>
    %221 = arith.mulf %219, %220 : vector<8x32xf32>
    %222 = vector.broadcast %201 : vector<1x32xf32> to vector<8x32xf32>
    %223 = arith.addf %221, %222 : vector<8x32xf32>
    %c0_88 = arith.constant 0 : index
    %c0_89 = arith.constant 0 : index
    %c0_90 = arith.constant 0 : index
    %224 = vector.load %arg25[%c0_88, %c0_89, %c0_90] : memref<1x8x32xf32, #tpu.memory_space<vmem>>, vector<1x8x32xf32>
    %225 = vector.shape_cast %224 : vector<1x8x32xf32> to vector<8x32xf32>
    %226 = vector.shape_cast %223 : vector<8x32xf32> to vector<1x8x32xf32>
    tpu.vector_store %arg25[%c0_88, %c0_89, %c0_90], %226 {strides = array<i32>} : memref<1x8x32xf32, #tpu.memory_space<vmem>>, vector<1x8x32xf32>,
    return
  }
  func.func @transform_0(%arg0: i32) -> (i32, i32, i32) {
    %c0_i32 = arith.constant 0 : i32
    %c0_i32_0 = arith.constant 0 : i32
    %c0_i32_1 = arith.constant 0 : i32
    return %arg0, %c0_i32, %c0_i32_0 : i32, i32, i32
  }
  func.func @transform_1(%arg0: i32) -> (i32, i32, i32) {
    %c0_i32 = arith.constant 0 : i32
    %c0_i32_0 = arith.constant 0 : i32
    %c0_i32_1 = arith.constant 0 : i32
    return %arg0, %c0_i32, %c0_i32_0 : i32, i32, i32
  }
  func.func @transform_2(%arg0: i32) -> (i32, i32, i32) {
    %c0_i32 = arith.constant 0 : i32
    %c0_i32_0 = arith.constant 0 : i32
    %c0_i32_1 = arith.constant 0 : i32
    return %arg0, %c0_i32, %c0_i32_0 : i32, i32, i32
  }
  func.func @transform_3(%arg0: i32) -> (i32, i32, i32) {
    %c0_i32 = arith.constant 0 : i32
    %c0_i32_0 = arith.constant 0 : i32
    %c0_i32_1 = arith.constant 0 : i32
    return %arg0, %c0_i32, %c0_i32_0 : i32, i32, i32
  }
  func.func @transform_4(%arg0: i32) -> (i32, i32) {
    %c0_i32 = arith.constant 0 : i32
    %c0_i32_0 = arith.constant 0 : i32
    %c0_i32_1 = arith.constant 0 : i32
    return %c0_i32, %c0_i32_0 : i32, i32
  }
  func.func @transform_5(%arg0: i32) -> (i32, i32) {
    %c0_i32 = arith.constant 0 : i32
    %c0_i32_0 = arith.constant 0 : i32
    %c0_i32_1 = arith.constant 0 : i32
    return %c0_i32, %c0_i32_0 : i32, i32
  }
  func.func @transform_6(%arg0: i32) -> (i32, i32, i32) {
    %c0_i32 = arith.constant 0 : i32
    %c0_i32_0 = arith.constant 0 : i32
    %c0_i32_1 = arith.constant 0 : i32
    %c0_i32_2 = arith.constant 0 : i32
    return %c0_i32, %c0_i32_0, %c0_i32_1 : i32, i32, i32
  }
  func.func @transform_7(%arg0: i32) -> (i32, i32) {
    %c0_i32 = arith.constant 0 : i32
    %c0_i32_0 = arith.constant 0 : i32
    %c0_i32_1 = arith.constant 0 : i32
    return %c0_i32, %c0_i32_0 : i32, i32
  }
  func.func @transform_8(%arg0: i32) -> (i32, i32) {
    %c0_i32 = arith.constant 0 : i32
    %c0_i32_0 = arith.constant 0 : i32
    %c0_i32_1 = arith.constant 0 : i32
    return %c0_i32, %c0_i32_0 : i32, i32
  }
  func.func @transform_9(%arg0: i32) -> (i32, i32) {
    %c0_i32 = arith.constant 0 : i32
    %c0_i32_0 = arith.constant 0 : i32
    %c0_i32_1 = arith.constant 0 : i32
    return %c0_i32, %c0_i32_0 : i32, i32
  }
  func.func @transform_10(%arg0: i32) -> (i32, i32) {
    %c0_i32 = arith.constant 0 : i32
    %c0_i32_0 = arith.constant 0 : i32
    %c0_i32_1 = arith.constant 0 : i32
    return %c0_i32, %c0_i32_0 : i32, i32
  }
  func.func @transform_11(%arg0: i32) -> (i32, i32) {
    %c0_i32 = arith.constant 0 : i32
    %c0_i32_0 = arith.constant 0 : i32
    %c0_i32_1 = arith.constant 0 : i32
    return %c0_i32, %c0_i32_0 : i32, i32
  }
  func.func @transform_12(%arg0: i32) -> (i32, i32) {
    %c0_i32 = arith.constant 0 : i32
    %c0_i32_0 = arith.constant 0 : i32
    %c0_i32_1 = arith.constant 0 : i32
    return %c0_i32, %c0_i32_0 : i32, i32
  }
  func.func @transform_13(%arg0: i32) -> (i32, i32) {
    %c0_i32 = arith.constant 0 : i32
    %c0_i32_0 = arith.constant 0 : i32
    %c0_i32_1 = arith.constant 0 : i32
    return %c0_i32, %c0_i32_0 : i32, i32
  }
  func.func @transform_14(%arg0: i32) -> (i32, i32, i32) {
    %c0_i32 = arith.constant 0 : i32
    %c0_i32_0 = arith.constant 0 : i32
    %c0_i32_1 = arith.constant 0 : i32
    %c0_i32_2 = arith.constant 0 : i32
    return %c0_i32, %c0_i32_0, %c0_i32_1 : i32, i32, i32
  }
  func.func @transform_15(%arg0: i32) -> (i32, i32) {
    %c0_i32 = arith.constant 0 : i32
    %c0_i32_0 = arith.constant 0 : i32
    %c0_i32_1 = arith.constant 0 : i32
    return %c0_i32, %c0_i32_0 : i32, i32
  }
  func.func @transform_16(%arg0: i32) -> (i32, i32) {
    %c0_i32 = arith.constant 0 : i32
    %c0_i32_0 = arith.constant 0 : i32
    %c0_i32_1 = arith.constant 0 : i32
    return %c0_i32, %c0_i32_0 : i32, i32
  }
  func.func @transform_17(%arg0: i32) -> (i32, i32) {
    %c0_i32 = arith.constant 0 : i32
    %c0_i32_0 = arith.constant 0 : i32
    %c0_i32_1 = arith.constant 0 : i32
    return %c0_i32, %c0_i32_0 : i32, i32
  }
  func.func @transform_18(%arg0: i32) -> (i32, i32) {
    %c0_i32 = arith.constant 0 : i32
    %c0_i32_0 = arith.constant 0 : i32
    %c0_i32_1 = arith.constant 0 : i32
    return %c0_i32, %c0_i32_0 : i32, i32
  }
  func.func @transform_19(%arg0: i32) -> (i32, i32) {
    %c0_i32 = arith.constant 0 : i32
    %c0_i32_0 = arith.constant 0 : i32
    %c0_i32_1 = arith.constant 0 : i32
    return %c0_i32, %c0_i32_0 : i32, i32
  }
  func.func @transform_20(%arg0: i32) -> (i32, i32) {
    %c0_i32 = arith.constant 0 : i32
    %c0_i32_0 = arith.constant 0 : i32
    %c0_i32_1 = arith.constant 0 : i32
    return %c0_i32, %c0_i32_0 : i32, i32
  }
  func.func @transform_21(%arg0: i32) -> (i32, i32) {
    %c0_i32 = arith.constant 0 : i32
    %c0_i32_0 = arith.constant 0 : i32
    %c0_i32_1 = arith.constant 0 : i32
    return %c0_i32, %c0_i32_0 : i32, i32
  }
  func.func @transform_22(%arg0: i32) -> (i32, i32) {
    %c0_i32 = arith.constant 0 : i32
    %c0_i32_0 = arith.constant 0 : i32
    %c0_i32_1 = arith.constant 0 : i32
    return %c0_i32, %c0_i32_0 : i32, i32
  }
  func.func @transform_23(%arg0: i32) -> (i32, i32) {
    %c0_i32 = arith.constant 0 : i32
    %c0_i32_0 = arith.constant 0 : i32
    %c0_i32_1 = arith.constant 0 : i32
    return %c0_i32, %c0_i32_0 : i32, i32
  }
  func.func @transform_24(%arg0: i32) -> (i32, i32, i32) {
    %c0_i32 = arith.constant 0 : i32
    %c0_i32_0 = arith.constant 0 : i32
    %c0_i32_1 = arith.constant 0 : i32
    return %arg0, %c0_i32, %c0_i32_0 : i32, i32, i32
  }
}

module attributes {stable_mosaic.version = 11 : i64} {
  func.func @_decoder_layer_kernel(%arg0: i32, %arg1: memref<1x8x32xf32, #tpu.memory_space<vmem>>, %arg2: memref<1x8x32xf32, #tpu.memory_space<vmem>>, %arg3: memref<1x1x8xi32, #tpu.memory_space<vmem>>, %arg4: memref<1x1x8xi32, #tpu.memory_space<vmem>>, %arg5: memref<32x96xf32, #tpu.memory_space<vmem>>, %arg6: memref<1x96xf32, #tpu.memory_space<vmem>>, %arg7: memref<4x8x32xf32, #tpu.memory_space<vmem>>, %arg8: memref<1x32xf32, #tpu.memory_space<vmem>>, %arg9: memref<1x32xf32, #tpu.memory_space<vmem>>, %arg10: memref<1x32xf32, #tpu.memory_space<vmem>>, %arg11: memref<32x32xf32, #tpu.memory_space<vmem>>, %arg12: memref<1x32xf32, #tpu.memory_space<vmem>>, %arg13: memref<32x64xf32, #tpu.memory_space<vmem>>, %arg14: memref<1x64xf32, #tpu.memory_space<vmem>>, %arg15: memref<4x8x32xf32, #tpu.memory_space<vmem>>, %arg16: memref<1x32xf32, #tpu.memory_space<vmem>>, %arg17: memref<1x32xf32, #tpu.memory_space<vmem>>, %arg18: memref<1x32xf32, #tpu.memory_space<vmem>>, %arg19: memref<32x128xf32, #tpu.memory_space<vmem>>, %arg20: memref<1x128xf32, #tpu.memory_space<vmem>>, %arg21: memref<128x32xf32, #tpu.memory_space<vmem>>, %arg22: memref<1x32xf32, #tpu.memory_space<vmem>>, %arg23: memref<1x32xf32, #tpu.memory_space<vmem>>, %arg24: memref<1x32xf32, #tpu.memory_space<vmem>>, %arg25: memref<1x8x32xf32, #tpu.memory_space<vmem>>) attributes {dimension_semantics = [#tpu.dimension_semantics<parallel>], iteration_bounds = array<i64: 2>, scalar_prefetch = 0 : i64, scratch_operands = 0 : i64, tpu.core_type = #tpu.core_type<tc>, window_params = [{transform_indices = @transform_0, window_bounds = array<i64: 1, 8, 32>}, {transform_indices = @transform_1, window_bounds = array<i64: 1, 8, 32>}, {transform_indices = @transform_2, window_bounds = array<i64: 1, 1, 8>}, {transform_indices = @transform_3, window_bounds = array<i64: 1, 1, 8>}, {pipeline_mode = #tpu.pipeline_mode<synchronous>, transform_indices = @transform_4, window_bounds = array<i64: 32, 96>}, {pipeline_mode = #tpu.pipeline_mode<synchronous>, transform_indices = @transform_5, window_bounds = array<i64: 1, 96>}, {pipeline_mode = #tpu.pipeline_mode<synchronous>, transform_indices = @transform_6, window_bounds = array<i64: 4, 8, 32>}, {pipeline_mode = #tpu.pipeline_mode<synchronous>, transform_indices = @transform_7, window_bounds = array<i64: 1, 32>}, {pipeline_mode = #tpu.pipeline_mode<synchronous>, transform_indices = @transform_8, window_bounds = array<i64: 1, 32>}, {pipeline_mode = #tpu.pipeline_mode<synchronous>, transform_indices = @transform_9, window_bounds = array<i64: 1, 32>}, {pipeline_mode = #tpu.pipeline_mode<synchronous>, transform_indices = @transform_10, window_bounds = array<i64: 32, 32>}, {pipeline_mode = #tpu.pipeline_mode<synchronous>, transform_indices = @transform_11, window_bounds = array<i64: 1, 32>}, {pipeline_mode = #tpu.pipeline_mode<synchronous>, transform_indices = @transform_12, window_bounds = array<i64: 32, 64>}, {pipeline_mode = #tpu.pipeline_mode<synchronous>, transform_indices = @transform_13, window_bounds = array<i64: 1, 64>}, {pipeline_mode = #tpu.pipeline_mode<synchronous>, transform_indices = @transform_14, window_bounds = array<i64: 4, 8, 32>}, {pipeline_mode = #tpu.pipeline_mode<synchronous>, transform_indices = @transform_15, window_bounds = array<i64: 1, 32>}, {pipeline_mode = #tpu.pipeline_mode<synchronous>, transform_indices = @transform_16, window_bounds = array<i64: 1, 32>}, {pipeline_mode = #tpu.pipeline_mode<synchronous>, transform_indices = @transform_17, window_bounds = array<i64: 1, 32>}, {pipeline_mode = #tpu.pipeline_mode<synchronous>, transform_indices = @transform_18, window_bounds = array<i64: 32, 128>}, {pipeline_mode = #tpu.pipeline_mode<synchronous>, transform_indices = @transform_19, window_bounds = array<i64: 1, 128>}, {pipeline_mode = #tpu.pipeline_mode<synchronous>, transform_indices = @transform_20, window_bounds = array<i64: 128, 32>}, {pipeline_mode = #tpu.pipeline_mode<synchronous>, transform_indices = @transform_21, window_bounds = array<i64: 1, 32>}, {pipeline_mode = #tpu.pipeline_mode<synchronous>, transform_indices = @transform_22, window_bounds = array<i64: 1, 32>}, {pipeline_mode = #tpu.pipeline_mode<synchronous>, transform_indices = @transform_23, window_bounds = array<i64: 1, 32>}, {transform_indices = @transform_24, window_bounds = array<i64: 1, 8, 32>}]} {
    %c0 = arith.constant 0 : index
    %c0_0 = arith.constant 0 : index
    %c0_1 = arith.constant 0 : index
    %0 = vector.load %arg1[%c0, %c0_0, %c0_1] : memref<1x8x32xf32, #tpu.memory_space<vmem>>, vector<1x8x32xf32>
    %1 = vector.shape_cast %0 : vector<1x8x32xf32> to vector<8x32xf32>
    %c0_2 = arith.constant 0 : index
    %c0_3 = arith.constant 0 : index
    %c0_4 = arith.constant 0 : index
    %2 = vector.load %arg2[%c0_2, %c0_3, %c0_4] : memref<1x8x32xf32, #tpu.memory_space<vmem>>, vector<1x8x32xf32>
    %3 = vector.shape_cast %2 : vector<1x8x32xf32> to vector<8x32xf32>
    %4 = tpu.iota {dimensions = array<i32: 0>} : vector<8x8xi32>
    %5 = tpu.iota {dimensions = array<i32: 1>} : vector<8x8xi32>
    %6 = arith.cmpi sgt, %5, %4 : vector<8x8xi32>
    %c0_5 = arith.constant 0 : index
    %c0_6 = arith.constant 0 : index
    %c0_7 = arith.constant 0 : index
    %7 = vector.load %arg4[%c0_5, %c0_6, %c0_7] : memref<1x1x8xi32, #tpu.memory_space<vmem>>, vector<1x1x8xi32>
    %8 = vector.shape_cast %7 : vector<1x1x8xi32> to vector<1x8xi32>
    %c0_i32 = arith.constant 0 : i32
    %9 = vector.broadcast %c0_i32 : i32 to vector<1x8xi32>
    %10 = arith.cmpi eq, %8, %9 : vector<1x8xi32>
    %11 = vector.broadcast %10 : vector<1x8xi1> to vector<8x8xi1>
    %12 = arith.ori %6, %11 : vector<8x8xi1>
    %c0_8 = arith.constant 0 : index
    %c0_9 = arith.constant 0 : index
    %c0_10 = arith.constant 0 : index
    %13 = vector.load %arg3[%c0_8, %c0_9, %c0_10] : memref<1x1x8xi32, #tpu.memory_space<vmem>>, vector<1x1x8xi32>
    %14 = vector.shape_cast %13 : vector<1x1x8xi32> to vector<1x8xi32>
    %c0_i32_11 = arith.constant 0 : i32
    %15 = vector.broadcast %c0_i32_11 : i32 to vector<1x8xi32>
    %16 = arith.cmpi eq, %14, %15 : vector<1x8xi32>
    %c0_12 = arith.constant 0 : index
    %c0_13 = arith.constant 0 : index
    %17 = vector.load %arg5[%c0_12, %c0_13] : memref<32x96xf32, #tpu.memory_space<vmem>>, vector<32x96xf32>
    %cst = arith.constant dense<0.000000e+00> : vector<8x96xf32>
    %18 = tpu.matmul %1, %17, %cst {dimension_numbers = #tpu.dot_dimension_numbers<[1], [0], [0], [1], [0, 0, 1, 1], [], []>} : vector<8x32xf32>, vector<32x96xf32>, vector<8x96xf32> -> vector<8x96xf32>
    %c0_14 = arith.constant 0 : index
    %c0_15 = arith.constant 0 : index
    %19 = vector.load %arg6[%c0_14, %c0_15] : memref<1x96xf32, #tpu.memory_space<vmem>>, vector<1x96xf32>
    %20 = vector.broadcast %19 : vector<1x96xf32> to vector<8x96xf32>
    %21 = arith.addf %18, %20 : vector<8x96xf32>
    %22 = vector.extract_strided_slice %21 {offsets = [0, 0], sizes = [8, 32], strides = [1, 1]} : vector<8x96xf32> to vector<8x32xf32>
    %23 = vector.extract_strided_slice %21 {offsets = [0, 32], sizes = [8, 32], strides = [1, 1]} : vector<8x96xf32> to vector<8x32xf32>
    %24 = vector.extract_strided_slice %21 {offsets = [0, 64], sizes = [8, 32], strides = [1, 1]} : vector<8x96xf32> to vector<8x32xf32>
    %c0_16 = arith.constant 0 : index
    %c0_17 = arith.constant 0 : index
    %c0_18 = arith.constant 0 : index
    %25 = vector.load %arg7[%c0_16, %c0_17, %c0_18] : memref<4x8x32xf32, #tpu.memory_space<vmem>>, vector<4x8x32xf32>
    %c0_19 = arith.constant 0 : index
    %c0_20 = arith.constant 0 : index
    %26 = vector.load %arg8[%c0_19, %c0_20] : memref<1x32xf32, #tpu.memory_space<vmem>>, vector<1x32xf32>
    %27 = vector.extract_strided_slice %22 {offsets = [0, 0], sizes = [8, 8], strides = [1, 1]} : vector<8x32xf32> to vector<8x8xf32>
    %28 = vector.extract_strided_slice %22 {offsets = [0, 8], sizes = [8, 8], strides = [1, 1]} : vector<8x32xf32> to vector<8x8xf32>
    %29 = vector.extract_strided_slice %22 {offsets = [0, 16], sizes = [8, 8], strides = [1, 1]} : vector<8x32xf32> to vector<8x8xf32>
    %30 = vector.extract_strided_slice %22 {offsets = [0, 24], sizes = [8, 8], strides = [1, 1]} : vector<8x32xf32> to vector<8x8xf32>
    %31 = vector.shape_cast %27 : vector<8x8xf32> to vector<1x8x8xf32>
    %32 = vector.shape_cast %28 : vector<8x8xf32> to vector<1x8x8xf32>
    %33 = vector.shape_cast %29 : vector<8x8xf32> to vector<1x8x8xf32>
    %34 = vector.shape_cast %30 : vector<8x8xf32> to vector<1x8x8xf32>
    %35 = tpu.concatenate %31, %32, %33, %34 in 0 : vector<1x8x8xf32>, vector<1x8x8xf32>, vector<1x8x8xf32>, vector<1x8x8xf32> -> vector<4x8x8xf32>
    %36 = vector.extract_strided_slice %23 {offsets = [0, 0], sizes = [8, 8], strides = [1, 1]} : vector<8x32xf32> to vector<8x8xf32>
    %37 = vector.extract_strided_slice %23 {offsets = [0, 8], sizes = [8, 8], strides = [1, 1]} : vector<8x32xf32> to vector<8x8xf32>
    %38 = vector.extract_strided_slice %23 {offsets = [0, 16], sizes = [8, 8], strides = [1, 1]} : vector<8x32xf32> to vector<8x8xf32>
    %39 = vector.extract_strided_slice %23 {offsets = [0, 24], sizes = [8, 8], strides = [1, 1]} : vector<8x32xf32> to vector<8x8xf32>
    %40 = vector.shape_cast %36 : vector<8x8xf32> to vector<1x8x8xf32>
    %41 = vector.shape_cast %37 : vector<8x8xf32> to vector<1x8x8xf32>
    %42 = vector.shape_cast %38 : vector<8x8xf32> to vector<1x8x8xf32>
    %43 = vector.shape_cast %39 : vector<8x8xf32> to vector<1x8x8xf32>
    %44 = tpu.concatenate %40, %41, %42, %43 in 0 : vector<1x8x8xf32>, vector<1x8x8xf32>, vector<1x8x8xf32>, vector<1x8x8xf32> -> vector<4x8x8xf32>
    %45 = vector.extract_strided_slice %24 {offsets = [0, 0], sizes = [8, 8], strides = [1, 1]} : vector<8x32xf32> to vector<8x8xf32>
    %46 = vector.extract_strided_slice %24 {offsets = [0, 8], sizes = [8, 8], strides = [1, 1]} : vector<8x32xf32> to vector<8x8xf32>
    %47 = vector.extract_strided_slice %24 {offsets = [0, 16], sizes = [8, 8], strides = [1, 1]} : vector<8x32xf32> to vector<8x8xf32>
    %48 = vector.extract_strided_slice %24 {offsets = [0, 24], sizes = [8, 8], strides = [1, 1]} : vector<8x32xf32> to vector<8x8xf32>
    %49 = vector.shape_cast %45 : vector<8x8xf32> to vector<1x8x8xf32>
    %50 = vector.shape_cast %46 : vector<8x8xf32> to vector<1x8x8xf32>
    %51 = vector.shape_cast %47 : vector<8x8xf32> to vector<1x8x8xf32>
    %52 = vector.shape_cast %48 : vector<8x8xf32> to vector<1x8x8xf32>
    %53 = tpu.concatenate %49, %50, %51, %52 in 0 : vector<1x8x8xf32>, vector<1x8x8xf32>, vector<1x8x8xf32>, vector<1x8x8xf32> -> vector<4x8x8xf32>
    "tpu.trace_start"() <{level = 10 : i32, message = "hqd,hkd->hqk"}> : () -> ()
    %cst_21 = arith.constant dense<0.000000e+00> : vector<4x8x8xf32>
    %54 = tpu.matmul %35, %44, %cst_21 {dimension_numbers = #tpu.dot_dimension_numbers<[2], [2], [1], [1], [0, 0, 0, 1, 1, 1], [0], [0]>} : vector<4x8x8xf32>, vector<4x8x8xf32>, vector<4x8x8xf32> -> vector<4x8x8xf32>
    "tpu.trace_stop"() : () -> ()
    %55 = vector.shape_cast %12 : vector<8x8xi1> to vector<1x8x8xi1>
    %cst_22 = arith.constant -1.000000e+10 : f32
    %56 = vector.shape_cast %55 : vector<1x8x8xi1> to vector<1x8x8xi1>
    %57 = vector.broadcast %56 : vector<1x8x8xi1> to vector<4x8x8xi1>
    %58 = vector.broadcast %cst_22 : f32 to vector<4x8x8xf32>
    %59 = arith.select %57, %58, %54 : vector<4x8x8xi1>, vector<4x8x8xf32>
    %cst_23 = arith.constant dense<0xFF800000> : vector<4x8xf32>
    %60 = vector.multi_reduction <maximumf>, %59, %cst_23 [2] : vector<4x8x8xf32> to vector<4x8xf32>
    %61 = vector.shape_cast %60 : vector<4x8xf32> to vector<4x8x1xf32>
    %62 = vector.broadcast %61 : vector<4x8x1xf32> to vector<4x8x8xf32>
    %63 = arith.subf %59, %62 : vector<4x8x8xf32>
    %64 = math.exp %63 : vector<4x8x8xf32>
    %cst_24 = arith.constant dense<0.000000e+00> : vector<4x8xf32>
    %65 = vector.multi_reduction <add>, %64, %cst_24 [2] : vector<4x8x8xf32> to vector<4x8xf32>
    %66 = vector.shape_cast %65 : vector<4x8xf32> to vector<4x8x1xf32>
    %67 = tpu.reciprocal %66 {approx = true} : vector<4x8x1xf32> -> vector<4x8x1xf32>
    %68 = vector.broadcast %67 : vector<4x8x1xf32> to vector<4x8x8xf32>
    %69 = arith.mulf %64, %68 : vector<4x8x8xf32>
    "tpu.trace_start"() <{level = 10 : i32, message = "hqk,hkd->hqd"}> : () -> ()
    %cst_25 = arith.constant dense<0.000000e+00> : vector<4x8x8xf32>
    %70 = tpu.matmul %69, %53, %cst_25 {dimension_numbers = #tpu.dot_dimension_numbers<[2], [1], [1], [2], [0, 0, 0, 1, 1, 2], [0], [0]>} : vector<4x8x8xf32>, vector<4x8x8xf32>, vector<4x8x8xf32> -> vector<4x8x8xf32>
    "tpu.trace_stop"() : () -> ()
    "tpu.trace_start"() <{level = 10 : i32, message = "hqd,hdc->hqc"}> : () -> ()
    %cst_26 = arith.constant dense<0.000000e+00> : vector<4x8x32xf32>
    %71 = tpu.matmul %70, %25, %cst_26 {dimension_numbers = #tpu.dot_dimension_numbers<[2], [1], [1], [2], [0, 0, 0, 1, 1, 2], [0], [0]>} : vector<4x8x8xf32>, vector<4x8x32xf32>, vector<4x8x32xf32> -> vector<4x8x32xf32>
    "tpu.trace_stop"() : () -> ()
    %cst_27 = arith.constant dense<0.000000e+00> : vector<8x32xf32>
    %72 = vector.multi_reduction <add>, %71, %cst_27 [0] : vector<4x8x32xf32> to vector<8x32xf32>
    %73 = vector.broadcast %26 : vector<1x32xf32> to vector<8x32xf32>
    %74 = arith.addf %72, %73 : vector<8x32xf32>
    %75 = arith.addf %74, %1 : vector<8x32xf32>
    %c0_28 = arith.constant 0 : index
    %c0_29 = arith.constant 0 : index
    %76 = vector.load %arg9[%c0_28, %c0_29] : memref<1x32xf32, #tpu.memory_space<vmem>>, vector<1x32xf32>
    %c0_30 = arith.constant 0 : index
    %c0_31 = arith.constant 0 : index
    %77 = vector.load %arg10[%c0_30, %c0_31] : memref<1x32xf32, #tpu.memory_space<vmem>>, vector<1x32xf32>
    %cst_32 = arith.constant dense<0.000000e+00> : vector<8xf32>
    %78 = vector.multi_reduction <add>, %75, %cst_32 [1] : vector<8x32xf32> to vector<8xf32>
    %79 = vector.shape_cast %78 : vector<8xf32> to vector<8x1xf32>
    %cst_33 = arith.constant 3.200000e+01 : f32
    %80 = vector.broadcast %cst_33 : f32 to vector<8x1xf32>
    %81 = arith.divf %79, %80 : vector<8x1xf32>
    %82 = arith.mulf %75, %75 : vector<8x32xf32>
    %cst_34 = arith.constant dense<0.000000e+00> : vector<8xf32>
    %83 = vector.multi_reduction <add>, %82, %cst_34 [1] : vector<8x32xf32> to vector<8xf32>
    %84 = vector.shape_cast %83 : vector<8xf32> to vector<8x1xf32>
    %cst_35 = arith.constant 3.200000e+01 : f32
    %85 = vector.broadcast %cst_35 : f32 to vector<8x1xf32>
    %86 = arith.divf %84, %85 : vector<8x1xf32>
    %87 = arith.mulf %81, %81 : vector<8x1xf32>
    %88 = arith.subf %86, %87 : vector<8x1xf32>
    %cst_36 = arith.constant 9.99999974E-6 : f32
    %89 = vector.broadcast %cst_36 : f32 to vector<8x1xf32>
    %90 = arith.addf %88, %89 : vector<8x1xf32>
    %91 = math.rsqrt %90 : vector<8x1xf32>
    %92 = vector.broadcast %81 : vector<8x1xf32> to vector<8x32xf32>
    %93 = arith.subf %75, %92 : vector<8x32xf32>
    %94 = vector.broadcast %91 : vector<8x1xf32> to vector<8x32xf32>
    %95 = arith.mulf %93, %94 : vector<8x32xf32>
    %96 = vector.broadcast %76 : vector<1x32xf32> to vector<8x32xf32>
    %97 = arith.mulf %95, %96 : vector<8x32xf32>
    %98 = vector.broadcast %77 : vector<1x32xf32> to vector<8x32xf32>
    %99 = arith.addf %97, %98 : vector<8x32xf32>
    %c0_37 = arith.constant 0 : index
    %c0_38 = arith.constant 0 : index
    %100 = vector.load %arg11[%c0_37, %c0_38] : memref<32x32xf32, #tpu.memory_space<vmem>>, vector<32x32xf32>
    %cst_39 = arith.constant dense<0.000000e+00> : vector<8x32xf32>
    %101 = tpu.matmul %99, %100, %cst_39 {dimension_numbers = #tpu.dot_dimension_numbers<[1], [0], [0], [1], [0, 0, 1, 1], [], []>} : vector<8x32xf32>, vector<32x32xf32>, vector<8x32xf32> -> vector<8x32xf32>
    %c0_40 = arith.constant 0 : index
    %c0_41 = arith.constant 0 : index
    %102 = vector.load %arg12[%c0_40, %c0_41] : memref<1x32xf32, #tpu.memory_space<vmem>>, vector<1x32xf32>
    %103 = vector.broadcast %102 : vector<1x32xf32> to vector<8x32xf32>
    %104 = arith.addf %101, %103 : vector<8x32xf32>
    %c0_42 = arith.constant 0 : index
    %c0_43 = arith.constant 0 : index
    %105 = vector.load %arg13[%c0_42, %c0_43] : memref<32x64xf32, #tpu.memory_space<vmem>>, vector<32x64xf32>
    %cst_44 = arith.constant dense<0.000000e+00> : vector<8x64xf32>
    %106 = tpu.matmul %3, %105, %cst_44 {dimension_numbers = #tpu.dot_dimension_numbers<[1], [0], [0], [1], [0, 0, 1, 1], [], []>} : vector<8x32xf32>, vector<32x64xf32>, vector<8x64xf32> -> vector<8x64xf32>
    %c0_45 = arith.constant 0 : index
    %c0_46 = arith.constant 0 : index
    %107 = vector.load %arg14[%c0_45, %c0_46] : memref<1x64xf32, #tpu.memory_space<vmem>>, vector<1x64xf32>
    %108 = vector.broadcast %107 : vector<1x64xf32> to vector<8x64xf32>
    %109 = arith.addf %106, %108 : vector<8x64xf32>
    %110 = vector.extract_strided_slice %109 {offsets = [0, 0], sizes = [8, 32], strides = [1, 1]} : vector<8x64xf32> to vector<8x32xf32>
    %111 = vector.extract_strided_slice %109 {offsets = [0, 32], sizes = [8, 32], strides = [1, 1]} : vector<8x64xf32> to vector<8x32xf32>
    %c0_47 = arith.constant 0 : index
    %c0_48 = arith.constant 0 : index
    %c0_49 = arith.constant 0 : index
    %112 = vector.load %arg15[%c0_47, %c0_48, %c0_49] : memref<4x8x32xf32, #tpu.memory_space<vmem>>, vector<4x8x32xf32>
    %c0_50 = arith.constant 0 : index
    %c0_51 = arith.constant 0 : index
    %113 = vector.load %arg16[%c0_50, %c0_51] : memref<1x32xf32, #tpu.memory_space<vmem>>, vector<1x32xf32>
    %114 = vector.extract_strided_slice %104 {offsets = [0, 0], sizes = [8, 8], strides = [1, 1]} : vector<8x32xf32> to vector<8x8xf32>
    %115 = vector.extract_strided_slice %104 {offsets = [0, 8], sizes = [8, 8], strides = [1, 1]} : vector<8x32xf32> to vector<8x8xf32>
    %116 = vector.extract_strided_slice %104 {offsets = [0, 16], sizes = [8, 8], strides = [1, 1]} : vector<8x32xf32> to vector<8x8xf32>
    %117 = vector.extract_strided_slice %104 {offsets = [0, 24], sizes = [8, 8], strides = [1, 1]} : vector<8x32xf32> to vector<8x8xf32>
    %118 = vector.shape_cast %114 : vector<8x8xf32> to vector<1x8x8xf32>
    %119 = vector.shape_cast %115 : vector<8x8xf32> to vector<1x8x8xf32>
    %120 = vector.shape_cast %116 : vector<8x8xf32> to vector<1x8x8xf32>
    %121 = vector.shape_cast %117 : vector<8x8xf32> to vector<1x8x8xf32>
    %122 = tpu.concatenate %118, %119, %120, %121 in 0 : vector<1x8x8xf32>, vector<1x8x8xf32>, vector<1x8x8xf32>, vector<1x8x8xf32> -> vector<4x8x8xf32>
    %123 = vector.extract_strided_slice %110 {offsets = [0, 0], sizes = [8, 8], strides = [1, 1]} : vector<8x32xf32> to vector<8x8xf32>
    %124 = vector.extract_strided_slice %110 {offsets = [0, 8], sizes = [8, 8], strides = [1, 1]} : vector<8x32xf32> to vector<8x8xf32>
    %125 = vector.extract_strided_slice %110 {offsets = [0, 16], sizes = [8, 8], strides = [1, 1]} : vector<8x32xf32> to vector<8x8xf32>
    %126 = vector.extract_strided_slice %110 {offsets = [0, 24], sizes = [8, 8], strides = [1, 1]} : vector<8x32xf32> to vector<8x8xf32>
    %127 = vector.shape_cast %123 : vector<8x8xf32> to vector<1x8x8xf32>
    %128 = vector.shape_cast %124 : vector<8x8xf32> to vector<1x8x8xf32>
    %129 = vector.shape_cast %125 : vector<8x8xf32> to vector<1x8x8xf32>
    %130 = vector.shape_cast %126 : vector<8x8xf32> to vector<1x8x8xf32>
    %131 = tpu.concatenate %127, %128, %129, %130 in 0 : vector<1x8x8xf32>, vector<1x8x8xf32>, vector<1x8x8xf32>, vector<1x8x8xf32> -> vector<4x8x8xf32>
    %132 = vector.extract_strided_slice %111 {offsets = [0, 0], sizes = [8, 8], strides = [1, 1]} : vector<8x32xf32> to vector<8x8xf32>
    %133 = vector.extract_strided_slice %111 {offsets = [0, 8], sizes = [8, 8], strides = [1, 1]} : vector<8x32xf32> to vector<8x8xf32>
    %134 = vector.extract_strided_slice %111 {offsets = [0, 16], sizes = [8, 8], strides = [1, 1]} : vector<8x32xf32> to vector<8x8xf32>
    %135 = vector.extract_strided_slice %111 {offsets = [0, 24], sizes = [8, 8], strides = [1, 1]} : vector<8x32xf32> to vector<8x8xf32>
    %136 = vector.shape_cast %132 : vector<8x8xf32> to vector<1x8x8xf32>
    %137 = vector.shape_cast %133 : vector<8x8xf32> to vector<1x8x8xf32>
    %138 = vector.shape_cast %134 : vector<8x8xf32> to vector<1x8x8xf32>
    %139 = vector.shape_cast %135 : vector<8x8xf32> to vector<1x8x8xf32>
    %140 = tpu.concatenate %136, %137, %138, %139 in 0 : vector<1x8x8xf32>, vector<1x8x8xf32>, vector<1x8x8xf32>, vector<1x8x8xf32> -> vector<4x8x8xf32>
    "tpu.trace_start"() <{level = 10 : i32, message = "hqd,hkd->hqk"}> : () -> ()
    %cst_52 = arith.constant dense<0.000000e+00> : vector<4x8x8xf32>
    %141 = tpu.matmul %122, %131, %cst_52 {dimension_numbers = #tpu.dot_dimension_numbers<[2], [2], [1], [1], [0, 0, 0, 1, 1, 1], [0], [0]>} : vector<4x8x8xf32>, vector<4x8x8xf32>, vector<4x8x8xf32> -> vector<4x8x8xf32>
    "tpu.trace_stop"() : () -> ()
    %142 = vector.shape_cast %16 : vector<1x8xi1> to vector<1x1x8xi1>
    %cst_53 = arith.constant -1.000000e+10 : f32
    %143 = vector.shape_cast %142 : vector<1x1x8xi1> to vector<1x1x8xi1>
    %144 = vector.broadcast %143 : vector<1x1x8xi1> to vector<4x8x8xi1>
    %145 = vector.broadcast %cst_53 : f32 to vector<4x8x8xf32>
    %146 = arith.select %144, %145, %141 : vector<4x8x8xi1>, vector<4x8x8xf32>
    %cst_54 = arith.constant dense<0xFF800000> : vector<4x8xf32>
    %147 = vector.multi_reduction <maximumf>, %146, %cst_54 [2] : vector<4x8x8xf32> to vector<4x8xf32>
    %148 = vector.shape_cast %147 : vector<4x8xf32> to vector<4x8x1xf32>
    %149 = vector.broadcast %148 : vector<4x8x1xf32> to vector<4x8x8xf32>
    %150 = arith.subf %146, %149 : vector<4x8x8xf32>
    %151 = math.exp %150 : vector<4x8x8xf32>
    %cst_55 = arith.constant dense<0.000000e+00> : vector<4x8xf32>
    %152 = vector.multi_reduction <add>, %151, %cst_55 [2] : vector<4x8x8xf32> to vector<4x8xf32>
    %153 = vector.shape_cast %152 : vector<4x8xf32> to vector<4x8x1xf32>
    %154 = tpu.reciprocal %153 {approx = true} : vector<4x8x1xf32> -> vector<4x8x1xf32>
    %155 = vector.broadcast %154 : vector<4x8x1xf32> to vector<4x8x8xf32>
    %156 = arith.mulf %151, %155 : vector<4x8x8xf32>
    "tpu.trace_start"() <{level = 10 : i32, message = "hqk,hkd->hqd"}> : () -> ()
    %cst_56 = arith.constant dense<0.000000e+00> : vector<4x8x8xf32>
    %157 = tpu.matmul %156, %140, %cst_56 {dimension_numbers = #tpu.dot_dimension_numbers<[2], [1], [1], [2], [0, 0, 0, 1, 1, 2], [0], [0]>} : vector<4x8x8xf32>, vector<4x8x8xf32>, vector<4x8x8xf32> -> vector<4x8x8xf32>
    "tpu.trace_stop"() : () -> ()
    "tpu.trace_start"() <{level = 10 : i32, message = "hqd,hdc->hqc"}> : () -> ()
    %cst_57 = arith.constant dense<0.000000e+00> : vector<4x8x32xf32>
    %158 = tpu.matmul %157, %112, %cst_57 {dimension_numbers = #tpu.dot_dimension_numbers<[2], [1], [1], [2], [0, 0, 0, 1, 1, 2], [0], [0]>} : vector<4x8x8xf32>, vector<4x8x32xf32>, vector<4x8x32xf32> -> vector<4x8x32xf32>
    "tpu.trace_stop"() : () -> ()
    %cst_58 = arith.constant dense<0.000000e+00> : vector<8x32xf32>
    %159 = vector.multi_reduction <add>, %158, %cst_58 [0] : vector<4x8x32xf32> to vector<8x32xf32>
    %160 = vector.broadcast %113 : vector<1x32xf32> to vector<8x32xf32>
    %161 = arith.addf %159, %160 : vector<8x32xf32>
    %162 = arith.addf %161, %99 : vector<8x32xf32>
    %c0_59 = arith.constant 0 : index
    %c0_60 = arith.constant 0 : index
    %163 = vector.load %arg17[%c0_59, %c0_60] : memref<1x32xf32, #tpu.memory_space<vmem>>, vector<1x32xf32>
    %c0_61 = arith.constant 0 : index
    %c0_62 = arith.constant 0 : index
    %164 = vector.load %arg18[%c0_61, %c0_62] : memref<1x32xf32, #tpu.memory_space<vmem>>, vector<1x32xf32>
    %cst_63 = arith.constant dense<0.000000e+00> : vector<8xf32>
    %165 = vector.multi_reduction <add>, %162, %cst_63 [1] : vector<8x32xf32> to vector<8xf32>
    %166 = vector.shape_cast %165 : vector<8xf32> to vector<8x1xf32>
    %cst_64 = arith.constant 3.200000e+01 : f32
    %167 = vector.broadcast %cst_64 : f32 to vector<8x1xf32>
    %168 = arith.divf %166, %167 : vector<8x1xf32>
    %169 = arith.mulf %162, %162 : vector<8x32xf32>
    %cst_65 = arith.constant dense<0.000000e+00> : vector<8xf32>
    %170 = vector.multi_reduction <add>, %169, %cst_65 [1] : vector<8x32xf32> to vector<8xf32>
    %171 = vector.shape_cast %170 : vector<8xf32> to vector<8x1xf32>
    %cst_66 = arith.constant 3.200000e+01 : f32
    %172 = vector.broadcast %cst_66 : f32 to vector<8x1xf32>
    %173 = arith.divf %171, %172 : vector<8x1xf32>
    %174 = arith.mulf %168, %168 : vector<8x1xf32>
    %175 = arith.subf %173, %174 : vector<8x1xf32>
    %cst_67 = arith.constant 9.99999974E-6 : f32
    %176 = vector.broadcast %cst_67 : f32 to vector<8x1xf32>
    %177 = arith.addf %175, %176 : vector<8x1xf32>
    %178 = math.rsqrt %177 : vector<8x1xf32>
    %179 = vector.broadcast %168 : vector<8x1xf32> to vector<8x32xf32>
    %180 = arith.subf %162, %179 : vector<8x32xf32>
    %181 = vector.broadcast %178 : vector<8x1xf32> to vector<8x32xf32>
    %182 = arith.mulf %180, %181 : vector<8x32xf32>
    %183 = vector.broadcast %163 : vector<1x32xf32> to vector<8x32xf32>
    %184 = arith.mulf %182, %183 : vector<8x32xf32>
    %185 = vector.broadcast %164 : vector<1x32xf32> to vector<8x32xf32>
    %186 = arith.addf %184, %185 : vector<8x32xf32>
    %c0_68 = arith.constant 0 : index
    %c0_69 = arith.constant 0 : index
    %187 = vector.load %arg19[%c0_68, %c0_69] : memref<32x128xf32, #tpu.memory_space<vmem>>, vector<32x128xf32>
    %cst_70 = arith.constant dense<0.000000e+00> : vector<8x128xf32>
    %188 = tpu.matmul %186, %187, %cst_70 {dimension_numbers = #tpu.dot_dimension_numbers<[1], [0], [0], [1], [0, 0, 1, 1], [], []>} : vector<8x32xf32>, vector<32x128xf32>, vector<8x128xf32> -> vector<8x128xf32>
    %c0_71 = arith.constant 0 : index
    %c0_72 = arith.constant 0 : index
    %189 = vector.load %arg20[%c0_71, %c0_72] : memref<1x128xf32, #tpu.memory_space<vmem>>, vector<1x128xf32>
    %190 = vector.broadcast %189 : vector<1x128xf32> to vector<8x128xf32>
    %191 = arith.addf %188, %190 : vector<8x128xf32>
    %cst_73 = arith.constant 0.000000e+00 : f32
    %192 = vector.broadcast %cst_73 : f32 to vector<8x128xf32>
    %193 = arith.maximumf %191, %192 : vector<8x128xf32>
    %c0_74 = arith.constant 0 : index
    %c0_75 = arith.constant 0 : index
    %194 = vector.load %arg21[%c0_74, %c0_75] : memref<128x32xf32, #tpu.memory_space<vmem>>, vector<128x32xf32>
    %cst_76 = arith.constant dense<0.000000e+00> : vector<8x32xf32>
    %195 = tpu.matmul %193, %194, %cst_76 {dimension_numbers = #tpu.dot_dimension_numbers<[1], [0], [0], [1], [0, 0, 1, 1], [], []>} : vector<8x128xf32>, vector<128x32xf32>, vector<8x32xf32> -> vector<8x32xf32>
    %c0_77 = arith.constant 0 : index
    %c0_78 = arith.constant 0 : index
    %196 = vector.load %arg22[%c0_77, %c0_78] : memref<1x32xf32, #tpu.memory_space<vmem>>, vector<1x32xf32>
    %197 = vector.broadcast %196 : vector<1x32xf32> to vector<8x32xf32>
    %198 = arith.addf %195, %197 : vector<8x32xf32>
    %199 = arith.addf %198, %186 : vector<8x32xf32>
    %c0_79 = arith.constant 0 : index
    %c0_80 = arith.constant 0 : index
    %200 = vector.load %arg23[%c0_79, %c0_80] : memref<1x32xf32, #tpu.memory_space<vmem>>, vector<1x32xf32>
    %c0_81 = arith.constant 0 : index
    %c0_82 = arith.constant 0 : index
    %201 = vector.load %arg24[%c0_81, %c0_82] : memref<1x32xf32, #tpu.memory_space<vmem>>, vector<1x32xf32>
    %cst_83 = arith.constant dense<0.000000e+00> : vector<8xf32>
    %202 = vector.multi_reduction <add>, %199, %cst_83 [1] : vector<8x32xf32> to vector<8xf32>
    %203 = vector.shape_cast %202 : vector<8xf32> to vector<8x1xf32>
    %cst_84 = arith.constant 3.200000e+01 : f32
    %204 = vector.broadcast %cst_84 : f32 to vector<8x1xf32>
    %205 = arith.divf %203, %204 : vector<8x1xf32>
    %206 = arith.mulf %199, %199 : vector<8x32xf32>
    %cst_85 = arith.constant dense<0.000000e+00> : vector<8xf32>
    %207 = vector.multi_reduction <add>, %206, %cst_85 [1] : vector<8x32xf32> to vector<8xf32>
    %208 = vector.shape_cast %207 : vector<8xf32> to vector<8x1xf32>
    %cst_86 = arith.constant 3.200000e+01 : f32
    %209 = vector.broadcast %cst_86 : f32 to vector<8x1xf32>
    %210 = arith.divf %208, %209 : vector<8x1xf32>
    %211 = arith.mulf %205, %205 : vector<8x1xf32>
    %212 = arith.subf %210, %211 : vector<8x1xf32>
    %cst_87 = arith.constant 9.99999974E-6 : f32
    %213 = vector.broadcast %cst_87 : f32 to vector<8x1xf32>
    %214 = arith.addf %212, %213 : vector<8x1xf32>
    %215 = math.rsqrt %214 : vector<8x1xf32>
    %216 = vector.broadcast %205 : vector<8x1xf32> to vector<8x32xf32>
    %217 = arith.subf %199, %216 : vector<8x32xf32>
    %218 = vector.broadcast %215 : vector<8x1xf32> to vector<8x32xf32>
    %219 = arith.mulf %217, %218 : vector<8x32xf32>
    %220 = vector.broadcast %200 : vector<1x32xf32> to vector<8x32xf32>
    %221 = arith.mulf %219, %220 : vector<8x32xf32>
    %222 = vector.broadcast %201 : vector<1x32xf32> to vector<8x32xf32>
    %223 = arith.addf %221, %222 : vector<8x32xf32>
    %c0_88 = arith.constant 0 : index
    %c0_89 = arith.constant 0 : index
    %c0_90 = arith.constant 0 : index
    %224 = vector.load %arg25[%c0_88, %c0_89, %c0_90] : memref<1x8x32xf32, #tpu.memory_space<vmem>>, vector<1x8x32xf32>
    %225 = vector.shape_cast %224 : vector<1x8x32xf32> to vector<8x32xf32>
    %226 = vector.shape_cast %223 : vector<8x32xf32> to vector<1x8x32xf32>
    tpu.vector_store %arg25[%c0_88, %c0_89, %c0_90], %226 {strides = array<i32>} : memref<1x8x32xf32, #tpu.memory_space<vmem>>, vector<1x8x32xf32>,
    return
  }
  func.func @transform_0(%arg0: i32) -> (i32, i32, i32) {
    %c0_i32 = arith.constant 0 : i32
    %c0_i32_0 = arith.constant 0 : i32
    %c0_i32_1 = arith.constant 0 : i32
    return %arg0, %c0_i32, %c0_i32_0 : i32, i32, i32
  }
  func.func @transform_1(%arg0: i32) -> (i32, i32, i32) {
    %c0_i32 = arith.constant 0 : i32
    %c0_i32_0 = arith.constant 0 : i32
    %c0_i32_1 = arith.constant 0 : i32
    return %arg0, %c0_i32, %c0_i32_0 : i32, i32, i32
  }
  func.func @transform_2(%arg0: i32) -> (i32, i32, i32) {
    %c0_i32 = arith.constant 0 : i32
    %c0_i32_0 = arith.constant 0 : i32
    %c0_i32_1 = arith.constant 0 : i32
    return %arg0, %c0_i32, %c0_i32_0 : i32, i32, i32
  }
  func.func @transform_3(%arg0: i32) -> (i32, i32, i32) {
    %c0_i32 = arith.constant 0 : i32
    %c0_i32_0 = arith.constant 0 : i32
    %c0_i32_1 = arith.constant 0 : i32
    return %arg0, %c0_i32, %c0_i32_0 : i32, i32, i32
  }
  func.func @transform_4(%arg0: i32) -> (i32, i32) {
    %c0_i32 = arith.constant 0 : i32
    %c0_i32_0 = arith.constant 0 : i32
    %c0_i32_1 = arith.constant 0 : i32
    return %c0_i32, %c0_i32_0 : i32, i32
  }
  func.func @transform_5(%arg0: i32) -> (i32, i32) {
    %c0_i32 = arith.constant 0 : i32
    %c0_i32_0 = arith.constant 0 : i32
    %c0_i32_1 = arith.constant 0 : i32
    return %c0_i32, %c0_i32_0 : i32, i32
  }
  func.func @transform_6(%arg0: i32) -> (i32, i32, i32) {
    %c0_i32 = arith.constant 0 : i32
    %c0_i32_0 = arith.constant 0 : i32
    %c0_i32_1 = arith.constant 0 : i32
    %c0_i32_2 = arith.constant 0 : i32
    return %c0_i32, %c0_i32_0, %c0_i32_1 : i32, i32, i32
  }
  func.func @transform_7(%arg0: i32) -> (i32, i32) {
    %c0_i32 = arith.constant 0 : i32
    %c0_i32_0 = arith.constant 0 : i32
    %c0_i32_1 = arith.constant 0 : i32
    return %c0_i32, %c0_i32_0 : i32, i32
  }
  func.func @transform_8(%arg0: i32) -> (i32, i32) {
    %c0_i32 = arith.constant 0 : i32
    %c0_i32_0 = arith.constant 0 : i32
    %c0_i32_1 = arith.constant 0 : i32
    return %c0_i32, %c0_i32_0 : i32, i32
  }
  func.func @transform_9(%arg0: i32) -> (i32, i32) {
    %c0_i32 = arith.constant 0 : i32
    %c0_i32_0 = arith.constant 0 : i32
    %c0_i32_1 = arith.constant 0 : i32
    return %c0_i32, %c0_i32_0 : i32, i32
  }
  func.func @transform_10(%arg0: i32) -> (i32, i32) {
    %c0_i32 = arith.constant 0 : i32
    %c0_i32_0 = arith.constant 0 : i32
    %c0_i32_1 = arith.constant 0 : i32
    return %c0_i32, %c0_i32_0 : i32, i32
  }
  func.func @transform_11(%arg0: i32) -> (i32, i32) {
    %c0_i32 = arith.constant 0 : i32
    %c0_i32_0 = arith.constant 0 : i32
    %c0_i32_1 = arith.constant 0 : i32
    return %c0_i32, %c0_i32_0 : i32, i32
  }
  func.func @transform_12(%arg0: i32) -> (i32, i32) {
    %c0_i32 = arith.constant 0 : i32
    %c0_i32_0 = arith.constant 0 : i32
    %c0_i32_1 = arith.constant 0 : i32
    return %c0_i32, %c0_i32_0 : i32, i32
  }
  func.func @transform_13(%arg0: i32) -> (i32, i32) {
    %c0_i32 = arith.constant 0 : i32
    %c0_i32_0 = arith.constant 0 : i32
    %c0_i32_1 = arith.constant 0 : i32
    return %c0_i32, %c0_i32_0 : i32, i32
  }
  func.func @transform_14(%arg0: i32) -> (i32, i32, i32) {
    %c0_i32 = arith.constant 0 : i32
    %c0_i32_0 = arith.constant 0 : i32
    %c0_i32_1 = arith.constant 0 : i32
    %c0_i32_2 = arith.constant 0 : i32
    return %c0_i32, %c0_i32_0, %c0_i32_1 : i32, i32, i32
  }
  func.func @transform_15(%arg0: i32) -> (i32, i32) {
    %c0_i32 = arith.constant 0 : i32
    %c0_i32_0 = arith.constant 0 : i32
    %c0_i32_1 = arith.constant 0 : i32
    return %c0_i32, %c0_i32_0 : i32, i32
  }
  func.func @transform_16(%arg0: i32) -> (i32, i32) {
    %c0_i32 = arith.constant 0 : i32
    %c0_i32_0 = arith.constant 0 : i32
    %c0_i32_1 = arith.constant 0 : i32
    return %c0_i32, %c0_i32_0 : i32, i32
  }
  func.func @transform_17(%arg0: i32) -> (i32, i32) {
    %c0_i32 = arith.constant 0 : i32
    %c0_i32_0 = arith.constant 0 : i32
    %c0_i32_1 = arith.constant 0 : i32
    return %c0_i32, %c0_i32_0 : i32, i32
  }
  func.func @transform_18(%arg0: i32) -> (i32, i32) {
    %c0_i32 = arith.constant 0 : i32
    %c0_i32_0 = arith.constant 0 : i32
    %c0_i32_1 = arith.constant 0 : i32
    return %c0_i32, %c0_i32_0 : i32, i32
  }
  func.func @transform_19(%arg0: i32) -> (i32, i32) {
    %c0_i32 = arith.constant 0 : i32
    %c0_i32_0 = arith.constant 0 : i32
    %c0_i32_1 = arith.constant 0 : i32
    return %c0_i32, %c0_i32_0 : i32, i32
  }
  func.func @transform_20(%arg0: i32) -> (i32, i32) {
    %c0_i32 = arith.constant 0 : i32
    %c0_i32_0 = arith.constant 0 : i32
    %c0_i32_1 = arith.constant 0 : i32
    return %c0_i32, %c0_i32_0 : i32, i32
  }
  func.func @transform_21(%arg0: i32) -> (i32, i32) {
    %c0_i32 = arith.constant 0 : i32
    %c0_i32_0 = arith.constant 0 : i32
    %c0_i32_1 = arith.constant 0 : i32
    return %c0_i32, %c0_i32_0 : i32, i32
  }
  func.func @transform_22(%arg0: i32) -> (i32, i32) {
    %c0_i32 = arith.constant 0 : i32
    %c0_i32_0 = arith.constant 0 : i32
    %c0_i32_1 = arith.constant 0 : i32
    return %c0_i32, %c0_i32_0 : i32, i32
  }
  func.func @transform_23(%arg0: i32) -> (i32, i32) {
    %c0_i32 = arith.constant 0 : i32
    %c0_i32_0 = arith.constant 0 : i32
    %c0_i32_1 = arith.constant 0 : i32
    return %c0_i32, %c0_i32_0 : i32, i32
  }
  func.func @transform_24(%arg0: i32) -> (i32, i32, i32) {
    %c0_i32 = arith.constant 0 : i32
    %c0_i32_0 = arith.constant 0 : i32
    %c0_i32_1 = arith.constant 0 : i32
    return %arg0, %c0_i32, %c0_i32_0 : i32, i32, i32
  }
}

</mosaic_0001>

<bundles_post_ra>
// kernel: transformer_forward.9
= control target key start
LH: loop header
LB: loop body
LE: loop exit
PB: predicated region body
PF: predicated region fallthrough
CT: control target
= control target key end

     0   :  { %s158_s0 = inlined_call_operand.vmem [shape: f32[16,32], index: 0, kind: input, shape index: {}]   ;;  %s159_s1 = inlined_call_operand.vmem [shape: f32[32,128], index: 1, kind: input, shape index: {}]   ;;  %s160_s2 = inlined_call_operand.vmem [shape: f32[1,128], index: 2, kind: input, shape index: {}]   ;;  %s161_s3 = inlined_call_operand.hbm [shape: f32[16,128], index: 3, kind: output, shape index: {}]  }
   0x1   :  { %v20_v0 = vld [vmem:[%s159_s1 + $0x18] sm:$0xff]  ;;  %v19_v1 = vld [vmem:[%s159_s1 + $0x10] sm:$0xff]  ;;  %v18_v2 = vld [vmem:[%s159_s1 + $0x8] sm:$0xff] }
   0x2   :  { %44 = vmatpush.msra.mxu0 %v20_v0  ;;  %77 = vmatpush.msra.mxu1 %v20_v0 }
   0x3   :  { %8 = vsyncpa [#allocation3], 0  ;;  %v17_v3 = vld [vmem:[%s159_s1] sm:$0xff]  ;;  %vm25_vm0 = vcmask 261120   ;;  %v16_v5 = vld [vmem:[%s158_s0 + $0x8] sm:$0xff]  ;;  %s111_s1 = smov [#allocation2]  }
   0x4   :  { %45 = vmatpush.msra.mxu0 %v19_v1  ;;  %78 = vmatpush.msra.mxu1 %v19_v1  ;;  %v15_v4 = vld [vmem:[%s158_s0] sm:$0xff]  ;;  %s61_s26 = sshll.u32 %s111_s1, 4  ;;  %s63_s29 = sshll.u32 %s161_s3, 4  ;;  %s62_s26 = int_to_ptr.vmem [resolvable:$true] %s61_s26  ;;  %s64_s29 = int_to_ptr.hbm [resolvable:$true] %s63_s29 }
   0x5   :  { %v84_v6 = vld [vmem:[%s160_s2] ss:$0 sm:$0xff]  ;;  %s112_s0 = smov 128   ;;  %s113_s30 = smov 8  }
   0x6   :  { %46 = vmatpush.msra.mxu0 %v18_v2  ;;  %79 = vmatpush.msra.mxu1 %v18_v2 }
   0x8   :  { %47 = vmatpush.msra.mxu0 %v17_v3  ;;  %80 = vmatpush.msra.mxu1 %v17_v3 }
   0x9   :  { %75 = vmatmul.msk.f32.vlgmr.msra.gmra.mxu0 %vm25_vm0, %v15_v4  ;;  %76 = vmatmul.msk.f32.vlgmr.msra.gmra.mxu1 %vm25_vm0, %v16_v5 }
  0x86   :  { %v49_v7 = vpop.f32.mrf.mxu0  ;;  %v52_v8 = vpop.f32.mrf.mxu1 }
  0x87   :  { %v50_v9 = vadd.f32 %v84_v6, %v49_v7  ;;  %v53_v10 = vadd.f32 %v84_v6, %v52_v8 }
  0x89   :  { %55 = vst [vmem:[#allocation2] sm:$0xff] %v50_v9 }
  0x8a   :  { %56 = vst [vmem:[#allocation2 + $0x8] sm:$0xff] %v53_v10 }
  0x8b   :  { %69 = dma.vmem_to_hbm [thread:$0]  %s62_s26, 256, %s64_s29, [#allocation3], %s112_s0, %s112_s0, %s113_s30  }
  0x8c   :  { %109 = dma.done.wait [#allocation3], 256  }
  0x8d   :  { %110 = vsyncadd [#allocation3], 4294967040 }
  0x8e   :  { %74 = vsyncpa [#allocation3], 1 }

// kernel: transformer_forward.5
= control target key start
LH: loop header
LB: loop body
LE: loop exit
PB: predicated region body
PF: predicated region fallthrough
CT: control target
= control target key end

     0   :  { %s1271_s29 = smov 0   ;;  %s1470_s0 = inlined_call_operand.vmem [shape: f32[2,8,32], index: 0, kind: input, shape index: {}]   ;;  %s1471_s1 = inlined_call_operand.vmem [shape: s32[2,1,8], index: 1, kind: input, shape index: {}]   ;;  %s1472_s2 = inlined_call_operand.vmem [shape: f32[32,96], index: 2, kind: input, shape index: {}]   ;;  %s1473_s3 = inlined_call_operand.vmem [shape: f32[1,96], index: 3, kind: input, shape index: {}]   ;;  %s1474_s4 = inlined_call_operand.vmem [shape: f32[4,8,32], index: 4, kind: input, shape index: {}]   ;;  %s1475_s5 = inlined_call_operand.vmem [shape: f32[1,32], index: 5, kind: input, shape index: {}]   ;;  %s1476_s6 = inlined_call_operand.vmem [shape: f32[1,32], index: 6, kind: input, shape index: {}]   ;;  %s1477_s7 = inlined_call_operand.vmem [shape: f32[1,32], index: 7, kind: input, shape index: {}]   ;;  %s1478_s8 = inlined_call_operand.vmem [shape: f32[32,128], index: 8, kind: input, shape index: {}]   ;;  %s1479_s9 = inlined_call_operand.vmem [shape: f32[1,128], index: 9, kind: input, shape index: {}]   ;;  %s1480_s10 = inlined_call_operand.vmem [shape: f32[128,32], index: 10, kind: input, shape index: {}]   ;;  %s1481_s11 = inlined_call_operand.vmem [shape: f32[1,32], index: 11, kind: input, shape index: {}]   ;;  %s1482_s12 = inlined_call_operand.vmem [shape: f32[1,32], index: 12, kind: input, shape index: {}]   ;;  %s1483_s13 = inlined_call_operand.vmem [shape: f32[1,32], index: 13, kind: input, shape index: {}]   ;;  %s1484_s14 = inlined_call_operand.vmem [shape: f32[2,8,32], index: 14, kind: output, shape index: {}]  }
   0x1 LB: > { %s1099_s30 = sadd.s32 4294967295, %s1187_s29   ;;  %p1103_p0 = scmp.ge.s32.totalorder %s1187_s29, 1  ;;  %s1187_s29 = sphi %s1271_s29, %s24_s29  }
   0x2   : > { %p419_p1 = scmp.lt.s32.totalorder %s1187_s29, 3 }
   0x4   : > { %p420_p2 = pnand %p1103_p0, %p419_p1 }
   0x5   : > { %p466_p3 = scmp.lt.s32.totalorder (!%p420_p2), %s1099_s30, 1  ;;  %s1189_s15 = smov (!%p420_p2), 104  }
   0x6   : > { %423 = sbr.rel (%p420_p2) target bundleno = 1601 (0x641), region = 76  ;;  %s1190_s16 = smov (!%p420_p2), 120  }
   0x7   : > { %s1191_s17 = smov (!%p420_p2), 96   ;;  %s1192_s18 = smov (!%p420_p2), 112  }
   0x8   : > { %s1194_s22 = smov (!%p420_p2), 64  }
   0xb   : > { %v483_v0 = vld [vmem:[%s1472_s2 + $0x18] sm:$0xff]  ;;  %v482_v1 = vld [vmem:[%s1472_s2 + $0x10] sm:$0xff]  ;;  %v481_v2 = vld [vmem:[%s1472_s2 + $0x8] sm:$0xff]  ;;  %s1486_s30 = smov (!%p466_p3, %s1099_s30), 1  ;;  %vm488_vm0 = vcmask 261120   ;;  %vm526_vm1 = vcmask 64512  }
   0xc   : > { %504 = vmatpush.msra.mxu0 %v483_v0  ;;  %v480_v3 = vld [vmem:[%s1472_s2] sm:$0xff]  ;;  %s1104_s23 = sshll.u32 %s1486_s30, 3  ;;  %s472_s21 = scalar_lea.vmem %s1471_s1, %s1486_s30  ;;  %v1193_v16 = vmov 0  }
   0xd   : > { %s469_s26 = scalar_lea.vmem %s1470_s0, %s1104_s23  ;;  %v1151_v5 = vld [vmem:[%s1473_s3] ss:$0 sm:$0xff] }
   0xe   : > { %505 = vmatpush.msra.mxu0 %v482_v1  ;;  %v1299_v4 = vld [vmem:[%s469_s26] sm:$0xff] }
   0xf   : > { %v478_v15 = vld [vmem:[%s472_s21] sm:$0x1] }
  0x10   : > { %506 = vmatpush.msra.mxu0 %v481_v2  ;;  %vm479_vm2 = vcmp.eq.s32.totalorder %v478_v15, 0  ;;  %v512_v0 = vld [vmem:[%s1474_s4] sm:$0xff] }
  0x11   : > { %v629_v17 = vsel %vm479_vm2, 1, %v1193_v16 }
  0x12   : > { %507 = vmatpush.msra.mxu0 %v480_v3  ;;  %v630_v18 = vperm.slane %v629_v17, 0 }
  0x13   : > { %1106 = vmatmul.msk.f32.vlgmr.msra.gmra.mxu0 %vm488_vm0, %v1299_v4 }
  0x14   : > { %vm631_vm3 = vcmp.eq.s32.totalorder %v630_v18, 1 }
  0x90   : > { %v509_v6 = vpop.f32.mrf.mxu0 }
  0x91   : > { %v510_v7 = vadd.f32 %v1151_v5, %v509_v6 }
  0x93   : > { %522 = vrot.lane.b32.xlu1 %v510_v7, %s1189_s15  ;;  %518 = vrot.lane.b32.xlu0 %v510_v7, %s1190_s16 }
  0x9b   : > { %524 = vrot.lane.b32.xlu1 %v510_v7, %s1191_s17  ;;  %520 = vrot.lane.b32.xlu0 %v510_v7, %s1192_s18 }
 0x105   : > { %v1306_v8 = vpop.permute.xlu1 %522  ;;  %v519_v9 = vpop.permute.xlu0 %518 }
 0x106   : > { %603 = vrot.lane.b32.xlu0 %v1306_v8, %s1191_s17  ;;  %551 = vrot.lane.b32.xlu2 %v519_v9, %s1191_s17  ;;  %v1141_v31 = vpack.i.bf16 %v519_v9, %v510_v7 }
 0x10d   : > { %v525_v10 = vpop.permute.xlu1 %524  ;;  %v1309_v11 = vpop.permute.xlu0 %520 }
 0x10e   : > { %1107 = vmatpush.xpose.msk.msra.mxu1 %vm526_vm1, %v525_v10  ;;  %577 = vrot.lane.b32.xlu2 %v1309_v11, %s1191_s17  ;;  %v1146_v55 = vpack.i.bf16 %v1306_v8, %v1309_v11  ;;  %v513_v10 = vld [vmem:[%s1474_s4 + $0x8] sm:$0xff] }
 0x10f   : > { %825 = vmatpush.msra.mxu3 %v513_v10  ;;  %v1154_v10 = vld [vmem:[%s1477_s7] ss:$0 sm:$0xff] }
 0x111   : > { %1108 = vmatmul.msk.f32.vlgmr.msra.gmra.mxu1 %vm526_vm1, %v510_v7 }
 0x160   : > { %v552_v12 = vpop.permute.xlu2 %551 }
 0x161   : > { %1109 = vmatpush.xpose.msk.msra.mxu2 %vm526_vm1, %v552_v12  ;;  %v515_v12 = vld [vmem:[%s1474_s4 + $0x18] sm:$0xff] }
 0x164   : > { %1110 = vmatmul.msk.f32.vlgmr.msra.gmra.mxu2 %vm526_vm1, %v519_v9 }
 0x168   : > { %v578_v13 = vpop.permute.xlu2 %577 }
 0x169   : > { %1111 = vmatpush.xpose.msk.msrb.mxu0 %vm526_vm1, %v578_v13 }
 0x16c   : > { %1112 = vmatmul.msk.f32.vlgmr.msrb.gmra.mxu0 %vm526_vm1, %v1309_v11  ;;  %v514_v11 = vld [vmem:[%s1474_s4 + $0x10] sm:$0xff] }
 0x178   : > { %v604_v14 = vpop.permute.xlu0 %603 }
 0x179   : > { %1113 = vmatpush.xpose.msk.msrb.mxu1 %vm526_vm1, %v604_v14 }
 0x17c   : > { %1114 = vmatmul.msk.f32.vlgmr.msrb.gmra.mxu1 %vm526_vm1, %v1306_v8 }
 0x18e   : > { %v548_v19 = vpop.f32.mrf.mxu1 }
 0x18f   : > { %v632_v20 = vsel %vm631_vm3, -1e+10, %v548_v19 }
 0x190   : > { %v636_v21 = vsel %vm526_vm1, %v632_v20, -inf }
 0x191   : > { %637 = vmax.xlane.f32.xlu1 %v636_v21 }
 0x1e7   : > { %v574_v22 = vpop.f32.mrf.mxu2 }
 0x1e8   : > { %v633_v23 = vsel %vm631_vm3, -1e+10, %v574_v22 }
 0x1e9   : > { %v600_v24 = vpop.f32.mrf.mxu0  ;;  %v639_v25 = vsel %vm526_vm1, %v633_v23, -inf }
 0x1ea   : > { %v634_v26 = vsel %vm631_vm3, -1e+10, %v600_v24  ;;  %640 = vmax.xlane.f32.xlu2 %v639_v25  ;;  %v1152_v25 = vld [vmem:[%s1475_s5] ss:$0 sm:$0xff] }
 0x1eb   : > { %v642_v27 = vsel %vm526_vm1, %v634_v26, -inf }
 0x1ec   : > { %643 = vmax.xlane.f32.xlu0 %v642_v27 }
 0x1f9   : > { %v626_v28 = vpop.f32.mrf.mxu1 }
 0x1fa   : > { %v635_v29 = vsel %vm631_vm3, -1e+10, %v626_v28 }
 0x1fb   : > { %v645_v30 = vsel %vm526_vm1, %v635_v29, -inf }
 0x1fc   : > { %646 = vmax.xlane.f32.xlu2 %v645_v30 }
 0x200   : > { %1142 = vrot.lane.b32.xlu0 %v1141_v31, %s1194_s22 }
 0x204   : > { %v638_v32 = vpop.xlane.xlu1 %637 }
 0x205   : > { %v648_v33 = vsub.f32 %v632_v20, %v638_v32 }
 0x207   : > { %v652_v34 = vmul.f32 1.442695, %v648_v33  ;;  %v1195_v33 = vmov 32.0  }
 0x209   : > { %1159 = vpow2.f32 %v652_v34 }
 0x20f   : > { %v1160_v35 = vpop.eup %1159 }
 0x210   : > { %v660_v36 = vsel %vm526_vm1, %v1160_v35, 0.0 }
 0x211   : > { %661 = vadd.xlane.f32.xlu1 %v660_v36 }
 0x25d   : > { %v641_v37 = vpop.xlane.xlu2 %640 }
 0x25e   : > { %v649_v38 = vsub.f32 %v633_v23, %v641_v37 }
 0x25f   : > { %v644_v39 = vpop.xlane.xlu0 %643 }
 0x260   : > { %v654_v40 = vmul.f32 1.442695, %v649_v38  ;;  %v650_v41 = vsub.f32 %v634_v26, %v644_v39  ;;  %v931_v39 = vld [vmem:[%s1478_s8 + $0x10] sm:$0xff] }
 0x262   : > { %1161 = vpow2.f32 %v654_v40  ;;  %v656_v42 = vmul.f32 1.442695, %v650_v41  ;;  %v930_v40 = vld [vmem:[%s1478_s8 + $0x8] sm:$0xff]  ;;  %v929_v41 = vld [vmem:[%s1478_s8] sm:$0xff] }
 0x264   : > { %1163 = vpow2.f32 %v656_v42 }
 0x268   : > { %v1162_v43 = vpop.eup %1161 }
 0x269   : > { %v663_v44 = vsel %vm526_vm1, %v1162_v43, 0.0 }
 0x26a   : > { %v1164_v45 = vpop.eup %1163  ;;  %664 = vadd.xlane.f32.xlu2 %v663_v44 }
 0x26b   : > { %v666_v46 = vsel %vm526_vm1, %v1164_v45, 0.0 }
 0x26c   : > { %667 = vadd.xlane.f32.xlu1 %v666_v46  ;;  %v975_v46 = vld [vmem:[%s1480_s10 + $0x70] sm:$0xff] }
 0x26f   : > { %v647_v47 = vpop.xlane.xlu2 %646 }
 0x270   : > { %v651_v48 = vsub.f32 %v635_v29, %v647_v47 }
 0x272   : > { %v658_v49 = vmul.f32 1.442695, %v651_v48  ;;  %v1143_v50 = vpop.permute.xlu0 %1142 }
 0x273   : > { %v1145_v51 = vunpack.i.h.bf16 %v1143_v50  ;;  %v1144_v52 = vunpack.i.l.bf16 %v1143_v50  ;;  %v974_v50 = vld [vmem:[%s1480_s10 + $0x68] sm:$0xff] }
 0x274   : > { %1165 = vpow2.f32 %v658_v49 }
 0x275   : > { %701 = vmatpush.msrb.mxu2 %v1144_v52  ;;  %727 = vmatpush.msra.mxu1 %v1145_v51  ;;  %v973_v52 = vld [vmem:[%s1480_s10 + $0x60] sm:$0xff] }
 0x277   : > { %802 = vmatpush.msra.mxu2 %v512_v0 }
 0x27a   : > { %v1166_v53 = vpop.eup %1165 }
 0x27b   : > { %v669_v54 = vsel %vm526_vm1, %v1166_v53, 0.0 }
 0x27c   : > { %670 = vadd.xlane.f32.xlu2 %v669_v54  ;;  %v972_v54 = vld [vmem:[%s1480_s10 + $0x58] sm:$0xff] }
 0x284   : > { %v662_v56 = vpop.xlane.xlu1 %661 }
 0x285   : > { %1167 = vrcp.f32 %v662_v56  ;;  %1147 = vrot.lane.b32.xlu1 %v1146_v55, %s1194_s22  ;;  %v971_v55 = vld [vmem:[%s1480_s10 + $0x50] sm:$0xff]  ;;  %v970_v56 = vld [vmem:[%s1480_s10 + $0x48] sm:$0xff]  ;;  %s476_s22 = scalar_lea.vmem %s1484_s14, %s1104_s23 }
 0x28b   : > { %v1168_v57 = vpop.eup %1167 }
 0x28c   : > { %v676_v58 = vmul.f32 %v1168_v57, %v1160_v35  ;;  %v969_v57 = vld [vmem:[%s1480_s10 + $0x40] sm:$0xff] }
 0x28e   : > { %1115 = vmatmul.msk.f32.vlgmr.msrb.gmra.mxu2 %vm526_vm1, %v676_v58 }
 0x2dd   : > { %v665_v59 = vpop.xlane.xlu2 %664 }
 0x2de   : > { %1169 = vrcp.f32 %v665_v59  ;;  %v968_v59 = vld [vmem:[%s1480_s10 + $0x38] sm:$0xff] }
 0x2df   : > { %v668_v62 = vpop.xlane.xlu1 %667 }
 0x2e0   : > { %1171 = vrcp.f32 %v668_v62 }
 0x2e4   : > { %v1170_v60 = vpop.eup %1169 }
 0x2e5   : > { %v677_v61 = vmul.f32 %v1170_v60, %v1162_v43 }
 0x2e6   : > { %v1172_v1 = vpop.eup %1171 }
 0x2e7   : > { %1116 = vmatmul.msk.f32.vlgmr.msra.gmra.mxu1 %vm526_vm1, %v677_v61  ;;  %v678_v7 = vmul.f32 %v1172_v1, %v1164_v45  ;;  %v976_v45 = vld [vmem:[%s1480_s10 + $0x78] sm:$0xff]  ;;  %v967_v61 = vld [vmem:[%s1480_s10 + $0x30] sm:$0xff]  ;;  %v965_v1 = vld [vmem:[%s1480_s10 + $0x20] sm:$0xff] }
 0x2e8   : > { %981 = vmatpush.msrb.mxu3 %v976_v45 }
 0x2ea   : > { %982 = vmatpush.msrb.mxu3 %v975_v46 }
 0x2ec   : > { %983 = vmatpush.msrb.mxu3 %v974_v50 }
 0x2ee   : > { %984 = vmatpush.msrb.mxu3 %v973_v52 }
 0x2ef   : > { %v671_v63 = vpop.xlane.xlu2 %670 }
 0x2f0   : > { %1173 = vrcp.f32 %v671_v63  ;;  %985 = vmatpush.msrb.mxu3 %v972_v54  ;;  %v966_v63 = vld [vmem:[%s1480_s10 + $0x28] sm:$0xff] }
 0x2f1   : > { %1175 = vrcp.f32 %v1195_v33 }
 0x2f2   : > { %986 = vmatpush.msrb.mxu3 %v971_v55 }
 0x2f4   : > { %987 = vmatpush.msrb.mxu3 %v970_v56 }
 0x2f6   : > { %v1174_v2 = vpop.eup %1173  ;;  %988 = vmatpush.msrb.mxu3 %v969_v57 }
 0x2f7   : > { %v1148_v3 = vpop.permute.xlu1 %1147  ;;  %v679_v8 = vmul.f32 %v1174_v2, %v1166_v53  ;;  %v1176_v34 = vpop.eup %1175 }
 0x2f8   : > { %v1150_v5 = vunpack.i.h.bf16 %v1148_v3  ;;  %v1149_v6 = vunpack.i.l.bf16 %v1148_v3  ;;  %v894_v35 = vmul.f32 32.0, %v1176_v34  ;;  %vm898_vm4 = vweird.f32 %v1176_v34  ;;  %989 = vmatpush.msrb.mxu3 %v968_v59  ;;  %v964_v3 = vld [vmem:[%s1480_s10 + $0x18] sm:$0xff] }
 0x2fa   : > { %753 = vmatpush.msra.mxu0 %v1149_v6  ;;  %779 = vmatpush.msrb.mxu1 %v1150_v5  ;;  %v895_v36 = vsub.f32 1.0, %v894_v35 }
 0x2fb   : > { %1117 = vmatmul.msk.f32.vlgmr.msra.gmra.mxu0 %vm526_vm1, %v678_v7  ;;  %1118 = vmatmul.msk.f32.vlgmr.msrb.gmra.mxu1 %vm526_vm1, %v679_v8  ;;  %v1153_v7 = vld [vmem:[%s1476_s6] ss:$0 sm:$0xff] }
 0x2fc   : > { %848 = vmatpush.msrb.mxu0 %v514_v11  ;;  %871 = vmatpush.msra.mxu1 %v515_v12  ;;  %v896_v37 = vmul.f32 %v1176_v34, %v895_v36 }
 0x2fd   : > { %990 = vmatpush.msrb.mxu3 %v967_v61 }
 0x2fe   : > { %v897_v38 = vadd.f32 %v1176_v34, %v896_v37 }
 0x2ff   : > { %991 = vmatpush.msrb.mxu3 %v966_v63 }
 0x300   : > { %v1385_v42 = vsel %vm898_vm4, %v1176_v34, %v897_v38 }
 0x301   : > { %992 = vmatpush.msrb.mxu3 %v965_v1 }
 0x303   : > { %993 = vmatpush.msrb.mxu3 %v964_v3 }
 0x311   : > { %v703_v9 = vpop.f32.mrf.mxu2 }
 0x312   : > { %1119 = vmatmul.msk.f32.vlgmr.msra.gmra.mxu2 %vm526_vm1, %v703_v9 }
 0x364   : > { %v729_v13 = vpop.f32.mrf.mxu1 }
 0x365   : > { %1120 = vmatmul.msk.f32.vlgmr.msra.gmra.mxu3 %vm526_vm1, %v729_v13  ;;  %v963_v13 = vld [vmem:[%s1480_s10 + $0x10] sm:$0xff] }
 0x366   : > { %994 = vmatpush.msrb.mxu3 %v963_v13 }
 0x378   : > { %v755_v14 = vpop.f32.mrf.mxu0  ;;  %v781_v15 = vpop.f32.mrf.mxu1 }
 0x379   : > { %1121 = vmatmul.msk.f32.vlgmr.msrb.gmra.mxu0 %vm526_vm1, %v755_v14  ;;  %1122 = vmatmul.msk.f32.vlgmr.msra.gmra.mxu1 %vm526_vm1, %v781_v15  ;;  %v962_v14 = vld [vmem:[%s1480_s10 + $0x8] sm:$0xff]  ;;  %v961_v15 = vld [vmem:[%s1480_s10] sm:$0xff] }
 0x37a   : > { %995 = vmatpush.msrb.mxu3 %v962_v14 }
 0x37c   : > { %996 = vmatpush.msrb.mxu3 %v961_v15 }
 0x395   : > { %v804_v17 = vpop.f32.mrf.mxu2 }
 0x396   : > { %v876_v19 = vsel %vm488_vm0, %v804_v17, 0.0 }
 0x3e8   : > { %v827_v16 = vpop.f32.mrf.mxu3 }
 0x3e9   : > { %v877_v18 = vsel %vm488_vm0, %v827_v16, 0.0  ;;  %v1155_v16 = vld [vmem:[%s1479_s9] ss:$0 sm:$0xff] }
 0x3ea   : > { %v878_v20 = vadd.f32 %v877_v18, %v876_v19 }
 0x3f6   : > { %v850_v21 = vpop.f32.mrf.mxu0  ;;  %v873_v22 = vpop.f32.mrf.mxu1 }
 0x3f7   : > { %v879_v23 = vsel %vm488_vm0, %v850_v21, 0.0  ;;  %v881_v26 = vsel %vm488_vm0, %v873_v22, 0.0 }
 0x3f8   : > { %v880_v24 = vadd.f32 %v879_v23, %v878_v20  ;;  %v1156_v20 = vld [vmem:[%s1481_s11] ss:$0 sm:$0xff] }
 0x3fa   : > { %v882_v27 = vadd.f32 %v881_v26, %v880_v24 }
 0x3fc   : > { %v886_v28 = vadd.f32 %v1152_v25, %v882_v27 }
 0x3fe   : > { %v1366_v29 = vadd.f32 %v886_v28, %v1299_v4  ;;  %v932_v4 = vld [vmem:[%s1478_s8 + $0x18] sm:$0xff] }
 0x3ff   : > { %952 = vmatpush.msrb.mxu2 %v932_v4 }
 0x400   : > { %v890_v30 = vsel %vm488_vm0, %v1366_v29, 0.0  ;;  %v901_v31 = vmul.f32 %v1366_v29, %v1366_v29 }
 0x401   : > { %891 = vadd.xlane.f32.xlu2 %v890_v30  ;;  %953 = vmatpush.msrb.mxu2 %v931_v39 }
 0x402   : > { %v902_v32 = vsel %vm488_vm0, %v901_v31, 0.0 }
 0x403   : > { %903 = vadd.xlane.f32.xlu0 %v902_v32  ;;  %954 = vmatpush.msrb.mxu2 %v930_v40  ;;  %v1157_v40 = vld [vmem:[%s1482_s12] ss:$0 sm:$0xff] }
 0x405   : > { %955 = vmatpush.msrb.mxu2 %v929_v41 }
 0x474   : > { %v892_v43 = vpop.xlane.xlu2 %891 }
 0x475   : > { %v900_v44 = vmul.f32 %v1385_v42, %v892_v43 }
 0x476   : > { %v904_v47 = vpop.xlane.xlu0 %903 }
 0x477   : > { %v906_v48 = vmul.f32 %v900_v44, %v900_v44  ;;  %v905_v49 = vmul.f32 %v904_v47, %v1385_v42  ;;  %v919_v6 = vsub.f32 %v1366_v29, %v900_v44 }
 0x479   : > { %v907_v51 = vsub.f32 %v905_v49, %v906_v48 }
 0x47b   : > { %v908_v53 = vadd.f32 1e-05, %v907_v51 }
 0x47d   : > { %1177 = vrsqrt.f32 %v908_v53  ;;  %vm915_vm6 = vweird.f32 %v908_v53 }
 0x483   : > { %v1178_v58 = vpop.eup %1177 }
 0x484   : > { %v910_v60 = vmul.f32 %v1178_v58, %v908_v53  ;;  %vm916_vm5 = vweird.f32 %v1178_v58 }
 0x485   : > { %vm917_vm7 = vmor %vm915_vm6, %vm916_vm5 }
 0x486   : > { %v911_v62 = vmul.f32 %v1178_v58, %v910_v60 }
 0x488   : > { %v912_v0 = vmul.f32 0.5, %v911_v62 }
 0x48a   : > { %v913_v2 = vsub.f32 1.5, %v912_v0 }
 0x48c   : > { %v914_v5 = vmul.f32 %v1178_v58, %v913_v2 }
 0x48e   : > { %v918_v8 = vsel %vm917_vm7, %v1178_v58, %v914_v5 }
 0x48f   : > { %v920_v9 = vmul.f32 %v919_v6, %v918_v8 }
 0x491   : > { %v924_v11 = vmul.f32 %v1153_v7, %v920_v9 }
 0x493   : > { %v928_v12 = vadd.f32 %v1154_v10, %v924_v11 }
 0x495   : > { %1123 = vmatmul.msk.f32.vlgmr.msrb.gmra.mxu2 %vm488_vm0, %v928_v12 }
 0x518   : > { %v957_v17 = vpop.f32.mrf.mxu2 }
 0x519   : > { %v958_v18 = vadd.f32 %v1155_v16, %v957_v17 }
 0x51b   : > { %v960_v19 = vmax.f32 %v958_v18, 0.0 }
 0x51d   : > { %997 = vmatmul.f32.vlgmr.msrb.gmra.mxu3 %v960_v19 }
 0x5a0   : > { %v998_v21 = vpop.f32.mrf.mxu3 }
 0x5a1   : > { %v999_v22 = vadd.f32 %v1156_v20, %v998_v21 }
 0x5a3   : > { %v1001_v23 = vadd.f32 %v999_v22, %v928_v12 }
 0x5a5   : > { %v1004_v24 = vsel %vm488_vm0, %v1001_v23, 0.0  ;;  %v1008_v25 = vmul.f32 %v1001_v23, %v1001_v23 }
 0x5a6   : > { %1005 = vadd.xlane.f32.xlu2 %v1004_v24 }
 0x5a7   : > { %v1009_v26 = vsel %vm488_vm0, %v1008_v25, 0.0 }
 0x5ae   : > { %1010 = vadd.xlane.f32.xlu2 %v1009_v26 }
 0x619   : > { %v1006_v27 = vpop.xlane.xlu2 %1005 }
 0x61a   : > { %v1007_v28 = vmul.f32 %v1006_v27, %v1385_v42 }
 0x61c   : > { %v1013_v30 = vmul.f32 %v1007_v28, %v1007_v28  ;;  %v1026_v39 = vsub.f32 %v1001_v23, %v1007_v28 }
 0x621   : > { %v1011_v29 = vpop.xlane.xlu2 %1010 }
 0x622   : > { %v1012_v31 = vmul.f32 %v1011_v29, %v1385_v42  ;;  %v1158_v42 = vld [vmem:[%s1483_s13] ss:$0 sm:$0xff] }
 0x624   : > { %v1014_v32 = vsub.f32 %v1012_v31, %v1013_v30 }
 0x626   : > { %v1015_v33 = vadd.f32 1e-05, %v1014_v32 }
 0x628   : > { %1179 = vrsqrt.f32 %v1015_v33  ;;  %vm1022_vm9 = vweird.f32 %v1015_v33 }
 0x62e   : > { %v1180_v34 = vpop.eup %1179 }
 0x62f   : > { %v1017_v35 = vmul.f32 %v1180_v34, %v1015_v33  ;;  %vm1023_vm8 = vweird.f32 %v1180_v34 }
 0x630   : > { %vm1024_vm10 = vmor %vm1022_vm9, %vm1023_vm8 }
 0x631   : > { %v1018_v36 = vmul.f32 %v1180_v34, %v1017_v35 }
 0x633   : > { %v1019_v37 = vmul.f32 0.5, %v1018_v36 }
 0x635   : > { %v1020_v4 = vsub.f32 1.5, %v1019_v37 }
 0x637   : > { %v1021_v38 = vmul.f32 %v1180_v34, %v1020_v4 }
 0x639   : > { %v1025_v41 = vsel %vm1024_vm10, %v1180_v34, %v1021_v38 }
 0x63a   : > { %v1027_v43 = vmul.f32 %v1026_v39, %v1025_v41 }
 0x63c   : > { %v1031_v44 = vmul.f32 %v1157_v40, %v1027_v43 }
 0x63e   : > { %v1035_v45 = vadd.f32 %v1158_v42, %v1031_v44 }
 0x640   : > { %1036 = vst.msk [vmem:[%s476_s22] sm:$0xff] %vm488_vm0, %v1035_v45 }
 0x641 PF: > { %s24_s29 = sadd.s32 1, %s1187_s29  }
 0x642   : > { %p21_p4 = scmp.ge.s32.totalorder %s24_s29, 4  }
 0x644   :  { %23 = sbr.rel (!%p21_p4) target bundleno = 1 (0x1), region = 109 }

// kernel: transformer_forward.7
= control target key start
LH: loop header
LB: loop body
LE: loop exit
PB: predicated region body
PF: predicated region fallthrough
CT: control target
= control target key end

     0   :  { %s2491_s0 = inlined_call_operand.vmem [shape: f32[2,8,32], index: 0, kind: input, shape index: {}]   ;;  %s2492_s1 = inlined_call_operand.vmem [shape: f32[2,8,32], index: 1, kind: input, shape index: {}]   ;;  %s2493_s2 = inlined_call_operand.vmem [shape: s32[2,1,8], index: 2, kind: input, shape index: {}]   ;;  %s2494_s3 = inlined_call_operand.vmem [shape: s32[2,1,8], index: 3, kind: input, shape index: {}]   ;;  %s2495_s4 = inlined_call_operand.vmem [shape: f32[32,96], index: 4, kind: input, shape index: {}]   ;;  %s2496_s5 = inlined_call_operand.vmem [shape: f32[1,96], index: 5, kind: input, shape index: {}]   ;;  %s2497_s6 = inlined_call_operand.vmem [shape: f32[4,8,32], index: 6, kind: input, shape index: {}]   ;;  %s2498_s7 = inlined_call_operand.vmem [shape: f32[1,32], index: 7, kind: input, shape index: {}]   ;;  %s2499_s8 = inlined_call_operand.vmem [shape: f32[1,32], index: 8, kind: input, shape index: {}]   ;;  %s2500_s9 = inlined_call_operand.vmem [shape: f32[1,32], index: 9, kind: input, shape index: {}]   ;;  %s2501_s10 = inlined_call_operand.vmem [shape: f32[32,32], index: 10, kind: input, shape index: {}]   ;;  %s2502_s11 = inlined_call_operand.vmem [shape: f32[1,32], index: 11, kind: input, shape index: {}]   ;;  %s2503_s12 = inlined_call_operand.vmem [shape: f32[32,64], index: 12, kind: input, shape index: {}]   ;;  %s2504_s13 = inlined_call_operand.vmem [shape: f32[1,64], index: 13, kind: input, shape index: {}]   ;;  %s2505_s14 = inlined_call_operand.vmem [shape: f32[4,8,32], index: 14, kind: input, shape index: {}]   ;;  %s2506_s15 = inlined_call_operand.vmem [shape: f32[1,32], index: 15, kind: input, shape index: {}]   ;;  %s2507_s16 = inlined_call_operand.vmem [shape: f32[1,32], index: 16, kind: input, shape index: {}]   ;;  %s2508_s17 = inlined_call_operand.vmem [shape: f32[1,32], index: 17, kind: input, shape index: {}]   ;;  %s2509_s18 = inlined_call_operand.vmem [shape: f32[32,128], index: 18, kind: input, shape index: {}]   ;;  %s2510_s19 = inlined_call_operand.vmem [shape: f32[1,128], index: 19, kind: input, shape index: {}]   ;;  %s2511_s20 = inlined_call_operand.vmem [shape: f32[128,32], index: 20, kind: input, shape index: {}]   ;;  %s2512_s21 = inlined_call_operand.vmem [shape: f32[1,32], index: 21, kind: input, shape index: {}]   ;;  %s2513_s22 = inlined_call_operand.vmem [shape: f32[1,32], index: 22, kind: input, shape index: {}]   ;;  %s2514_s23 = inlined_call_operand.vmem [shape: f32[1,32], index: 23, kind: input, shape index: {}]   ;;  %s2515_s24 = inlined_call_operand.vmem [shape: f32[2,8,32], index: 24, kind: output, shape index: {}]  }
   0x1   :  { %2528 = sst [smem:[#allocation2_spill]] %s2491_s0 }
   0x2   :  { %2529 = sst [smem:[#allocation3_spill]] %s2492_s1 }
   0x3   :  { %2530 = sst [smem:[#allocation4_spill]] %s2493_s2 }
   0x4   :  { %2531 = sst [smem:[#allocation5_spill]] %s2494_s3 }
   0x5   :  { %2532 = sst [smem:[#allocation6_spill]] %s2495_s4 }
   0x6   :  { %2533 = sst [smem:[#allocation7_spill]] %s2496_s5  ;;  %s2171_s5 = smov 0  }
   0x7   :  { %2534 = sst [smem:[#allocation8_spill]] %s2497_s6 }
   0x8   :  { %2535 = sst [smem:[#allocation9_spill]] %s2498_s7 }
   0x9   :  { %2536 = sst [smem:[#allocation10_spill]] %s2499_s8 }
   0xa LB: > { %s1902_s26 = sadd.s32 4294967295, %s2037_s5   ;;  %p1906_p0 = scmp.ge.s32.totalorder %s2037_s5, 1  ;;  %s2037_s5 = sphi %s2171_s5, %s34_s5  }
   0xb   : > { %p686_p1 = scmp.lt.s32.totalorder %s2037_s5, 3 }
   0xd   : > { %p687_p2 = pnand %p1906_p0, %p686_p1 }
   0xe   : > { %s2537_s6 = sld [smem:[#allocation6_spill]] (!%p687_p2)  ;;  %p760_p3 = scmp.lt.s32.totalorder (!%p687_p2), %s1902_s26, 1 }
   0xf   : > { %690 = sbr.rel (%p687_p2) target bundleno = 2645 (0xa55), region = 116  ;;  %s2538_s1 = sld [smem:[#allocation2_spill]] (!%p687_p2) }
  0x10   : > { %s2539_s29 = sld [smem:[#allocation7_spill]] (!%p687_p2)  ;;  %s2520_s0 = smov (!%p687_p2), 104  }
  0x11   : > { %s2524_s7 = smov (!%p687_p2), 120   ;;  %s2518_s30 = smov (!%p687_p2), 96  }
  0x12   : > { %s2522_s3 = smov (!%p687_p2), 112   ;;  %s2044_s28 = smov (!%p687_p2), 64  }
  0x13   : > { %s2541_s8 = sld [smem:[#allocation8_spill]] (!%p687_p2) }
  0x14   : > { %v796_v0 = vld [vmem:[%s2537_s6 + $0x18] sm:$0xff]  ;;  %v795_v1 = vld [vmem:[%s2537_s6 + $0x10] sm:$0xff]  ;;  %v794_v2 = vld [vmem:[%s2537_s6 + $0x8] sm:$0xff]  ;;  %s2551_s26 = smov (!%p760_p3, %s1902_s26), 1  ;;  %vm801_vm0 = vcmask 261120   ;;  %vm839_vm1 = vcmask 64512   ;;  %v780_v16 = vlaneseq }
  0x15   : > { %817 = vmatpush.msra.mxu0 %v796_v0  ;;  %v793_v3 = vld [vmem:[%s2537_s6] sm:$0xff]  ;;  %s2194_s25 = sshll.u32 %s2551_s26, 3  ;;  %v2043_v17 = vmov 0   ;;  %s2544_s6 = smov 120  }
  0x16   : > { %s763_s27 = scalar_lea.vmem %s2538_s1, %s2194_s25  ;;  %v1978_v5 = vld [vmem:[%s2539_s29] ss:$0 sm:$0xff]  ;;  %s2540_s1 = sld [smem:[#allocation5_spill]]  ;;  %v781_v19 = vshrl.u32 %v780_v16, 7  ;;  %v783_v20 = vand.u32 127, %v780_v16 }
  0x17   : > { %818 = vmatpush.msra.mxu0 %v795_v1  ;;  %v2200_v4 = vld [vmem:[%s763_s27] sm:$0xff]  ;;  %s2547_s4 = sld [smem:[#allocation10_spill]] }
  0x18   : > { %vm784_vm3 = vcmp.gt.s32.totalorder %v783_v20, %v781_v19  ;;  %v1274_v19 = vld [vmem:[%s2503_s12 + $0x10] sm:$0xff]  ;;  %v1273_v20 = vld [vmem:[%s2503_s12 + $0x8] sm:$0xff]  ;;  %s2548_s2 = sld [smem:[#allocation4_spill]] }
  0x19   : > { %819 = vmatpush.msra.mxu0 %v794_v2 }
  0x1b   : > { %820 = vmatpush.msra.mxu0 %v793_v3 }
  0x1c   : > { %1910 = vmatmul.msk.f32.vlgmr.msra.gmra.mxu0 %vm801_vm0, %v2200_v4  ;;  %s773_s27 = scalar_lea.vmem %s2540_s1, %s2551_s26 }
  0x1d   : > { %v785_v15 = vld [vmem:[%s773_s27] sm:$0x1] }
  0x1e   : > { %vm786_vm2 = vcmp.eq.s32.totalorder %v785_v15, 0  ;;  %s770_s29 = scalar_lea.vmem %s2548_s2, %s2551_s26  ;;  %s2549_s26 = smov 96  }
  0x1f   : > { %v787_v18 = vsel %vm786_vm2, 1, %v2043_v17 }
  0x20   : > { %v788_v21 = vperm.slane %v787_v18, 0  ;;  %v1275_v18 = vld [vmem:[%s2503_s12 + $0x18] sm:$0xff] }
  0x22   : > { %vm789_vm4 = vcmp.eq.s32.totalorder %v788_v21, 1  ;;  %v1272_v21 = vld [vmem:[%s2503_s12] sm:$0xff] }
  0x23   : > { %vm790_vm5 = vmor %vm784_vm3, %vm789_vm4 }
  0x99   : > { %v822_v6 = vpop.f32.mrf.mxu0 }
  0x9a   : > { %v2207_v7 = vadd.f32 %v1978_v5, %v822_v6 }
  0x9c   : > { %835 = vrot.lane.b32.xlu1 %v2207_v7, %s2520_s0  ;;  %831 = vrot.lane.b32.xlu0 %v2207_v7, %s2524_s7 }
  0xa4   : > { %837 = vrot.lane.b32.xlu1 %v2207_v7, %s2518_s30  ;;  %833 = vrot.lane.b32.xlu0 %v2207_v7, %s2522_s3  ;;  %s2542_s3 = sld [smem:[#allocation3_spill]] }
  0xaa   : > { %s767_s7 = scalar_lea.vmem %s2542_s3, %s2194_s25 }
 0x10e   : > { %v2217_v8 = vpop.permute.xlu1 %835  ;;  %v832_v9 = vpop.permute.xlu0 %831 }
 0x10f   : > { %916 = vrot.lane.b32.xlu0 %v2217_v8, %s2518_s30  ;;  %864 = vrot.lane.b32.xlu2 %v832_v9, %s2518_s30  ;;  %v1963_v39 = vpack.i.bf16 %v832_v9, %v2207_v7 }
 0x116   : > { %v838_v10 = vpop.permute.xlu1 %837  ;;  %v2222_v11 = vpop.permute.xlu0 %833 }
 0x117   : > { %1911 = vmatpush.xpose.msk.msra.mxu2 %vm839_vm1, %v838_v10  ;;  %890 = vrot.lane.b32.xlu2 %v2222_v11, %s2518_s30 }
 0x11a   : > { %1912 = vmatmul.msk.f32.vlgmr.msra.gmra.mxu2 %vm839_vm1, %v2207_v7 }
 0x169   : > { %v865_v12 = vpop.permute.xlu2 %864 }
 0x16a   : > { %1913 = vmatpush.xpose.msk.msrb.mxu2 %vm839_vm1, %v865_v12  ;;  %v827_v12 = vld [vmem:[%s2541_s8 + $0x10] sm:$0xff] }
 0x16d   : > { %1914 = vmatmul.msk.f32.vlgmr.msrb.gmra.mxu2 %vm839_vm1, %v832_v9  ;;  %v825_v9 = vld [vmem:[%s2541_s8] sm:$0xff] }
 0x171   : > { %v891_v13 = vpop.permute.xlu2 %890 }
 0x172   : > { %1915 = vmatpush.xpose.msk.msra.mxu3 %vm839_vm1, %v891_v13  ;;  %v828_v13 = vld [vmem:[%s2541_s8 + $0x18] sm:$0xff] }
 0x173   : > { %1183 = vmatpush.msra.mxu1 %v828_v13  ;;  %v1983_v13 = vld [vmem:[%s2502_s11] ss:$0 sm:$0xff] }
 0x175   : > { %1916 = vmatmul.msk.f32.vlgmr.msra.gmra.mxu3 %vm839_vm1, %v2222_v11 }
 0x181   : > { %v917_v14 = vpop.permute.xlu0 %916 }
 0x182   : > { %1917 = vmatpush.xpose.msk.msrb.mxu3 %vm839_vm1, %v917_v14 }
 0x185   : > { %1918 = vmatmul.msk.f32.vlgmr.msrb.gmra.mxu3 %vm839_vm1, %v2217_v8 }
 0x19d   : > { %v861_v22 = vpop.f32.mrf.mxu2 }
 0x19e   : > { %v944_v23 = vsel %vm790_vm5, -1e+10, %v861_v22  ;;  %v779_v22 = vld [vmem:[%s767_s7] sm:$0xff]  ;;  %s2546_s7 = smov 104  }
 0x19f   : > { %v948_v24 = vsel %vm839_vm1, %v944_v23, -inf }
 0x1a0   : > { %949 = vmax.xlane.f32.xlu1 %v948_v24 }
 0x1f0   : > { %v887_v25 = vpop.f32.mrf.mxu2 }
 0x1f1   : > { %v945_v26 = vsel %vm790_vm5, -1e+10, %v887_v25 }
 0x1f2   : > { %v951_v27 = vsel %vm839_vm1, %v945_v26, -inf }
 0x1f3   : > { %952 = vmax.xlane.f32.xlu2 %v951_v27 }
 0x1f8   : > { %v913_v28 = vpop.f32.mrf.mxu3 }
 0x1f9   : > { %v946_v29 = vsel %vm790_vm5, -1e+10, %v913_v28 }
 0x1fa   : > { %v954_v30 = vsel %vm839_vm1, %v946_v29, -inf }
 0x1fb   : > { %955 = vmax.xlane.f32.xlu0 %v954_v30 }
 0x208   : > { %v939_v31 = vpop.f32.mrf.mxu3 }
 0x209   : > { %v947_v32 = vsel %vm790_vm5, -1e+10, %v939_v31 }
 0x20a   : > { %v957_v33 = vsel %vm839_vm1, %v947_v32, -inf }
 0x20b   : > { %958 = vmax.xlane.f32.xlu2 %v957_v33 }
 0x213   : > { %v950_v34 = vpop.xlane.xlu1 %949 }
 0x214   : > { %v960_v35 = vsub.f32 %v944_v23, %v950_v34 }
 0x216   : > { %v964_v36 = vmul.f32 1.442695, %v960_v35 }
 0x218   : > { %1991 = vpow2.f32 %v964_v36 }
 0x21e   : > { %v1992_v37 = vpop.eup %1991 }
 0x21f   : > { %v972_v38 = vsel %vm839_vm1, %v1992_v37, 0.0 }
 0x220   : > { %973 = vadd.xlane.f32.xlu1 %v972_v38 }
 0x239   : > { %1964 = vrot.lane.b32.xlu1 %v1963_v39, %s2044_s28 }
 0x266   : > { %v953_v40 = vpop.xlane.xlu2 %952 }
 0x267   : > { %v961_v41 = vsub.f32 %v945_v26, %v953_v40  ;;  %v2045_v40 = vmov 32.0  }
 0x269   : > { %v966_v42 = vmul.f32 1.442695, %v961_v41 }
 0x26b   : > { %1993 = vpow2.f32 %v966_v42 }
 0x26e   : > { %v956_v43 = vpop.xlane.xlu0 %955 }
 0x26f   : > { %v962_v44 = vsub.f32 %v946_v29, %v956_v43 }
 0x271   : > { %v1994_v45 = vpop.eup %1993  ;;  %v968_v46 = vmul.f32 1.442695, %v962_v44 }
 0x272   : > { %v975_v47 = vsel %vm839_vm1, %v1994_v45, 0.0 }
 0x273   : > { %1995 = vpow2.f32 %v968_v46  ;;  %976 = vadd.xlane.f32.xlu2 %v975_v47  ;;  %v1242_v47 = vld [vmem:[%s2501_s10 + $0x8] sm:$0xff] }
 0x279   : > { %v1996_v48 = vpop.eup %1995 }
 0x27a   : > { %v978_v49 = vsel %vm839_vm1, %v1996_v48, 0.0 }
 0x27b   : > { %979 = vadd.xlane.f32.xlu0 %v978_v49 }
 0x27e   : > { %v959_v50 = vpop.xlane.xlu2 %958 }
 0x27f   : > { %v963_v51 = vsub.f32 %v947_v32, %v959_v50 }
 0x281   : > { %v970_v52 = vmul.f32 1.442695, %v963_v51 }
 0x283   : > { %1997 = vpow2.f32 %v970_v52  ;;  %v1982_v52 = vld [vmem:[%s2504_s13] ss:$0 sm:$0xff] }
 0x289   : > { %v1998_v53 = vpop.eup %1997 }
 0x28a   : > { %v981_v54 = vsel %vm839_vm1, %v1998_v53, 0.0 }
 0x28b   : > { %982 = vadd.xlane.f32.xlu2 %v981_v54 }
 0x28f   : > { %1044 = vrot.lane.b32.xlu0 %v2222_v11, %s2044_s28  ;;  %v826_v11 = vld [vmem:[%s2541_s8 + $0x8] sm:$0xff]  ;;  %s2543_s8 = sld [smem:[#allocation9_spill]] }
 0x293   : > { %v974_v55 = vpop.xlane.xlu1 %973 }
 0x294   : > { %1999 = vrcp.f32 %v974_v55 }
 0x295   : > { %v1979_v32 = vld [vmem:[%s2543_s8] ss:$0 sm:$0xff]  ;;  %s2545_s8 = smov 112  }
 0x29a   : > { %v2000_v56 = vpop.eup %1999 }
 0x29b   : > { %v988_v60 = vmul.f32 %v2000_v56, %v1992_v37 }
 0x2a3   : > { %1070 = vrot.lane.b32.xlu2 %v2217_v8, %s2044_s28 }
 0x2ab   : > { %v1965_v57 = vpop.permute.xlu1 %1964 }
 0x2ac   : > { %v1967_v58 = vunpack.i.h.bf16 %v1965_v57  ;;  %v1966_v59 = vunpack.i.l.bf16 %v1965_v57 }
 0x2ae   : > { %1013 = vmatpush.msra.mxu2 %v1966_v59  ;;  %1039 = vmatpush.msra.mxu3 %v1967_v58 }
 0x2af   : > { %1919 = vmatmul.msk.f32.vlgmr.msra.gmra.mxu2 %vm839_vm1, %v988_v60 }
 0x2b0   : > { %1114 = vmatpush.msrb.mxu2 %v825_v9  ;;  %1137 = vmatpush.msrb.mxu3 %v826_v11 }
 0x2e6   : > { %v977_v61 = vpop.xlane.xlu2 %976 }
 0x2e7   : > { %2001 = vrcp.f32 %v977_v61 }
 0x2ed   : > { %v2002_v62 = vpop.eup %2001 }
 0x2ee   : > { %v989_v63 = vmul.f32 %v2002_v62, %v1994_v45  ;;  %v980_v0 = vpop.xlane.xlu0 %979  ;;  %v1244_v45 = vld [vmem:[%s2501_s10 + $0x18] sm:$0xff] }
 0x2ef   : > { %2003 = vrcp.f32 %v980_v0  ;;  %1264 = vmatpush.msra.mxu2 %v1244_v45 }
 0x2f0   : > { %1920 = vmatmul.msk.f32.vlgmr.msra.gmra.mxu3 %vm839_vm1, %v989_v63 }
 0x2f1   : > { %1295 = vmatpush.msra.mxu3 %v1275_v18 }
 0x2f3   : > { %1296 = vmatpush.msra.mxu3 %v1274_v19  ;;  %v791_v19 = vld [vmem:[%s770_s29] sm:$0x1] }
 0x2f4   : > { %vm792_vm10 = vcmp.eq.s32.totalorder %v791_v19, 0 }
 0x2f5   : > { %v2004_v1 = vpop.eup %2003  ;;  %1297 = vmatpush.msra.mxu3 %v1273_v20 }
 0x2f6   : > { %v990_v5 = vmul.f32 %v2004_v1, %v1996_v48  ;;  %v1241_v48 = vld [vmem:[%s2501_s10] sm:$0xff] }
 0x2f7   : > { %1298 = vmatpush.msra.mxu3 %v1272_v21  ;;  %v1418_v21 = vsel %vm792_vm10, 1, %v2043_v17 }
 0x2fe   : > { %v983_v2 = vpop.xlane.xlu2 %982 }
 0x2ff   : > { %2005 = vrcp.f32 %v983_v2 }
 0x300   : > { %2007 = vrcp.f32 %v2045_v40 }
 0x301   : > { %v1045_v3 = vpop.permute.xlu0 %1044 }
 0x302   : > { %1065 = vmatpush.msrb.mxu0 %v1045_v3  ;;  %v1980_v3 = vld [vmem:[%s2547_s4] ss:$0 sm:$0xff] }
 0x303   : > { %1921 = vmatmul.msk.f32.vlgmr.msrb.gmra.mxu0 %vm839_vm1, %v990_v5 }
 0x305   : > { %v2006_v6 = vpop.eup %2005 }
 0x306   : > { %v1071_v7 = vpop.permute.xlu2 %1070  ;;  %v991_v8 = vmul.f32 %v2006_v6, %v1998_v53  ;;  %v2008_v41 = vpop.eup %2007 }
 0x307   : > { %1091 = vmatpush.msra.mxu0 %v1071_v7  ;;  %v1206_v42 = vmul.f32 32.0, %v2008_v41  ;;  %vm1210_vm6 = vweird.f32 %v2008_v41  ;;  %v1981_v7 = vld [vmem:[%s2500_s9] ss:$0 sm:$0xff] }
 0x309   : > { %1160 = vmatpush.msrb.mxu0 %v827_v12  ;;  %v1207_v43 = vsub.f32 1.0, %v1206_v42 }
 0x30b   : > { %1922 = vmatmul.msk.f32.vlgmr.msra.gmra.mxu0 %vm839_vm1, %v991_v8  ;;  %v1208_v44 = vmul.f32 %v2008_v41, %v1207_v43 }
 0x30d   : > { %v1209_v46 = vadd.f32 %v2008_v41, %v1208_v44 }
 0x30f   : > { %v2312_v49 = vsel %vm1210_vm6, %v2008_v41, %v1209_v46 }
 0x332   : > { %v1015_v10 = vpop.f32.mrf.mxu2 }
 0x333   : > { %1923 = vmatmul.msk.f32.vlgmr.msrb.gmra.mxu2 %vm839_vm1, %v1015_v10 }
 0x373   : > { %v1041_v14 = vpop.f32.mrf.mxu3 }
 0x374   : > { %1924 = vmatmul.msk.f32.vlgmr.msrb.gmra.mxu3 %vm839_vm1, %v1041_v14 }
 0x37c   : > { %1928 = vmatmul.msk.f32.vlgmr.msra.gmra.mxu3 %vm801_vm0, %v779_v22  ;;  %v1419_v22 = vperm.slane %v1418_v21, 0 }
 0x37e   : > { %vm1420_vm11 = vcmp.eq.s32.totalorder %v1419_v22, 1 }
 0x380   : > { %v1067_v15 = vpop.f32.mrf.mxu0 }
 0x381   : > { %1925 = vmatmul.msk.f32.vlgmr.msrb.gmra.mxu0 %vm839_vm1, %v1067_v15 }
 0x388   : > { %v1093_v16 = vpop.f32.mrf.mxu0 }
 0x389   : > { %1926 = vmatmul.msk.f32.vlgmr.msra.gmra.mxu1 %vm839_vm1, %v1093_v16 }
 0x3b6   : > { %v1116_v24 = vpop.f32.mrf.mxu2 }
 0x3b7   : > { %v1188_v27 = vsel %vm801_vm0, %v1116_v24, 0.0 }
 0x3f7   : > { %v1139_v23 = vpop.f32.mrf.mxu3 }
 0x3f8   : > { %v1189_v26 = vsel %vm801_vm0, %v1139_v23, 0.0 }
 0x3f9   : > { %v1190_v29 = vadd.f32 %v1189_v26, %v1188_v27 }
 0x3fe   : > { %v1162_v25 = vpop.f32.mrf.mxu0 }
 0x3ff   : > { %v1191_v28 = vsel %vm801_vm0, %v1162_v25, 0.0  ;;  %v1300_v53 = vpop.f32.mrf.mxu3 }
 0x400   : > { %v1192_v30 = vadd.f32 %v1191_v28, %v1190_v29  ;;  %v2319_v57 = vadd.f32 %v1982_v52, %v1300_v53 }
 0x402   : > { %1318 = vrot.lane.b32.xlu2 %v2319_v57, %s2545_s8  ;;  %1929 = vmatpush.xpose.msk.msra.mxu0 %vm839_vm1, %v2319_v57 }
 0x406   : > { %v1185_v31 = vpop.f32.mrf.mxu1 }
 0x407   : > { %v1193_v33 = vsel %vm801_vm0, %v1185_v31, 0.0 }
 0x408   : > { %v1194_v34 = vadd.f32 %v1193_v33, %v1192_v30 }
 0x40a   : > { %v1198_v35 = vadd.f32 %v1979_v32, %v1194_v34  ;;  %1320 = vrot.lane.b32.xlu2 %v2319_v57, %s2546_s7 }
 0x40c   : > { %v1199_v36 = vadd.f32 %v1198_v35, %v2200_v4  ;;  %v1243_v4 = vld [vmem:[%s2501_s10 + $0x10] sm:$0xff] }
 0x40d   : > { %1265 = vmatpush.msra.mxu2 %v1243_v4 }
 0x40e   : > { %v1202_v37 = vsel %vm801_vm0, %v1199_v36, 0.0  ;;  %v1213_v38 = vmul.f32 %v1199_v36, %v1199_v36 }
 0x40f   : > { %1203 = vadd.xlane.f32.xlu1 %v1202_v37  ;;  %1266 = vmatpush.msra.mxu2 %v1242_v47 }
 0x410   : > { %v1214_v39 = vsel %vm801_vm0, %v1213_v38, 0.0 }
 0x411   : > { %1215 = vadd.xlane.f32.xlu0 %v1214_v39  ;;  %1267 = vmatpush.msra.mxu2 %v1241_v48 }
 0x428   : > { %1316 = vrot.lane.b32.xlu1 %v2319_v57, %s2544_s6 }
 0x45c   : > { %v1319_v11 = vpop.permute.xlu2 %1318 }
 0x45d   : > { %1933 = vmatpush.xpose.msk.msrb.mxu2 %vm839_vm1, %v1319_v11 }
 0x464   : > { %v1321_v12 = vpop.permute.xlu2 %1320 }
 0x465   : > { %1935 = vmatpush.xpose.msk.msrb.mxu3 %vm839_vm1, %v1321_v12  ;;  %v1968_v37 = vpack.i.bf16 %v1321_v12, %v1319_v11 }
 0x482   : > { %v1204_v50 = vpop.xlane.xlu1 %1203 }
 0x483   : > { %v1212_v51 = vmul.f32 %v2312_v49, %v1204_v50 }
 0x484   : > { %v1216_v54 = vpop.xlane.xlu0 %1215 }
 0x485   : > { %v1218_v55 = vmul.f32 %v1212_v51, %v1212_v51  ;;  %v1217_v56 = vmul.f32 %v1216_v54, %v2312_v49  ;;  %v1231_v2 = vsub.f32 %v1199_v36, %v1212_v51 }
 0x487   : > { %v1219_v58 = vsub.f32 %v1217_v56, %v1218_v55 }
 0x489   : > { %v1220_v59 = vadd.f32 1e-05, %v1219_v58 }
 0x48b   : > { %2009 = vrsqrt.f32 %v1220_v59  ;;  %vm1227_vm8 = vweird.f32 %v1220_v59 }
 0x491   : > { %v2010_v60 = vpop.eup %2009 }
 0x492   : > { %v1222_v61 = vmul.f32 %v2010_v60, %v1220_v59  ;;  %vm1228_vm7 = vweird.f32 %v2010_v60 }
 0x493   : > { %vm1229_vm9 = vmor %vm1227_vm8, %vm1228_vm7 }
 0x494   : > { %v1223_v62 = vmul.f32 %v2010_v60, %v1222_v61 }
 0x496   : > { %v1224_v63 = vmul.f32 0.5, %v1223_v62 }
 0x498   : > { %v1225_v0 = vsub.f32 1.5, %v1224_v63 }
 0x49a   : > { %v1226_v1 = vmul.f32 %v2010_v60, %v1225_v0  ;;  %v1317_v10 = vpop.permute.xlu1 %1316 }
 0x49b   : > { %1931 = vmatpush.xpose.msk.msrb.mxu1 %vm839_vm1, %v1317_v10  ;;  %v1973_v40 = vpack.i.bf16 %v1317_v10, %v2319_v57  ;;  %v1303_v10 = vld [vmem:[%s2505_s14] sm:$0xff] }
 0x49c   : > { %v1230_v5 = vsel %vm1229_vm9, %v2010_v60, %v1226_v1 }
 0x49d   : > { %v1232_v6 = vmul.f32 %v1231_v2, %v1230_v5 }
 0x49f   : > { %v1236_v8 = vmul.f32 %v1980_v3, %v1232_v6 }
 0x4a1   : > { %v2335_v9 = vadd.f32 %v1981_v7, %v1236_v8 }
 0x4a3   : > { %1927 = vmatmul.msk.f32.vlgmr.msra.gmra.mxu2 %vm801_vm0, %v2335_v9 }
 0x526   : > { %v1269_v14 = vpop.f32.mrf.mxu2 }
 0x527   : > { %v1270_v15 = vadd.f32 %v1983_v13, %v1269_v14  ;;  %v1305_v14 = vld [vmem:[%s2505_s14 + $0x10] sm:$0xff] }
 0x529   : > { %1309 = vrot.lane.b32.xlu0 %v1270_v15, %s2544_s6  ;;  %1311 = vrot.lane.b32.xlu2 %v1270_v15, %s2545_s8 }
 0x52a   : > { %1930 = vmatmul.msk.f32.vlgmr.msra.gmra.mxu0 %vm839_vm1, %v1270_v15 }
 0x531   : > { %1313 = vrot.lane.b32.xlu2 %v1270_v15, %s2546_s7  ;;  %v1306_v15 = vld [vmem:[%s2505_s14 + $0x18] sm:$0xff] }
 0x583   : > { %v1312_v16 = vpop.permute.xlu2 %1311 }
 0x584   : > { %1934 = vmatmul.msk.f32.vlgmr.msrb.gmra.mxu2 %vm839_vm1, %v1312_v16  ;;  %v1304_v16 = vld [vmem:[%s2505_s14 + $0x8] sm:$0xff] }
 0x58b   : > { %v1314_v18 = vpop.permute.xlu2 %1313 }
 0x58c   : > { %1936 = vmatmul.msk.f32.vlgmr.msrb.gmra.mxu3 %vm839_vm1, %v1314_v18 }
 0x59b   : > { %v1310_v20 = vpop.permute.xlu0 %1309 }
 0x59c   : > { %1932 = vmatmul.msk.f32.vlgmr.msrb.gmra.mxu1 %vm839_vm1, %v1310_v20 }
 0x5a7   : > { %v1343_v23 = vpop.f32.mrf.mxu0 }
 0x5a8   : > { %v1421_v24 = vsel %vm1420_vm11, -1e+10, %v1343_v23 }
 0x5a9   : > { %v1425_v25 = vsel %vm839_vm1, %v1421_v24, -inf }
 0x5aa   : > { %1426 = vmax.xlane.f32.xlu1 %v1425_v25 }
 0x607   : > { %v1391_v26 = vpop.f32.mrf.mxu2 }
 0x608   : > { %v1423_v27 = vsel %vm1420_vm11, -1e+10, %v1391_v26 }
 0x609   : > { %v1431_v28 = vsel %vm839_vm1, %v1423_v27, -inf }
 0x60a   : > { %1432 = vmax.xlane.f32.xlu2 %v1431_v28 }
 0x60f   : > { %v1415_v29 = vpop.f32.mrf.mxu3 }
 0x610   : > { %v1424_v30 = vsel %vm1420_vm11, -1e+10, %v1415_v29 }
 0x611   : > { %v1434_v31 = vsel %vm839_vm1, %v1424_v30, -inf }
 0x612   : > { %1435 = vmax.xlane.f32.xlu0 %v1434_v31 }
 0x619   : > { %v1367_v32 = vpop.f32.mrf.mxu1 }
 0x61a   : > { %v1422_v33 = vsel %vm1420_vm11, -1e+10, %v1367_v32 }
 0x61b   : > { %v1428_v17 = vsel %vm839_vm1, %v1422_v33, -inf }
 0x61c   : > { %1429 = vmax.xlane.f32.xlu2 %v1428_v17 }
 0x61d   : > { %v1427_v34 = vpop.xlane.xlu1 %1426 }
 0x61e   : > { %v1437_v35 = vsub.f32 %v1421_v24, %v1427_v34 }
 0x620   : > { %v1441_v36 = vmul.f32 1.442695, %v1437_v35 }
 0x622   : > { %2011 = vpow2.f32 %v1441_v36 }
 0x626   : > { %1969 = vrot.lane.b32.xlu0 %v1968_v37, %s2549_s26  ;;  %v1714_v37 = vld [vmem:[%s2509_s18 + $0x18] sm:$0xff] }
 0x628   : > { %v2012_v38 = vpop.eup %2011 }
 0x629   : > { %v1449_v39 = vsel %vm839_vm1, %v2012_v38, 0.0 }
 0x62a   : > { %1450 = vadd.xlane.f32.xlu1 %v1449_v39  ;;  %v1711_v39 = vld [vmem:[%s2509_s18] sm:$0xff] }
 0x643   : > { %1974 = vrot.lane.b32.xlu1 %v1973_v40, %s2549_s26  ;;  %s777_s26 = scalar_lea.vmem %s2515_s24, %s2194_s25 }
 0x67d   : > { %v1433_v41 = vpop.xlane.xlu2 %1432 }
 0x67e   : > { %v1439_v42 = vsub.f32 %v1423_v27, %v1433_v41 }
 0x680   : > { %v1445_v43 = vmul.f32 1.442695, %v1439_v42  ;;  %v1758_v42 = vld [vmem:[%s2511_s20 + $0x78] sm:$0xff] }
 0x682   : > { %2013 = vpow2.f32 %v1445_v43  ;;  %v1757_v43 = vld [vmem:[%s2511_s20 + $0x70] sm:$0xff] }
 0x685   : > { %v1436_v44 = vpop.xlane.xlu0 %1435 }
 0x686   : > { %v1440_v45 = vsub.f32 %v1424_v30, %v1436_v44  ;;  %v1984_v30 = vld [vmem:[%s2506_s15] ss:$0 sm:$0xff] }
 0x688   : > { %v2014_v46 = vpop.eup %2013  ;;  %v1447_v4 = vmul.f32 1.442695, %v1440_v45 }
 0x689   : > { %v1455_v47 = vsel %vm839_vm1, %v2014_v46, 0.0 }
 0x68a   : > { %2015 = vpow2.f32 %v1447_v4  ;;  %1456 = vadd.xlane.f32.xlu2 %v1455_v47  ;;  %v1756_v4 = vld [vmem:[%s2511_s20 + $0x68] sm:$0xff] }
 0x68f   : > { %v1430_v48 = vpop.xlane.xlu2 %1429 }
 0x690   : > { %v2016_v50 = vpop.eup %2015  ;;  %v1438_v51 = vsub.f32 %v1422_v33, %v1430_v48  ;;  %v1755_v48 = vld [vmem:[%s2511_s20 + $0x60] sm:$0xff] }
 0x691   : > { %v1458_v52 = vsel %vm839_vm1, %v2016_v50, 0.0 }
 0x692   : > { %v1443_v53 = vmul.f32 1.442695, %v1438_v51  ;;  %1459 = vadd.xlane.f32.xlu2 %v1458_v52  ;;  %v1754_v51 = vld [vmem:[%s2511_s20 + $0x58] sm:$0xff]  ;;  %v1753_v52 = vld [vmem:[%s2511_s20 + $0x50] sm:$0xff] }
 0x694   : > { %2017 = vpow2.f32 %v1443_v53  ;;  %v1752_v53 = vld [vmem:[%s2511_s20 + $0x48] sm:$0xff] }
 0x698   : > { %v1970_v54 = vpop.permute.xlu0 %1969 }
 0x699   : > { %v1972_v55 = vunpack.i.h.bf16 %v1970_v54  ;;  %v1971_v56 = vunpack.i.l.bf16 %v1970_v54  ;;  %v1751_v54 = vld [vmem:[%s2511_s20 + $0x40] sm:$0xff] }
 0x69a   : > { %v2018_v57 = vpop.eup %2017 }
 0x69b   : > { %1542 = vmatpush.msra.mxu2 %v1971_v56  ;;  %1568 = vmatpush.msra.mxu3 %v1972_v55  ;;  %v1452_v58 = vsel %vm839_vm1, %v2018_v57, 0.0  ;;  %v1750_v56 = vld [vmem:[%s2511_s20 + $0x38] sm:$0xff] }
 0x69c   : > { %1453 = vadd.xlane.f32.xlu2 %v1452_v58  ;;  %v1749_v58 = vld [vmem:[%s2511_s20 + $0x30] sm:$0xff] }
 0x69d   : > { %v1451_v59 = vpop.xlane.xlu1 %1450  ;;  %1637 = vmatpush.msrb.mxu2 %v1305_v14  ;;  %1660 = vmatpush.msrb.mxu3 %v1306_v15  ;;  %v1987_v14 = vld [vmem:[%s2510_s19] ss:$0 sm:$0xff] }
 0x69e   : > { %2019 = vrcp.f32 %v1451_v59 }
 0x6a4   : > { %v2020_v60 = vpop.eup %2019 }
 0x6a5   : > { %v1465_v0 = vmul.f32 %v2020_v60, %v2012_v38  ;;  %v1713_v38 = vld [vmem:[%s2509_s18 + $0x10] sm:$0xff]  ;;  %v1748_v60 = vld [vmem:[%s2511_s20 + $0x28] sm:$0xff] }
 0x6b5   : > { %v1975_v61 = vpop.permute.xlu1 %1974 }
 0x6b6   : > { %v1977_v62 = vunpack.i.h.bf16 %v1975_v61  ;;  %v1976_v63 = vunpack.i.l.bf16 %v1975_v61 }
 0x6b8   : > { %1490 = vmatpush.msrb.mxu0 %v1976_v63  ;;  %1516 = vmatpush.msra.mxu1 %v1977_v62  ;;  %v1747_v62 = vld [vmem:[%s2511_s20 + $0x20] sm:$0xff] }
 0x6b9   : > { %1937 = vmatmul.msk.f32.vlgmr.msrb.gmra.mxu0 %vm839_vm1, %v1465_v0  ;;  %v1746_v0 = vld [vmem:[%s2511_s20 + $0x18] sm:$0xff] }
 0x6ba   : > { %1591 = vmatpush.msra.mxu0 %v1303_v10  ;;  %1614 = vmatpush.msrb.mxu1 %v1304_v16 }
 0x6bc   : > { %1734 = vmatpush.msrb.mxu0 %v1714_v37 }
 0x6be   : > { %1735 = vmatpush.msrb.mxu0 %v1713_v38 }
 0x6fd   : > { %v1457_v1 = vpop.xlane.xlu2 %1456 }
 0x6fe   : > { %2021 = vrcp.f32 %v1457_v1 }
 0x704   : > { %v2022_v2 = vpop.eup %2021 }
 0x705   : > { %v1467_v3 = vmul.f32 %v2022_v2, %v2014_v46  ;;  %v1460_v5 = vpop.xlane.xlu2 %1459 }
 0x706   : > { %2023 = vrcp.f32 %v1460_v5 }
 0x707   : > { %1939 = vmatmul.msk.f32.vlgmr.msra.gmra.mxu2 %vm839_vm1, %v1467_v3  ;;  %v1985_v3 = vld [vmem:[%s2507_s16] ss:$0 sm:$0xff] }
 0x70c   : > { %v2024_v6 = vpop.eup %2023 }
 0x70d   : > { %v1468_v7 = vmul.f32 %v2024_v6, %v2016_v50 }
 0x70f   : > { %1940 = vmatmul.msk.f32.vlgmr.msra.gmra.mxu3 %vm839_vm1, %v1468_v7  ;;  %v1454_v8 = vpop.xlane.xlu2 %1453  ;;  %v1986_v7 = vld [vmem:[%s2508_s17] ss:$0 sm:$0xff] }
 0x710   : > { %2025 = vrcp.f32 %v1454_v8 }
 0x716   : > { %v2026_v11 = vpop.eup %2025 }
 0x717   : > { %v1466_v12 = vmul.f32 %v2026_v11, %v2018_v57  ;;  %v1745_v11 = vld [vmem:[%s2511_s20 + $0x10] sm:$0xff] }
 0x719   : > { %1938 = vmatmul.msk.f32.vlgmr.msra.gmra.mxu1 %vm839_vm1, %v1466_v12  ;;  %v1744_v12 = vld [vmem:[%s2511_s20 + $0x8] sm:$0xff] }
 0x71a   : > { %1763 = vmatpush.msra.mxu1 %v1758_v42 }
 0x71c   : > { %1764 = vmatpush.msra.mxu1 %v1757_v43 }
 0x71e   : > { %1765 = vmatpush.msra.mxu1 %v1756_v4 }
 0x720   : > { %1766 = vmatpush.msra.mxu1 %v1755_v48 }
 0x722   : > { %1767 = vmatpush.msra.mxu1 %v1754_v51 }
 0x724   : > { %1768 = vmatpush.msra.mxu1 %v1753_v52 }
 0x726   : > { %1769 = vmatpush.msra.mxu1 %v1752_v53 }
 0x728   : > { %1770 = vmatpush.msra.mxu1 %v1751_v54 }
 0x72a   : > { %1771 = vmatpush.msra.mxu1 %v1750_v56 }
 0x72c   : > { %1772 = vmatpush.msra.mxu1 %v1749_v58 }
 0x72e   : > { %1773 = vmatpush.msra.mxu1 %v1748_v60 }
 0x730   : > { %1774 = vmatpush.msra.mxu1 %v1747_v62 }
 0x732   : > { %1775 = vmatpush.msra.mxu1 %v1746_v0 }
 0x734   : > { %1776 = vmatpush.msra.mxu1 %v1745_v11 }
 0x736   : > { %v1492_v13 = vpop.f32.mrf.mxu0  ;;  %1777 = vmatpush.msra.mxu1 %v1744_v12 }
 0x737   : > { %1941 = vmatmul.msk.f32.vlgmr.msra.gmra.mxu0 %vm839_vm1, %v1492_v13  ;;  %v1743_v13 = vld [vmem:[%s2511_s20] sm:$0xff] }
 0x738   : > { %1778 = vmatpush.msra.mxu1 %v1743_v13 }
 0x78a   : > { %v1544_v18 = vpop.f32.mrf.mxu2 }
 0x78b   : > { %1943 = vmatmul.msk.f32.vlgmr.msrb.gmra.mxu2 %vm839_vm1, %v1544_v18 }
 0x792   : > { %v1570_v19 = vpop.f32.mrf.mxu3 }
 0x793   : > { %1944 = vmatmul.msk.f32.vlgmr.msrb.gmra.mxu3 %vm839_vm1, %v1570_v19  ;;  %v1988_v19 = vld [vmem:[%s2512_s21] ss:$0 sm:$0xff] }
 0x796   : > { %v1518_v20 = vpop.f32.mrf.mxu1 }
 0x797   : > { %1942 = vmatmul.msk.f32.vlgmr.msrb.gmra.mxu1 %vm839_vm1, %v1518_v20 }
 0x7b4   : > { %v1593_v21 = vpop.f32.mrf.mxu0 }
 0x7b5   : > { %v1665_v24 = vsel %vm801_vm0, %v1593_v21, 0.0 }
 0x80e   : > { %v1639_v22 = vpop.f32.mrf.mxu2 }
 0x80f   : > { %v1668_v28 = vsel %vm801_vm0, %v1639_v22, 0.0 }
 0x814   : > { %v1616_v23 = vpop.f32.mrf.mxu1 }
 0x815   : > { %v1666_v25 = vsel %vm801_vm0, %v1616_v23, 0.0 }
 0x816   : > { %v1667_v26 = vadd.f32 %v1666_v25, %v1665_v24  ;;  %v1662_v27 = vpop.f32.mrf.mxu3 }
 0x817   : > { %v1670_v31 = vsel %vm801_vm0, %v1662_v27, 0.0 }
 0x818   : > { %v1669_v29 = vadd.f32 %v1668_v28, %v1667_v26 }
 0x81a   : > { %v1671_v32 = vadd.f32 %v1670_v31, %v1669_v29 }
 0x81c   : > { %v1675_v33 = vadd.f32 %v1984_v30, %v1671_v32 }
 0x81e   : > { %v1676_v17 = vadd.f32 %v1675_v33, %v2335_v9  ;;  %v1712_v9 = vld [vmem:[%s2509_s18 + $0x8] sm:$0xff] }
 0x81f   : > { %1736 = vmatpush.msrb.mxu0 %v1712_v9  ;;  %v1989_v9 = vld [vmem:[%s2513_s22] ss:$0 sm:$0xff] }
 0x820   : > { %v1679_v34 = vsel %vm801_vm0, %v1676_v17, 0.0  ;;  %v1683_v35 = vmul.f32 %v1676_v17, %v1676_v17 }
 0x821   : > { %1680 = vadd.xlane.f32.xlu2 %v1679_v34  ;;  %1737 = vmatpush.msrb.mxu0 %v1711_v39 }
 0x822   : > { %v1684_v36 = vsel %vm801_vm0, %v1683_v35, 0.0 }
 0x823   : > { %1685 = vadd.xlane.f32.xlu0 %v1684_v36 }
 0x894   : > { %v1681_v40 = vpop.xlane.xlu2 %1680 }
 0x895   : > { %v1682_v41 = vmul.f32 %v1681_v40, %v2312_v49 }
 0x896   : > { %v1686_v44 = vpop.xlane.xlu0 %1685 }
 0x897   : > { %v1688_v45 = vmul.f32 %v1682_v41, %v1682_v41  ;;  %v1687_v46 = vmul.f32 %v1686_v44, %v2312_v49  ;;  %v1701_v2 = vsub.f32 %v1676_v17, %v1682_v41 }
 0x899   : > { %v1689_v47 = vsub.f32 %v1687_v46, %v1688_v45 }
 0x89b   : > { %v1690_v50 = vadd.f32 1e-05, %v1689_v47 }
 0x89d   : > { %2027 = vrsqrt.f32 %v1690_v50  ;;  %vm1697_vm13 = vweird.f32 %v1690_v50 }
 0x8a3   : > { %v2028_v55 = vpop.eup %2027 }
 0x8a4   : > { %v1692_v57 = vmul.f32 %v2028_v55, %v1690_v50  ;;  %vm1698_vm12 = vweird.f32 %v2028_v55 }
 0x8a5   : > { %vm1699_vm14 = vmor %vm1697_vm13, %vm1698_vm12 }
 0x8a6   : > { %v1693_v59 = vmul.f32 %v2028_v55, %v1692_v57 }
 0x8a8   : > { %v1694_v61 = vmul.f32 0.5, %v1693_v59 }
 0x8aa   : > { %v1695_v63 = vsub.f32 1.5, %v1694_v61 }
 0x8ac   : > { %v1696_v1 = vmul.f32 %v2028_v55, %v1695_v63 }
 0x8ae   : > { %v1700_v5 = vsel %vm1699_vm14, %v2028_v55, %v1696_v1 }
 0x8af   : > { %v1702_v6 = vmul.f32 %v1701_v2, %v1700_v5 }
 0x8b1   : > { %v1706_v8 = vmul.f32 %v1985_v3, %v1702_v6 }
 0x8b3   : > { %v1710_v10 = vadd.f32 %v1986_v7, %v1706_v8 }
 0x8b5   : > { %1945 = vmatmul.msk.f32.vlgmr.msrb.gmra.mxu0 %vm801_vm0, %v1710_v10 }
 0x932   : > { %v1739_v15 = vpop.f32.mrf.mxu0 }
 0x933   : > { %v1740_v16 = vadd.f32 %v1987_v14, %v1739_v15 }
 0x935   : > { %v1742_v18 = vmax.f32 %v1740_v16, 0.0 }
 0x937   : > { %1779 = vmatmul.f32.vlgmr.msra.gmra.mxu1 %v1742_v18 }
 0x9b4   : > { %v1780_v20 = vpop.f32.mrf.mxu1 }
 0x9b5   : > { %v1781_v21 = vadd.f32 %v1988_v19, %v1780_v20 }
 0x9b7   : > { %v1783_v22 = vadd.f32 %v1781_v21, %v1710_v10 }
 0x9b9   : > { %v1786_v23 = vsel %vm801_vm0, %v1783_v22, 0.0  ;;  %v1790_v24 = vmul.f32 %v1783_v22, %v1783_v22 }
 0x9ba   : > { %1787 = vadd.xlane.f32.xlu2 %v1786_v23 }
 0x9bb   : > { %v1791_v25 = vsel %vm801_vm0, %v1790_v24, 0.0 }
 0x9c2   : > { %1792 = vadd.xlane.f32.xlu2 %v1791_v25 }
 0xa2d   : > { %v1788_v26 = vpop.xlane.xlu2 %1787 }
 0xa2e   : > { %v1789_v27 = vmul.f32 %v1788_v26, %v2312_v49 }
 0xa30   : > { %v1795_v29 = vmul.f32 %v1789_v27, %v1789_v27  ;;  %v1808_v38 = vsub.f32 %v1783_v22, %v1789_v27 }
 0xa35   : > { %v1793_v28 = vpop.xlane.xlu2 %1792 }
 0xa36   : > { %v1794_v30 = vmul.f32 %v1793_v28, %v2312_v49  ;;  %v1990_v49 = vld [vmem:[%s2514_s23] ss:$0 sm:$0xff] }
 0xa38   : > { %v1796_v31 = vsub.f32 %v1794_v30, %v1795_v29 }
 0xa3a   : > { %v1797_v32 = vadd.f32 1e-05, %v1796_v31 }
 0xa3c   : > { %2029 = vrsqrt.f32 %v1797_v32  ;;  %vm1804_vm1 = vweird.f32 %v1797_v32 }
 0xa42   : > { %v2030_v33 = vpop.eup %2029 }
 0xa43   : > { %v1799_v17 = vmul.f32 %v2030_v33, %v1797_v32  ;;  %vm1805_vm15 = vweird.f32 %v2030_v33 }
 0xa44   : > { %vm1806_vm2 = vmor %vm1804_vm1, %vm1805_vm15 }
 0xa45   : > { %v1800_v34 = vmul.f32 %v2030_v33, %v1799_v17 }
 0xa47   : > { %v1801_v35 = vmul.f32 0.5, %v1800_v34 }
 0xa49   : > { %v1802_v36 = vsub.f32 1.5, %v1801_v35 }
 0xa4b   : > { %v1803_v37 = vmul.f32 %v2030_v33, %v1802_v36 }
 0xa4d   : > { %v1807_v39 = vsel %vm1806_vm2, %v2030_v33, %v1803_v37 }
 0xa4e   : > { %v1809_v40 = vmul.f32 %v1808_v38, %v1807_v39 }
 0xa50   : > { %v1813_v41 = vmul.f32 %v1989_v9, %v1809_v40 }
 0xa52   : > { %v1817_v42 = vadd.f32 %v1990_v49, %v1813_v41 }
 0xa54   : > { %1818 = vst.msk [vmem:[%s777_s26] sm:$0xff] %vm801_vm0, %v1817_v42 }
 0xa55 PF: > { %s34_s5 = sadd.s32 1, %s2037_s5  }
 0xa56   : > { %p31_p4 = scmp.ge.s32.totalorder %s34_s5, 4  }
 0xa58   :  { %33 = sbr.rel (!%p31_p4) target bundleno = 10 (0xa), region = 155 }

// kernel: transformer_forward.8
= control target key start
LH: loop header
LB: loop body
LE: loop exit
PB: predicated region body
PF: predicated region fallthrough
CT: control target
= control target key end

     0   :  { %s2717_s0 = inlined_call_operand.vmem [shape: f32[2,8,32], index: 0, kind: input, shape index: {}]   ;;  %s2718_s1 = inlined_call_operand.vmem [shape: f32[2,8,32], index: 1, kind: input, shape index: {}]   ;;  %s2719_s2 = inlined_call_operand.vmem [shape: s32[2,1,8], index: 2, kind: input, shape index: {}]   ;;  %s2720_s3 = inlined_call_operand.vmem [shape: s32[2,1,8], index: 3, kind: input, shape index: {}]   ;;  %s2721_s4 = inlined_call_operand.vmem [shape: f32[32,96], index: 4, kind: input, shape index: {}]   ;;  %s2722_s5 = inlined_call_operand.vmem [shape: f32[1,96], index: 5, kind: input, shape index: {}]   ;;  %s2723_s6 = inlined_call_operand.vmem [shape: f32[4,8,32], index: 6, kind: input, shape index: {}]   ;;  %s2724_s7 = inlined_call_operand.vmem [shape: f32[1,32], index: 7, kind: input, shape index: {}]   ;;  %s2725_s8 = inlined_call_operand.vmem [shape: f32[1,32], index: 8, kind: input, shape index: {}]   ;;  %s2726_s9 = inlined_call_operand.vmem [shape: f32[1,32], index: 9, kind: input, shape index: {}]   ;;  %s2727_s10 = inlined_call_operand.vmem [shape: f32[32,32], index: 10, kind: input, shape index: {}]   ;;  %s2728_s11 = inlined_call_operand.vmem [shape: f32[1,32], index: 11, kind: input, shape index: {}]   ;;  %s2729_s12 = inlined_call_operand.vmem [shape: f32[32,64], index: 12, kind: input, shape index: {}]   ;;  %s2730_s13 = inlined_call_operand.vmem [shape: f32[1,64], index: 13, kind: input, shape index: {}]   ;;  %s2731_s14 = inlined_call_operand.vmem [shape: f32[4,8,32], index: 14, kind: input, shape index: {}]   ;;  %s2732_s15 = inlined_call_operand.vmem [shape: f32[1,32], index: 15, kind: input, shape index: {}]   ;;  %s2733_s16 = inlined_call_operand.vmem [shape: f32[1,32], index: 16, kind: input, shape index: {}]   ;;  %s2734_s17 = inlined_call_operand.vmem [shape: f32[1,32], index: 17, kind: input, shape index: {}]   ;;  %s2735_s18 = inlined_call_operand.vmem [shape: f32[32,128], index: 18, kind: input, shape index: {}]   ;;  %s2736_s19 = inlined_call_operand.vmem [shape: f32[1,128], index: 19, kind: input, shape index: {}]   ;;  %s2737_s20 = inlined_call_operand.vmem [shape: f32[128,32], index: 20, kind: input, shape index: {}]   ;;  %s2738_s21 = inlined_call_operand.hbm [shape: f32[1,32], index: 21, kind: input, shape index: {}]   ;;  %s2739_s22 = inlined_call_operand.hbm [shape: f32[1,32], index: 22, kind: input, shape index: {}]   ;;  %s2740_s23 = inlined_call_operand.hbm [shape: f32[1,32], index: 23, kind: input, shape index: {}]   ;;  %s2741_s24 = inlined_call_operand.vmem [shape: f32[2,8,32], index: 24, kind: output, shape index: {}]  }
   0x1   :  { %2753 = sst [smem:[#allocation9_spill]] %s2717_s0 }
   0x2   :  { %2754 = sst [smem:[#allocation10_spill]] %s2718_s1 }
   0x3   :  { %2755 = sst [smem:[#allocation11_spill]] %s2719_s2 }
   0x4   :  { %2756 = sst [smem:[#allocation12_spill]] %s2720_s3 }
   0x5   :  { %2757 = sst [smem:[#allocation13_spill]] %s2721_s4 }
   0x6   :  { %2758 = sst [smem:[#allocation14_spill]] %s2722_s5 }
   0x7   :  { %2759 = sst [smem:[#allocation15_spill]] %s2723_s6 }
   0x8   :  { %2760 = sst [smem:[#allocation16_spill]] %s2724_s7 }
   0x9   :  { %2761 = sst [smem:[#allocation17_spill]] %s2725_s8 }
   0xa   :  { %2762 = sst [smem:[#allocation18_spill]] %s2738_s21 }
   0xb   :  { %29 = vsyncpa [#allocation3], 0 }
   0xc   :  { %30 = vsyncpa [#allocation5], 0  ;;  %s2384_s5 = smov 0  }
   0xd LB: > { %s666_s28 = sshll.u32 %s2739_s22, 4  ;;  %s1977_s6 = sadd.s32 4294967295, %s2247_s5   ;;  %s2247_s5 = sphi %s2384_s5, %s36_s5   ;;  %s667_s28 = int_to_ptr.hbm [resolvable:$true] %s666_s28 }
   0xe   : > { %p1979_p0 = scmp.ge.s32.totalorder %s2247_s5, 1  ;;  %p591_p1 = scmp.lt.s32.totalorder %s2247_s5, 3 }
   0xf   : > { %p2051_p2 = scmp.eq.s32.totalorder %s1977_s6, 0  ;;  %s2249_s29 = smov [#allocation4]  }
  0x10   : > { %p2395_p3 = pnand %p1979_p0, %p591_p1  ;;  %s668_s0 = sshll.u32 %s2249_s29, 4  ;;  %s669_s0 = int_to_ptr.vmem [resolvable:$true] %s668_s0 }
  0x11   : > { %s2764_s21 = sld [smem:[#allocation18_spill]]  ;;  %s678_s4 = sshll.u32 %s2740_s23, 4  ;;  %s679_s4 = int_to_ptr.hbm [resolvable:$true] %s678_s4 }
  0x12   : > { %p2041_p4 = pneg %p2395_p3  ;;  %s2250_s1 = smov [#allocation2]  }
  0x13   : > { %s656_s26 = sshll.u32 %s2250_s1, 4  ;;  %s2251_s27 = smov [#allocation6]   ;;  %s657_s26 = int_to_ptr.vmem [resolvable:$true] %s656_s26 }
  0x14   : > { %p2042_p5 = pnand %p2051_p2, %p2041_p4  ;;  %s680_s29 = sshll.u32 %s2251_s27, 4  ;;  %s681_s29 = int_to_ptr.vmem [resolvable:$true] %s680_s29 }
  0x15   : > { %719 = sbr.rel (%p2395_p3) target bundleno = 2660 (0xa64), region = 116 }
  0x16   : > { %2047 = dma.hbm_to_vmem [thread:$0]  (!%p2042_p5), %s667_s28, 16, %s669_s0, [#allocation5]  }
  0x17   : > { %s654_s3 = sshll.u32 %s2764_s21, 4  ;;  %s655_s3 = int_to_ptr.hbm [resolvable:$true] %s654_s3 }
  0x18   : > { %2044 = dma.hbm_to_vmem [thread:$0]  (!%p2042_p5), %s655_s3, 16, %s657_s26, [#allocation3]  }
  0x19   : > { %2050 = dma.hbm_to_vmem [thread:$0]  (!%p2042_p5), %s679_s4, 16, %s681_s29, [#allocation5]  }
  0x1a   : > { %2238 = dma.done.wait (%p2051_p2), [#allocation3], 16  }
  0x1b   : > { %2240 = vsyncadd (%p2051_p2), [#allocation3], 4294967280 }
  0x1c   : > { %2242 = dma.done.wait (%p2051_p2), [#allocation5], 32  }
  0x1d   : > { %2244 = vsyncadd (%p2051_p2), [#allocation5], 4294967264  ;;  %p804_p6 = scmp.lt.s32.totalorder %s1977_s6, 1  ;;  %s2765_s30 = sld [smem:[#allocation13_spill]]  ;;  %vm845_vm0 = vcmask 261120   ;;  %vm883_vm1 = vcmask 64512   ;;  %v824_v16 = vlaneseq }
  0x1e   : > { %s2766_s4 = sld [smem:[#allocation9_spill]]  ;;  %s2746_s3 = smov 104   ;;  %v2256_v17 = vmov 0  }
  0x1f   : > { %s2779_s6 = smov (!%p804_p6, %s1977_s6), 1  ;;  %s2767_s2 = sld [smem:[#allocation14_spill]]  ;;  %v825_v19 = vshrl.u32 %v824_v16, 7  ;;  %v827_v20 = vand.u32 127, %v824_v16 }
  0x20   : > { %s2417_s28 = sshll.u32 %s2779_s6, 3  ;;  %s2750_s21 = smov 120  }
  0x21   : > { %s2744_s25 = smov 96   ;;  %s2748_s8 = smov 112   ;;  %vm828_vm3 = vcmp.gt.s32.totalorder %v827_v20, %v825_v19  ;;  %v1318_v19 = vld [vmem:[%s2729_s12 + $0x10] sm:$0xff]  ;;  %v1317_v20 = vld [vmem:[%s2729_s12 + $0x8] sm:$0xff] }
  0x22   : > { %s2768_s26 = sld [smem:[#allocation12_spill]]  ;;  %s2257_s29 = smov 64  }
  0x23   : > { %v840_v0 = vld [vmem:[%s2765_s30 + $0x18] sm:$0xff]  ;;  %v839_v1 = vld [vmem:[%s2765_s30 + $0x10] sm:$0xff]  ;;  %v838_v2 = vld [vmem:[%s2765_s30 + $0x8] sm:$0xff]  ;;  %s2776_s0 = sld [smem:[#allocation11_spill]] }
  0x24   : > { %s807_s1 = scalar_lea.vmem %s2766_s4, %s2417_s28  ;;  %861 = vmatpush.msra.mxu0 %v840_v0  ;;  %v837_v3 = vld [vmem:[%s2765_s30] sm:$0xff]  ;;  %s2775_s4 = sld [smem:[#allocation17_spill]] }
  0x25   : > { %v2435_v4 = vld [vmem:[%s807_s1] sm:$0xff] }
  0x26   : > { %862 = vmatpush.msra.mxu0 %v839_v1  ;;  %v2090_v5 = vld [vmem:[%s2767_s2] ss:$0 sm:$0xff]  ;;  %s2769_s2 = sld [smem:[#allocation15_spill]] }
  0x28   : > { %863 = vmatpush.msra.mxu0 %v838_v2  ;;  %s817_s27 = scalar_lea.vmem %s2768_s26, %s2779_s6  ;;  %s821_s26 = scalar_lea.vmem %s2741_s24, %s2417_s28 }
  0x29   : > { %v829_v15 = vld [vmem:[%s817_s27] sm:$0x1]  ;;  %s814_s7 = scalar_lea.vmem %s2776_s0, %s2779_s6  ;;  %s2777_s6 = smov 96  }
  0x2a   : > { %864 = vmatpush.msra.mxu0 %v837_v3  ;;  %vm830_vm2 = vcmp.eq.s32.totalorder %v829_v15, 0 }
  0x2b   : > { %1991 = vmatmul.msk.f32.vlgmr.msra.gmra.mxu0 %vm845_vm0, %v2435_v4  ;;  %v831_v18 = vsel %vm830_vm2, 1, %v2256_v17 }
  0x2c   : > { %v832_v21 = vperm.slane %v831_v18, 0  ;;  %v1319_v18 = vld [vmem:[%s2729_s12 + $0x18] sm:$0xff] }
  0x2e   : > { %vm833_vm4 = vcmp.eq.s32.totalorder %v832_v21, 1  ;;  %v1316_v21 = vld [vmem:[%s2729_s12] sm:$0xff] }
  0x2f   : > { %vm834_vm5 = vmor %vm828_vm3, %vm833_vm4 }
  0xa8   : > { %v866_v6 = vpop.f32.mrf.mxu0 }
  0xa9   : > { %v2442_v7 = vadd.f32 %v2090_v5, %v866_v6 }
  0xab   : > { %879 = vrot.lane.b32.xlu1 %v2442_v7, %s2746_s3  ;;  %875 = vrot.lane.b32.xlu0 %v2442_v7, %s2750_s21  ;;  %s2770_s3 = sld [smem:[#allocation10_spill]]  ;;  %s2772_s21 = smov 120  }
  0xb3   : > { %881 = vrot.lane.b32.xlu1 %v2442_v7, %s2744_s25  ;;  %877 = vrot.lane.b32.xlu0 %v2442_v7, %s2748_s8  ;;  %s811_s8 = scalar_lea.vmem %s2770_s3, %s2417_s28 }
 0x11d   : > { %v2452_v8 = vpop.permute.xlu1 %879  ;;  %v876_v9 = vpop.permute.xlu0 %875 }
 0x11e   : > { %960 = vrot.lane.b32.xlu0 %v2452_v8, %s2744_s25  ;;  %908 = vrot.lane.b32.xlu2 %v876_v9, %s2744_s25  ;;  %v2075_v39 = vpack.i.bf16 %v876_v9, %v2442_v7 }
 0x125   : > { %v882_v10 = vpop.permute.xlu1 %881  ;;  %v2457_v11 = vpop.permute.xlu0 %877 }
 0x126   : > { %1992 = vmatpush.xpose.msk.msra.mxu2 %vm883_vm1, %v882_v10  ;;  %934 = vrot.lane.b32.xlu2 %v2457_v11, %s2744_s25 }
 0x129   : > { %1993 = vmatmul.msk.f32.vlgmr.msra.gmra.mxu2 %vm883_vm1, %v2442_v7 }
 0x178   : > { %v909_v12 = vpop.permute.xlu2 %908 }
 0x179   : > { %1994 = vmatpush.xpose.msk.msrb.mxu2 %vm883_vm1, %v909_v12  ;;  %v871_v12 = vld [vmem:[%s2769_s2 + $0x10] sm:$0xff] }
 0x17c   : > { %1995 = vmatmul.msk.f32.vlgmr.msrb.gmra.mxu2 %vm883_vm1, %v876_v9  ;;  %v869_v9 = vld [vmem:[%s2769_s2] sm:$0xff] }
 0x180   : > { %v935_v13 = vpop.permute.xlu2 %934 }
 0x181   : > { %1996 = vmatpush.xpose.msk.msra.mxu3 %vm883_vm1, %v935_v13  ;;  %v872_v13 = vld [vmem:[%s2769_s2 + $0x18] sm:$0xff] }
 0x182   : > { %1227 = vmatpush.msra.mxu1 %v872_v13  ;;  %v2095_v13 = vld [vmem:[%s2728_s11] ss:$0 sm:$0xff] }
 0x184   : > { %1997 = vmatmul.msk.f32.vlgmr.msra.gmra.mxu3 %vm883_vm1, %v2457_v11 }
 0x190   : > { %v961_v14 = vpop.permute.xlu0 %960 }
 0x191   : > { %1998 = vmatpush.xpose.msk.msrb.mxu3 %vm883_vm1, %v961_v14 }
 0x194   : > { %1999 = vmatmul.msk.f32.vlgmr.msrb.gmra.mxu3 %vm883_vm1, %v2452_v8 }
 0x1ac   : > { %v905_v22 = vpop.f32.mrf.mxu2 }
 0x1ad   : > { %v988_v23 = vsel %vm834_vm5, -1e+10, %v905_v22  ;;  %v823_v22 = vld [vmem:[%s811_s8] sm:$0xff]  ;;  %s2774_s8 = smov 104  }
 0x1ae   : > { %v992_v24 = vsel %vm883_vm1, %v988_v23, -inf }
 0x1af   : > { %993 = vmax.xlane.f32.xlu1 %v992_v24 }
 0x1ff   : > { %v931_v25 = vpop.f32.mrf.mxu2 }
 0x200   : > { %v989_v26 = vsel %vm834_vm5, -1e+10, %v931_v25 }
 0x201   : > { %v995_v27 = vsel %vm883_vm1, %v989_v26, -inf }
 0x202   : > { %996 = vmax.xlane.f32.xlu2 %v995_v27 }
 0x207   : > { %v957_v28 = vpop.f32.mrf.mxu3 }
 0x208   : > { %v990_v29 = vsel %vm834_vm5, -1e+10, %v957_v28 }
 0x209   : > { %v998_v30 = vsel %vm883_vm1, %v990_v29, -inf }
 0x20a   : > { %999 = vmax.xlane.f32.xlu0 %v998_v30 }
 0x217   : > { %v983_v31 = vpop.f32.mrf.mxu3 }
 0x218   : > { %v991_v32 = vsel %vm834_vm5, -1e+10, %v983_v31 }
 0x219   : > { %v1001_v33 = vsel %vm883_vm1, %v991_v32, -inf }
 0x21a   : > { %1002 = vmax.xlane.f32.xlu2 %v1001_v33 }
 0x222   : > { %v994_v34 = vpop.xlane.xlu1 %993 }
 0x223   : > { %v1004_v35 = vsub.f32 %v988_v23, %v994_v34 }
 0x225   : > { %v1008_v36 = vmul.f32 1.442695, %v1004_v35 }
 0x227   : > { %2103 = vpow2.f32 %v1008_v36 }
 0x22d   : > { %v2104_v37 = vpop.eup %2103 }
 0x22e   : > { %v1016_v38 = vsel %vm883_vm1, %v2104_v37, 0.0 }
 0x22f   : > { %1017 = vadd.xlane.f32.xlu1 %v1016_v38 }
 0x248   : > { %2076 = vrot.lane.b32.xlu1 %v2075_v39, %s2257_s29 }
 0x275   : > { %v997_v40 = vpop.xlane.xlu2 %996 }
 0x276   : > { %v1005_v41 = vsub.f32 %v989_v26, %v997_v40  ;;  %v2258_v40 = vmov 32.0  }
 0x278   : > { %v1010_v42 = vmul.f32 1.442695, %v1005_v41 }
 0x27a   : > { %2105 = vpow2.f32 %v1010_v42 }
 0x27d   : > { %v1000_v43 = vpop.xlane.xlu0 %999 }
 0x27e   : > { %v1006_v44 = vsub.f32 %v990_v29, %v1000_v43 }
 0x280   : > { %v2106_v45 = vpop.eup %2105  ;;  %v1012_v46 = vmul.f32 1.442695, %v1006_v44 }
 0x281   : > { %v1019_v47 = vsel %vm883_vm1, %v2106_v45, 0.0 }
 0x282   : > { %2107 = vpow2.f32 %v1012_v46  ;;  %1020 = vadd.xlane.f32.xlu2 %v1019_v47  ;;  %v1286_v47 = vld [vmem:[%s2727_s10 + $0x8] sm:$0xff] }
 0x288   : > { %v2108_v48 = vpop.eup %2107 }
 0x289   : > { %v1022_v49 = vsel %vm883_vm1, %v2108_v48, 0.0 }
 0x28a   : > { %1023 = vadd.xlane.f32.xlu0 %v1022_v49 }
 0x28d   : > { %v1003_v50 = vpop.xlane.xlu2 %1002 }
 0x28e   : > { %v1007_v51 = vsub.f32 %v991_v32, %v1003_v50 }
 0x290   : > { %v1014_v52 = vmul.f32 1.442695, %v1007_v51 }
 0x292   : > { %2109 = vpow2.f32 %v1014_v52  ;;  %v2094_v52 = vld [vmem:[%s2730_s13] ss:$0 sm:$0xff] }
 0x298   : > { %v2110_v53 = vpop.eup %2109 }
 0x299   : > { %v1025_v54 = vsel %vm883_vm1, %v2110_v53, 0.0 }
 0x29a   : > { %1026 = vadd.xlane.f32.xlu2 %v1025_v54 }
 0x29e   : > { %1088 = vrot.lane.b32.xlu0 %v2457_v11, %s2257_s29  ;;  %v870_v11 = vld [vmem:[%s2769_s2 + $0x8] sm:$0xff]  ;;  %s2771_s2 = sld [smem:[#allocation16_spill]] }
 0x2a2   : > { %v1018_v55 = vpop.xlane.xlu1 %1017 }
 0x2a3   : > { %2111 = vrcp.f32 %v1018_v55 }
 0x2a4   : > { %v2091_v32 = vld [vmem:[%s2771_s2] ss:$0 sm:$0xff]  ;;  %s2773_s2 = smov 112  }
 0x2a9   : > { %v2112_v56 = vpop.eup %2111 }
 0x2aa   : > { %v1032_v60 = vmul.f32 %v2112_v56, %v2104_v37 }
 0x2b2   : > { %1114 = vrot.lane.b32.xlu2 %v2452_v8, %s2257_s29 }
 0x2ba   : > { %v2077_v57 = vpop.permute.xlu1 %2076 }
 0x2bb   : > { %v2079_v58 = vunpack.i.h.bf16 %v2077_v57  ;;  %v2078_v59 = vunpack.i.l.bf16 %v2077_v57 }
 0x2bd   : > { %1057 = vmatpush.msra.mxu2 %v2078_v59  ;;  %1083 = vmatpush.msra.mxu3 %v2079_v58 }
 0x2be   : > { %2000 = vmatmul.msk.f32.vlgmr.msra.gmra.mxu2 %vm883_vm1, %v1032_v60 }
 0x2bf   : > { %1158 = vmatpush.msrb.mxu2 %v869_v9  ;;  %1181 = vmatpush.msrb.mxu3 %v870_v11 }
 0x2f5   : > { %v1021_v61 = vpop.xlane.xlu2 %1020 }
 0x2f6   : > { %2113 = vrcp.f32 %v1021_v61 }
 0x2fc   : > { %v2114_v62 = vpop.eup %2113 }
 0x2fd   : > { %v1033_v63 = vmul.f32 %v2114_v62, %v2106_v45  ;;  %v1024_v0 = vpop.xlane.xlu0 %1023  ;;  %v1288_v45 = vld [vmem:[%s2727_s10 + $0x18] sm:$0xff] }
 0x2fe   : > { %2115 = vrcp.f32 %v1024_v0  ;;  %1308 = vmatpush.msra.mxu2 %v1288_v45 }
 0x2ff   : > { %2001 = vmatmul.msk.f32.vlgmr.msra.gmra.mxu3 %vm883_vm1, %v1033_v63 }
 0x300   : > { %1339 = vmatpush.msra.mxu3 %v1319_v18 }
 0x302   : > { %1340 = vmatpush.msra.mxu3 %v1318_v19  ;;  %v835_v19 = vld [vmem:[%s814_s7] sm:$0x1] }
 0x303   : > { %vm836_vm10 = vcmp.eq.s32.totalorder %v835_v19, 0 }
 0x304   : > { %v2116_v1 = vpop.eup %2115  ;;  %1341 = vmatpush.msra.mxu3 %v1317_v20 }
 0x305   : > { %v1034_v5 = vmul.f32 %v2116_v1, %v2108_v48  ;;  %v1285_v48 = vld [vmem:[%s2727_s10] sm:$0xff] }
 0x306   : > { %1342 = vmatpush.msra.mxu3 %v1316_v21  ;;  %v1462_v21 = vsel %vm836_vm10, 1, %v2256_v17 }
 0x30d   : > { %v1027_v2 = vpop.xlane.xlu2 %1026 }
 0x30e   : > { %2117 = vrcp.f32 %v1027_v2 }
 0x30f   : > { %2119 = vrcp.f32 %v2258_v40 }
 0x310   : > { %v1089_v3 = vpop.permute.xlu0 %1088 }
 0x311   : > { %1109 = vmatpush.msrb.mxu0 %v1089_v3  ;;  %v2092_v3 = vld [vmem:[%s2775_s4] ss:$0 sm:$0xff] }
 0x312   : > { %2002 = vmatmul.msk.f32.vlgmr.msrb.gmra.mxu0 %vm883_vm1, %v1034_v5 }
 0x314   : > { %v2118_v6 = vpop.eup %2117 }
 0x315   : > { %v1115_v7 = vpop.permute.xlu2 %1114  ;;  %v1035_v8 = vmul.f32 %v2118_v6, %v2110_v53  ;;  %v2120_v41 = vpop.eup %2119 }
 0x316   : > { %1135 = vmatpush.msra.mxu0 %v1115_v7  ;;  %v1250_v42 = vmul.f32 32.0, %v2120_v41  ;;  %vm1254_vm6 = vweird.f32 %v2120_v41  ;;  %v2093_v7 = vld [vmem:[%s2726_s9] ss:$0 sm:$0xff] }
 0x318   : > { %1204 = vmatpush.msrb.mxu0 %v871_v12  ;;  %v1251_v43 = vsub.f32 1.0, %v1250_v42 }
 0x31a   : > { %2003 = vmatmul.msk.f32.vlgmr.msra.gmra.mxu0 %vm883_vm1, %v1035_v8  ;;  %v1252_v44 = vmul.f32 %v2120_v41, %v1251_v43 }
 0x31c   : > { %v1253_v46 = vadd.f32 %v2120_v41, %v1252_v44 }
 0x31e   : > { %v2547_v49 = vsel %vm1254_vm6, %v2120_v41, %v1253_v46 }
 0x341   : > { %v1059_v10 = vpop.f32.mrf.mxu2 }
 0x342   : > { %2004 = vmatmul.msk.f32.vlgmr.msrb.gmra.mxu2 %vm883_vm1, %v1059_v10 }
 0x382   : > { %v1085_v14 = vpop.f32.mrf.mxu3 }
 0x383   : > { %2005 = vmatmul.msk.f32.vlgmr.msrb.gmra.mxu3 %vm883_vm1, %v1085_v14 }
 0x38b   : > { %2009 = vmatmul.msk.f32.vlgmr.msra.gmra.mxu3 %vm845_vm0, %v823_v22  ;;  %v1463_v22 = vperm.slane %v1462_v21, 0 }
 0x38d   : > { %vm1464_vm11 = vcmp.eq.s32.totalorder %v1463_v22, 1 }
 0x38f   : > { %v1111_v15 = vpop.f32.mrf.mxu0 }
 0x390   : > { %2006 = vmatmul.msk.f32.vlgmr.msrb.gmra.mxu0 %vm883_vm1, %v1111_v15 }
 0x397   : > { %v1137_v16 = vpop.f32.mrf.mxu0 }
 0x398   : > { %2007 = vmatmul.msk.f32.vlgmr.msra.gmra.mxu1 %vm883_vm1, %v1137_v16 }
 0x3c5   : > { %v1160_v24 = vpop.f32.mrf.mxu2 }
 0x3c6   : > { %v1232_v27 = vsel %vm845_vm0, %v1160_v24, 0.0 }
 0x406   : > { %v1183_v23 = vpop.f32.mrf.mxu3 }
 0x407   : > { %v1233_v26 = vsel %vm845_vm0, %v1183_v23, 0.0 }
 0x408   : > { %v1234_v29 = vadd.f32 %v1233_v26, %v1232_v27 }
 0x40d   : > { %v1206_v25 = vpop.f32.mrf.mxu0 }
 0x40e   : > { %v1235_v28 = vsel %vm845_vm0, %v1206_v25, 0.0  ;;  %v1344_v53 = vpop.f32.mrf.mxu3 }
 0x40f   : > { %v1236_v30 = vadd.f32 %v1235_v28, %v1234_v29  ;;  %v2554_v57 = vadd.f32 %v2094_v52, %v1344_v53 }
 0x411   : > { %1362 = vrot.lane.b32.xlu2 %v2554_v57, %s2773_s2  ;;  %2010 = vmatpush.xpose.msk.msra.mxu0 %vm883_vm1, %v2554_v57 }
 0x415   : > { %v1229_v31 = vpop.f32.mrf.mxu1 }
 0x416   : > { %v1237_v33 = vsel %vm845_vm0, %v1229_v31, 0.0 }
 0x417   : > { %v1238_v34 = vadd.f32 %v1237_v33, %v1236_v30 }
 0x419   : > { %v1242_v35 = vadd.f32 %v2091_v32, %v1238_v34  ;;  %1364 = vrot.lane.b32.xlu2 %v2554_v57, %s2774_s8 }
 0x41b   : > { %v1243_v36 = vadd.f32 %v1242_v35, %v2435_v4  ;;  %v1287_v4 = vld [vmem:[%s2727_s10 + $0x10] sm:$0xff] }
 0x41c   : > { %1309 = vmatpush.msra.mxu2 %v1287_v4 }
 0x41d   : > { %v1246_v37 = vsel %vm845_vm0, %v1243_v36, 0.0  ;;  %v1257_v38 = vmul.f32 %v1243_v36, %v1243_v36 }
 0x41e   : > { %1247 = vadd.xlane.f32.xlu1 %v1246_v37  ;;  %1310 = vmatpush.msra.mxu2 %v1286_v47 }
 0x41f   : > { %v1258_v39 = vsel %vm845_vm0, %v1257_v38, 0.0 }
 0x420   : > { %1259 = vadd.xlane.f32.xlu0 %v1258_v39  ;;  %1311 = vmatpush.msra.mxu2 %v1285_v48 }
 0x437   : > { %1360 = vrot.lane.b32.xlu1 %v2554_v57, %s2772_s21 }
 0x46b   : > { %v1363_v11 = vpop.permute.xlu2 %1362 }
 0x46c   : > { %2014 = vmatpush.xpose.msk.msrb.mxu2 %vm883_vm1, %v1363_v11 }
 0x473   : > { %v1365_v12 = vpop.permute.xlu2 %1364 }
 0x474   : > { %2016 = vmatpush.xpose.msk.msrb.mxu3 %vm883_vm1, %v1365_v12  ;;  %v2080_v37 = vpack.i.bf16 %v1365_v12, %v1363_v11 }
 0x491   : > { %v1248_v50 = vpop.xlane.xlu1 %1247 }
 0x492   : > { %v1256_v51 = vmul.f32 %v2547_v49, %v1248_v50 }
 0x493   : > { %v1260_v54 = vpop.xlane.xlu0 %1259 }
 0x494   : > { %v1262_v55 = vmul.f32 %v1256_v51, %v1256_v51  ;;  %v1261_v56 = vmul.f32 %v1260_v54, %v2547_v49  ;;  %v1275_v2 = vsub.f32 %v1243_v36, %v1256_v51 }
 0x496   : > { %v1263_v58 = vsub.f32 %v1261_v56, %v1262_v55 }
 0x498   : > { %v1264_v59 = vadd.f32 1e-05, %v1263_v58 }
 0x49a   : > { %2121 = vrsqrt.f32 %v1264_v59  ;;  %vm1271_vm8 = vweird.f32 %v1264_v59 }
 0x4a0   : > { %v2122_v60 = vpop.eup %2121 }
 0x4a1   : > { %v1266_v61 = vmul.f32 %v2122_v60, %v1264_v59  ;;  %vm1272_vm7 = vweird.f32 %v2122_v60 }
 0x4a2   : > { %vm1273_vm9 = vmor %vm1271_vm8, %vm1272_vm7 }
 0x4a3   : > { %v1267_v62 = vmul.f32 %v2122_v60, %v1266_v61 }
 0x4a5   : > { %v1268_v63 = vmul.f32 0.5, %v1267_v62 }
 0x4a7   : > { %v1269_v0 = vsub.f32 1.5, %v1268_v63 }
 0x4a9   : > { %v1270_v1 = vmul.f32 %v2122_v60, %v1269_v0  ;;  %v1361_v10 = vpop.permute.xlu1 %1360 }
 0x4aa   : > { %2012 = vmatpush.xpose.msk.msrb.mxu1 %vm883_vm1, %v1361_v10  ;;  %v2085_v40 = vpack.i.bf16 %v1361_v10, %v2554_v57  ;;  %v1347_v10 = vld [vmem:[%s2731_s14] sm:$0xff] }
 0x4ab   : > { %v1274_v5 = vsel %vm1273_vm9, %v2122_v60, %v1270_v1 }
 0x4ac   : > { %v1276_v6 = vmul.f32 %v1275_v2, %v1274_v5 }
 0x4ae   : > { %v1280_v8 = vmul.f32 %v2092_v3, %v1276_v6 }
 0x4b0   : > { %v2570_v9 = vadd.f32 %v2093_v7, %v1280_v8 }
 0x4b2   : > { %2008 = vmatmul.msk.f32.vlgmr.msra.gmra.mxu2 %vm845_vm0, %v2570_v9 }
 0x535   : > { %v1313_v14 = vpop.f32.mrf.mxu2 }
 0x536   : > { %v1314_v15 = vadd.f32 %v2095_v13, %v1313_v14  ;;  %v1349_v14 = vld [vmem:[%s2731_s14 + $0x10] sm:$0xff] }
 0x538   : > { %1353 = vrot.lane.b32.xlu0 %v1314_v15, %s2772_s21  ;;  %1355 = vrot.lane.b32.xlu2 %v1314_v15, %s2773_s2 }
 0x539   : > { %2011 = vmatmul.msk.f32.vlgmr.msra.gmra.mxu0 %vm883_vm1, %v1314_v15 }
 0x540   : > { %1357 = vrot.lane.b32.xlu2 %v1314_v15, %s2774_s8  ;;  %v1350_v15 = vld [vmem:[%s2731_s14 + $0x18] sm:$0xff] }
 0x592   : > { %v1356_v16 = vpop.permute.xlu2 %1355 }
 0x593   : > { %2015 = vmatmul.msk.f32.vlgmr.msrb.gmra.mxu2 %vm883_vm1, %v1356_v16  ;;  %v1348_v16 = vld [vmem:[%s2731_s14 + $0x8] sm:$0xff] }
 0x59a   : > { %v1358_v18 = vpop.permute.xlu2 %1357 }
 0x59b   : > { %2017 = vmatmul.msk.f32.vlgmr.msrb.gmra.mxu3 %vm883_vm1, %v1358_v18 }
 0x5aa   : > { %v1354_v20 = vpop.permute.xlu0 %1353 }
 0x5ab   : > { %2013 = vmatmul.msk.f32.vlgmr.msrb.gmra.mxu1 %vm883_vm1, %v1354_v20 }
 0x5b6   : > { %v1387_v23 = vpop.f32.mrf.mxu0 }
 0x5b7   : > { %v1465_v24 = vsel %vm1464_vm11, -1e+10, %v1387_v23 }
 0x5b8   : > { %v1469_v25 = vsel %vm883_vm1, %v1465_v24, -inf }
 0x5b9   : > { %1470 = vmax.xlane.f32.xlu1 %v1469_v25 }
 0x616   : > { %v1435_v26 = vpop.f32.mrf.mxu2 }
 0x617   : > { %v1467_v27 = vsel %vm1464_vm11, -1e+10, %v1435_v26 }
 0x618   : > { %v1475_v28 = vsel %vm883_vm1, %v1467_v27, -inf }
 0x619   : > { %1476 = vmax.xlane.f32.xlu2 %v1475_v28 }
 0x61e   : > { %v1459_v29 = vpop.f32.mrf.mxu3 }
 0x61f   : > { %v1468_v30 = vsel %vm1464_vm11, -1e+10, %v1459_v29 }
 0x620   : > { %v1478_v31 = vsel %vm883_vm1, %v1468_v30, -inf }
 0x621   : > { %1479 = vmax.xlane.f32.xlu0 %v1478_v31 }
 0x628   : > { %v1411_v32 = vpop.f32.mrf.mxu1 }
 0x629   : > { %v1466_v33 = vsel %vm1464_vm11, -1e+10, %v1411_v32 }
 0x62a   : > { %v1472_v17 = vsel %vm883_vm1, %v1466_v33, -inf }
 0x62b   : > { %1473 = vmax.xlane.f32.xlu2 %v1472_v17 }
 0x62c   : > { %v1471_v34 = vpop.xlane.xlu1 %1470 }
 0x62d   : > { %v1481_v35 = vsub.f32 %v1465_v24, %v1471_v34 }
 0x62f   : > { %v1485_v36 = vmul.f32 1.442695, %v1481_v35 }
 0x631   : > { %2123 = vpow2.f32 %v1485_v36 }
 0x635   : > { %2081 = vrot.lane.b32.xlu0 %v2080_v37, %s2777_s6  ;;  %v1758_v37 = vld [vmem:[%s2735_s18 + $0x18] sm:$0xff] }
 0x637   : > { %v2124_v38 = vpop.eup %2123 }
 0x638   : > { %v1493_v39 = vsel %vm883_vm1, %v2124_v38, 0.0 }
 0x639   : > { %1494 = vadd.xlane.f32.xlu1 %v1493_v39  ;;  %v1755_v39 = vld [vmem:[%s2735_s18] sm:$0xff] }
 0x652   : > { %2086 = vrot.lane.b32.xlu1 %v2085_v40, %s2777_s6 }
 0x68c   : > { %v1477_v41 = vpop.xlane.xlu2 %1476 }
 0x68d   : > { %v1483_v42 = vsub.f32 %v1467_v27, %v1477_v41 }
 0x68f   : > { %v1489_v43 = vmul.f32 1.442695, %v1483_v42  ;;  %v1802_v42 = vld [vmem:[%s2737_s20 + $0x78] sm:$0xff] }
 0x691   : > { %2125 = vpow2.f32 %v1489_v43  ;;  %v1801_v43 = vld [vmem:[%s2737_s20 + $0x70] sm:$0xff] }
 0x694   : > { %v1480_v44 = vpop.xlane.xlu0 %1479 }
 0x695   : > { %v1484_v45 = vsub.f32 %v1468_v30, %v1480_v44  ;;  %v2096_v30 = vld [vmem:[%s2732_s15] ss:$0 sm:$0xff] }
 0x697   : > { %v2126_v46 = vpop.eup %2125  ;;  %v1491_v4 = vmul.f32 1.442695, %v1484_v45 }
 0x698   : > { %v1499_v47 = vsel %vm883_vm1, %v2126_v46, 0.0 }
 0x699   : > { %2127 = vpow2.f32 %v1491_v4  ;;  %1500 = vadd.xlane.f32.xlu2 %v1499_v47  ;;  %v1800_v4 = vld [vmem:[%s2737_s20 + $0x68] sm:$0xff] }
 0x69e   : > { %v1474_v48 = vpop.xlane.xlu2 %1473 }
 0x69f   : > { %v2128_v50 = vpop.eup %2127  ;;  %v1482_v51 = vsub.f32 %v1466_v33, %v1474_v48  ;;  %v1799_v48 = vld [vmem:[%s2737_s20 + $0x60] sm:$0xff] }
 0x6a0   : > { %v1502_v52 = vsel %vm883_vm1, %v2128_v50, 0.0 }
 0x6a1   : > { %v1487_v53 = vmul.f32 1.442695, %v1482_v51  ;;  %1503 = vadd.xlane.f32.xlu2 %v1502_v52  ;;  %v1798_v51 = vld [vmem:[%s2737_s20 + $0x58] sm:$0xff]  ;;  %v1797_v52 = vld [vmem:[%s2737_s20 + $0x50] sm:$0xff] }
 0x6a3   : > { %2129 = vpow2.f32 %v1487_v53  ;;  %v1796_v53 = vld [vmem:[%s2737_s20 + $0x48] sm:$0xff] }
 0x6a7   : > { %v2082_v54 = vpop.permute.xlu0 %2081 }
 0x6a8   : > { %v2084_v55 = vunpack.i.h.bf16 %v2082_v54  ;;  %v2083_v56 = vunpack.i.l.bf16 %v2082_v54  ;;  %v1795_v54 = vld [vmem:[%s2737_s20 + $0x40] sm:$0xff] }
 0x6a9   : > { %v2130_v57 = vpop.eup %2129 }
 0x6aa   : > { %1586 = vmatpush.msra.mxu2 %v2083_v56  ;;  %1612 = vmatpush.msra.mxu3 %v2084_v55  ;;  %v1496_v58 = vsel %vm883_vm1, %v2130_v57, 0.0  ;;  %v1794_v56 = vld [vmem:[%s2737_s20 + $0x38] sm:$0xff] }
 0x6ab   : > { %1497 = vadd.xlane.f32.xlu2 %v1496_v58  ;;  %v1793_v58 = vld [vmem:[%s2737_s20 + $0x30] sm:$0xff] }
 0x6ac   : > { %v1495_v59 = vpop.xlane.xlu1 %1494  ;;  %1681 = vmatpush.msrb.mxu2 %v1349_v14  ;;  %1704 = vmatpush.msrb.mxu3 %v1350_v15  ;;  %v2099_v14 = vld [vmem:[%s2736_s19] ss:$0 sm:$0xff] }
 0x6ad   : > { %2131 = vrcp.f32 %v1495_v59 }
 0x6b3   : > { %v2132_v60 = vpop.eup %2131 }
 0x6b4   : > { %v1509_v0 = vmul.f32 %v2132_v60, %v2124_v38  ;;  %v1757_v38 = vld [vmem:[%s2735_s18 + $0x10] sm:$0xff]  ;;  %v1792_v60 = vld [vmem:[%s2737_s20 + $0x28] sm:$0xff] }
 0x6c4   : > { %v2087_v61 = vpop.permute.xlu1 %2086 }
 0x6c5   : > { %v2089_v62 = vunpack.i.h.bf16 %v2087_v61  ;;  %v2088_v63 = vunpack.i.l.bf16 %v2087_v61 }
 0x6c7   : > { %1534 = vmatpush.msrb.mxu0 %v2088_v63  ;;  %1560 = vmatpush.msra.mxu1 %v2089_v62  ;;  %v1791_v62 = vld [vmem:[%s2737_s20 + $0x20] sm:$0xff] }
 0x6c8   : > { %2018 = vmatmul.msk.f32.vlgmr.msrb.gmra.mxu0 %vm883_vm1, %v1509_v0  ;;  %v1790_v0 = vld [vmem:[%s2737_s20 + $0x18] sm:$0xff] }
 0x6c9   : > { %1635 = vmatpush.msra.mxu0 %v1347_v10  ;;  %1658 = vmatpush.msrb.mxu1 %v1348_v16 }
 0x6cb   : > { %1778 = vmatpush.msrb.mxu0 %v1758_v37 }
 0x6cd   : > { %1779 = vmatpush.msrb.mxu0 %v1757_v38 }
 0x70c   : > { %v1501_v1 = vpop.xlane.xlu2 %1500 }
 0x70d   : > { %2133 = vrcp.f32 %v1501_v1 }
 0x713   : > { %v2134_v2 = vpop.eup %2133 }
 0x714   : > { %v1511_v3 = vmul.f32 %v2134_v2, %v2126_v46  ;;  %v1504_v5 = vpop.xlane.xlu2 %1503 }
 0x715   : > { %2135 = vrcp.f32 %v1504_v5 }
 0x716   : > { %2020 = vmatmul.msk.f32.vlgmr.msra.gmra.mxu2 %vm883_vm1, %v1511_v3  ;;  %v2097_v3 = vld [vmem:[%s2733_s16] ss:$0 sm:$0xff] }
 0x71b   : > { %v2136_v6 = vpop.eup %2135 }
 0x71c   : > { %v1512_v7 = vmul.f32 %v2136_v6, %v2128_v50 }
 0x71e   : > { %2021 = vmatmul.msk.f32.vlgmr.msra.gmra.mxu3 %vm883_vm1, %v1512_v7  ;;  %v1498_v8 = vpop.xlane.xlu2 %1497  ;;  %v2098_v7 = vld [vmem:[%s2734_s17] ss:$0 sm:$0xff] }
 0x71f   : > { %2137 = vrcp.f32 %v1498_v8 }
 0x725   : > { %v2138_v11 = vpop.eup %2137 }
 0x726   : > { %v1510_v12 = vmul.f32 %v2138_v11, %v2130_v57  ;;  %v1789_v11 = vld [vmem:[%s2737_s20 + $0x10] sm:$0xff] }
 0x728   : > { %2019 = vmatmul.msk.f32.vlgmr.msra.gmra.mxu1 %vm883_vm1, %v1510_v12  ;;  %v1788_v12 = vld [vmem:[%s2737_s20 + $0x8] sm:$0xff] }
 0x729   : > { %1807 = vmatpush.msra.mxu1 %v1802_v42 }
 0x72b   : > { %1808 = vmatpush.msra.mxu1 %v1801_v43 }
 0x72d   : > { %1809 = vmatpush.msra.mxu1 %v1800_v4 }
 0x72f   : > { %1810 = vmatpush.msra.mxu1 %v1799_v48 }
 0x731   : > { %1811 = vmatpush.msra.mxu1 %v1798_v51 }
 0x733   : > { %1812 = vmatpush.msra.mxu1 %v1797_v52 }
 0x735   : > { %1813 = vmatpush.msra.mxu1 %v1796_v53 }
 0x737   : > { %1814 = vmatpush.msra.mxu1 %v1795_v54 }
 0x739   : > { %1815 = vmatpush.msra.mxu1 %v1794_v56 }
 0x73b   : > { %1816 = vmatpush.msra.mxu1 %v1793_v58 }
 0x73d   : > { %1817 = vmatpush.msra.mxu1 %v1792_v60 }
 0x73f   : > { %1818 = vmatpush.msra.mxu1 %v1791_v62 }
 0x741   : > { %1819 = vmatpush.msra.mxu1 %v1790_v0 }
 0x743   : > { %1820 = vmatpush.msra.mxu1 %v1789_v11 }
 0x745   : > { %v1536_v13 = vpop.f32.mrf.mxu0  ;;  %1821 = vmatpush.msra.mxu1 %v1788_v12 }
 0x746   : > { %2022 = vmatmul.msk.f32.vlgmr.msra.gmra.mxu0 %vm883_vm1, %v1536_v13  ;;  %v1787_v13 = vld [vmem:[%s2737_s20] sm:$0xff] }
 0x747   : > { %1822 = vmatpush.msra.mxu1 %v1787_v13 }
 0x799   : > { %v1588_v18 = vpop.f32.mrf.mxu2 }
 0x79a   : > { %2024 = vmatmul.msk.f32.vlgmr.msrb.gmra.mxu2 %vm883_vm1, %v1588_v18 }
 0x7a1   : > { %v1614_v19 = vpop.f32.mrf.mxu3 }
 0x7a2   : > { %2025 = vmatmul.msk.f32.vlgmr.msrb.gmra.mxu3 %vm883_vm1, %v1614_v19  ;;  %v2100_v19 = vld [vmem:[#allocation2] ss:$0 sm:$0xff] }
 0x7a5   : > { %v1562_v20 = vpop.f32.mrf.mxu1 }
 0x7a6   : > { %2023 = vmatmul.msk.f32.vlgmr.msrb.gmra.mxu1 %vm883_vm1, %v1562_v20 }
 0x7c3   : > { %v1637_v21 = vpop.f32.mrf.mxu0 }
 0x7c4   : > { %v1709_v24 = vsel %vm845_vm0, %v1637_v21, 0.0 }
 0x81d   : > { %v1683_v22 = vpop.f32.mrf.mxu2 }
 0x81e   : > { %v1712_v28 = vsel %vm845_vm0, %v1683_v22, 0.0 }
 0x823   : > { %v1660_v23 = vpop.f32.mrf.mxu1 }
 0x824   : > { %v1710_v25 = vsel %vm845_vm0, %v1660_v23, 0.0 }
 0x825   : > { %v1711_v26 = vadd.f32 %v1710_v25, %v1709_v24  ;;  %v1706_v27 = vpop.f32.mrf.mxu3 }
 0x826   : > { %v1714_v31 = vsel %vm845_vm0, %v1706_v27, 0.0 }
 0x827   : > { %v1713_v29 = vadd.f32 %v1712_v28, %v1711_v26 }
 0x829   : > { %v1715_v32 = vadd.f32 %v1714_v31, %v1713_v29 }
 0x82b   : > { %v1719_v33 = vadd.f32 %v2096_v30, %v1715_v32 }
 0x82d   : > { %v1720_v17 = vadd.f32 %v1719_v33, %v2570_v9  ;;  %v1756_v9 = vld [vmem:[%s2735_s18 + $0x8] sm:$0xff] }
 0x82e   : > { %1780 = vmatpush.msrb.mxu0 %v1756_v9  ;;  %v2101_v9 = vld [vmem:[#allocation4] ss:$0 sm:$0xff] }
 0x82f   : > { %v1723_v34 = vsel %vm845_vm0, %v1720_v17, 0.0  ;;  %v1727_v35 = vmul.f32 %v1720_v17, %v1720_v17 }
 0x830   : > { %1724 = vadd.xlane.f32.xlu2 %v1723_v34  ;;  %1781 = vmatpush.msrb.mxu0 %v1755_v39 }
 0x831   : > { %v1728_v36 = vsel %vm845_vm0, %v1727_v35, 0.0 }
 0x832   : > { %1729 = vadd.xlane.f32.xlu0 %v1728_v36 }
 0x8a3   : > { %v1725_v40 = vpop.xlane.xlu2 %1724 }
 0x8a4   : > { %v1726_v41 = vmul.f32 %v1725_v40, %v2547_v49  ;;  %v2102_v40 = vld [vmem:[#allocation6] ss:$0 sm:$0xff] }
 0x8a5   : > { %v1730_v44 = vpop.xlane.xlu0 %1729 }
 0x8a6   : > { %v1732_v45 = vmul.f32 %v1726_v41, %v1726_v41  ;;  %v1731_v46 = vmul.f32 %v1730_v44, %v2547_v49  ;;  %v1745_v2 = vsub.f32 %v1720_v17, %v1726_v41 }
 0x8a8   : > { %v1733_v47 = vsub.f32 %v1731_v46, %v1732_v45 }
 0x8aa   : > { %v1734_v50 = vadd.f32 1e-05, %v1733_v47 }
 0x8ac   : > { %2139 = vrsqrt.f32 %v1734_v50  ;;  %vm1741_vm13 = vweird.f32 %v1734_v50 }
 0x8b2   : > { %v2140_v55 = vpop.eup %2139 }
 0x8b3   : > { %v1736_v57 = vmul.f32 %v2140_v55, %v1734_v50  ;;  %vm1742_vm12 = vweird.f32 %v2140_v55 }
 0x8b4   : > { %vm1743_vm14 = vmor %vm1741_vm13, %vm1742_vm12 }
 0x8b5   : > { %v1737_v59 = vmul.f32 %v2140_v55, %v1736_v57 }
 0x8b7   : > { %v1738_v61 = vmul.f32 0.5, %v1737_v59 }
 0x8b9   : > { %v1739_v63 = vsub.f32 1.5, %v1738_v61 }
 0x8bb   : > { %v1740_v1 = vmul.f32 %v2140_v55, %v1739_v63 }
 0x8bd   : > { %v1744_v5 = vsel %vm1743_vm14, %v2140_v55, %v1740_v1 }
 0x8be   : > { %v1746_v6 = vmul.f32 %v1745_v2, %v1744_v5 }
 0x8c0   : > { %v1750_v8 = vmul.f32 %v2097_v3, %v1746_v6 }
 0x8c2   : > { %v1754_v10 = vadd.f32 %v2098_v7, %v1750_v8 }
 0x8c4   : > { %2026 = vmatmul.msk.f32.vlgmr.msrb.gmra.mxu0 %vm845_vm0, %v1754_v10 }
 0x941   : > { %v1783_v15 = vpop.f32.mrf.mxu0 }
 0x942   : > { %v1784_v16 = vadd.f32 %v2099_v14, %v1783_v15 }
 0x944   : > { %v1786_v18 = vmax.f32 %v1784_v16, 0.0 }
 0x946   : > { %1823 = vmatmul.f32.vlgmr.msra.gmra.mxu1 %v1786_v18 }
 0x9c3   : > { %v1824_v20 = vpop.f32.mrf.mxu1 }
 0x9c4   : > { %v1825_v21 = vadd.f32 %v2100_v19, %v1824_v20 }
 0x9c6   : > { %v1827_v22 = vadd.f32 %v1825_v21, %v1754_v10 }
 0x9c8   : > { %v1830_v23 = vsel %vm845_vm0, %v1827_v22, 0.0  ;;  %v1834_v24 = vmul.f32 %v1827_v22, %v1827_v22 }
 0x9c9   : > { %1831 = vadd.xlane.f32.xlu2 %v1830_v23 }
 0x9ca   : > { %v1835_v25 = vsel %vm845_vm0, %v1834_v24, 0.0 }
 0x9d1   : > { %1836 = vadd.xlane.f32.xlu2 %v1835_v25 }
 0xa3c   : > { %v1832_v26 = vpop.xlane.xlu2 %1831 }
 0xa3d   : > { %v1833_v27 = vmul.f32 %v1832_v26, %v2547_v49 }
 0xa3f   : > { %v1839_v29 = vmul.f32 %v1833_v27, %v1833_v27  ;;  %v1852_v38 = vsub.f32 %v1827_v22, %v1833_v27 }
 0xa44   : > { %v1837_v28 = vpop.xlane.xlu2 %1836 }
 0xa45   : > { %v1838_v30 = vmul.f32 %v1837_v28, %v2547_v49 }
 0xa47   : > { %v1840_v31 = vsub.f32 %v1838_v30, %v1839_v29 }
 0xa49   : > { %v1841_v32 = vadd.f32 1e-05, %v1840_v31 }
 0xa4b   : > { %2141 = vrsqrt.f32 %v1841_v32  ;;  %vm1848_vm1 = vweird.f32 %v1841_v32 }
 0xa51   : > { %v2142_v33 = vpop.eup %2141 }
 0xa52   : > { %v1843_v17 = vmul.f32 %v2142_v33, %v1841_v32  ;;  %vm1849_vm15 = vweird.f32 %v2142_v33 }
 0xa53   : > { %vm1850_vm2 = vmor %vm1848_vm1, %vm1849_vm15 }
 0xa54   : > { %v1844_v34 = vmul.f32 %v2142_v33, %v1843_v17 }
 0xa56   : > { %v1845_v35 = vmul.f32 0.5, %v1844_v34 }
 0xa58   : > { %v1846_v36 = vsub.f32 1.5, %v1845_v35 }
 0xa5a   : > { %v1847_v37 = vmul.f32 %v2142_v33, %v1846_v36 }
 0xa5c   : > { %v1851_v39 = vsel %vm1850_vm2, %v2142_v33, %v1847_v37 }
 0xa5d   : > { %v1853_v41 = vmul.f32 %v1852_v38, %v1851_v39 }
 0xa5f   : > { %v1857_v42 = vmul.f32 %v2101_v9, %v1853_v41 }
 0xa61   : > { %v1861_v49 = vadd.f32 %v2102_v40, %v1857_v42 }
 0xa63   : > { %1862 = vst.msk [vmem:[%s821_s26] sm:$0xff] %vm845_vm0, %v1861_v49 }
 0xa64 PF: > { %s36_s5 = sadd.s32 1, %s2247_s5  }
 0xa65   : > { %p33_p7 = scmp.ge.s32.totalorder %s36_s5, 4  }
 0xa67   :  { %35 = sbr.rel (!%p33_p7) target bundleno = 13 (0xd), region = 168 }
 0xa6c   :  { %1882 = vsyncpa [#allocation3], 1 }
 0xa6d   :  { %1884 = vsyncpa [#allocation3 + $0x1], 1 }
 0xa6e   :  { %1885 = vsyncpa [#allocation5], 1 }

</bundles_post_ra>
